<compile_context>
chip_gen: v6e
topology: v6e:2x2x1
jax: 0.10.0
libtpu: 0.0.40
codegen_flags: <defaults>
</compile_context>

<pallas_src>
import functools

import numpy as np
import jax
import jax.numpy as jnp
from jax import lax
from jax.experimental import pallas as pl
from jax.experimental.pallas import tpu as pltpu


C1 = 16     # conv1 output channels (10) padded for lane-dense packing
C2 = 32     # conv2 output channels (20) padded
FCP = 128   # fc hidden (50) / output (3) lane padding

CONST_KEYS = ("B1", "bias1", "SV1", "SH1", "B2", "bias2", "SV2", "SH2",
              "Wf1", "bias_f1", "Wf2", "bias_f2")


# ----------------------------- Pallas kernel ------------------------------- #

def _mnist3c_fused_kernel(x_ref, b1_ref, bias1_ref, sv1_ref, sh1_ref,
                          b2_ref, bias2_ref, sv2_ref, sh2_ref,
                          wf1_ref, biasf1_ref, wf2_ref, biasf2_ref, o_ref):
    f32 = jnp.float32
    dot = functools.partial(jnp.dot, preferred_element_type=f32)

    x = x_ref[0]                                             # (28, 28)

    # conv1 (1->10, k=5) as 5 band-matrix matmuls; lanes = ow*C1 + c.
    y1 = dot(x[0:24, :], b1_ref[0])
    for ki in range(1, 5):
        y1 = y1 + dot(x[ki:ki + 24, :], b1_ref[ki])
    y1 = y1 + bias1_ref[...]                                 # (24, 24*C1)

    # 2x2 max-pool + relu via row/lane selection matmuls (all MXU, lane-dense).
    v1 = jnp.maximum(dot(sv1_ref[0], y1), dot(sv1_ref[1], y1))   # (12, 24*C1)
    h1 = jnp.maximum(dot(v1, sh1_ref[0]), dot(v1, sh1_ref[1]))   # (12, 12*C1)
    h1 = jnp.maximum(h1, 0.0)

    # TODO(synk): conv2_drop (Dropout2d) is identity in inference mode;
    # training-mode random channel zeroing is not implemented.

    # conv2 (10->20, k=5), same band-matrix lowering; lanes = ow*C2 + o.
    y2 = dot(h1[0:8, :], b2_ref[0])
    for ki in range(1, 5):
        y2 = y2 + dot(h1[ki:ki + 8, :], b2_ref[ki])
    y2 = y2 + bias2_ref[...]                                 # (8, 8*C2)

    v2 = jnp.maximum(dot(sv2_ref[0], y2), dot(sv2_ref[1], y2))   # (4, 8*C2)
    h2 = jnp.maximum(dot(v2, sh2_ref[0]), dot(v2, sh2_ref[1]))   # (4, 4*C2)=(4,128)
    h2 = jnp.maximum(h2, 0.0)

    # fc1 (+relu). The PyTorch NCHW view(-1, 320) is folded into Wf1.
    f1 = biasf1_ref[...]                                     # (1, 128)
    for ph in range(4):
        f1 = f1 + dot(h2[ph:ph + 1, :], wf1_ref[ph])
    f1 = jnp.maximum(f1, 0.0)

    # fc2 (lanes 0..2 are the real logits, the rest are exact zeros).
    out = dot(f1, wf2_ref[...]) + biasf2_ref[...]            # (1, 128)
    o_ref[...] = out[None]                                   # (1, 1, 128)


# ------------------- one-time constant / weight preparation ---------------- #

def prepare_constants(params):
    """Fold conv weights into band matrices, pooling into selection matrices,
    and the NCHW flatten + channel padding into the fc weights. Runs once,
    outside jit (numpy)."""
    w1 = np.asarray(params["w1"], np.float32)        # (10, 1, 5, 5)
    b1 = np.asarray(params["b1"], np.float32)        # (10,)
    w2 = np.asarray(params["w2"], np.float32)        # (20, 10, 5, 5)
    b2 = np.asarray(params["b2"], np.float32)        # (20,)
    fw1 = np.asarray(params["fc1_w"], np.float32)    # (50, 320)
    fb1 = np.asarray(params["fc1_b"], np.float32)    # (50,)
    fw2 = np.asarray(params["fc2_w"], np.float32)    # (3, 50)
    fb2 = np.asarray(params["fc2_b"], np.float32)    # (3,)

    # conv1 band matrices: Y1[oh, ow*C1+c] = sum_ki (X[ki:ki+24,:] @ B1[ki]).
    B1 = np.zeros((5, 28, 24 * C1), np.float32)
    for ki in range(5):
        for ow in range(24):
            for kj in range(5):
                B1[ki, ow + kj, ow * C1:ow * C1 + 10] = w1[:, 0, ki, kj]
    bias1 = np.zeros((1, 24 * C1), np.float32)
    for ow in range(24):
        bias1[0, ow * C1:ow * C1 + 10] = b1

    # pool1 selections: rows (vertical) and lanes (horizontal).
    SV1 = np.zeros((2, 12, 24), np.float32)
    for ph in range(12):
        SV1[0, ph, 2 * ph] = 1.0
        SV1[1, ph, 2 * ph + 1] = 1.0
    SH1 = np.zeros((2, 24 * C1, 12 * C1), np.float32)
    for pw in range(12):
        for c in range(C1):
            SH1[0, (2 * pw) * C1 + c, pw * C1 + c] = 1.0
            SH1[1, (2 * pw + 1) * C1 + c, pw * C1 + c] = 1.0

    # conv2 band matrices (input lanes = iw*C1 + ci, output lanes = ow*C2 + o).
    B2 = np.zeros((5, 12 * C1, 8 * C2), np.float32)
    for ki in range(5):
        for ow in range(8):
            for kj in range(5):
                iw = ow + kj
                for ci in range(10):
                    B2[ki, iw * C1 + ci, ow * C2:ow * C2 + 20] = w2[:, ci, ki, kj]
    bias2 = np.zeros((1, 8 * C2), np.float32)
    for ow in range(8):
        bias2[0, ow * C2:ow * C2 + 20] = b2

    # pool2 selections.
    SV2 = np.zeros((2, 4, 8), np.float32)
    for ph in range(4):
        SV2[0, ph, 2 * ph] = 1.0
        SV2[1, ph, 2 * ph + 1] = 1.0
    SH2 = np.zeros((2, 8 * C2, 4 * C2), np.float32)
    for pw in range(4):
        for c in range(C2):
            SH2[0, (2 * pw) * C2 + c, pw * C2 + c] = 1.0
            SH2[1, (2 * pw + 1) * C2 + c, pw * C2 + c] = 1.0

    # fc1: PyTorch flattens NCHW (20,4,4) as f = o*16 + ph*4 + pw.
    # Our H2 layout is H2[ph, pw*C2 + o]; fold the permutation + padding in.
    Wf1 = np.zeros((4, 4 * C2, FCP), np.float32)
    for ph in range(4):
        for pw in range(4):
            for o in range(20):
                Wf1[ph, pw * C2 + o, :50] = fw1[:, o * 16 + ph * 4 + pw]
    bias_f1 = np.zeros((1, FCP), np.float32)
    bias_f1[0, :50] = fb1

    Wf2 = np.zeros((FCP, FCP), np.float32)
    Wf2[:50, :3] = fw2.T
    bias_f2 = np.zeros((1, FCP), np.float32)
    bias_f2[0, :3] = fb2

    consts = {"B1": B1, "bias1": bias1, "SV1": SV1, "SH1": SH1,
              "B2": B2, "bias2": bias2, "SV2": SV2, "SH2": SH2,
              "Wf1": Wf1, "bias_f1": bias_f1, "Wf2": Wf2, "bias_f2": bias_f2}
    return {k: jnp.asarray(v) for k, v in consts.items()}


# -------------------------------- forward ---------------------------------- #

@jax.jit
def mnist3c_cnn_forward(x_nchw, consts):
    N = x_nchw.shape[0]
    x = x_nchw.reshape(N, 28, 28).astype(jnp.float32)
    cvals = [consts[k] for k in CONST_KEYS]

    def const_spec(a):
        nd = a.ndim
        return pl.BlockSpec(a.shape, lambda n, _nd=nd: (0,) * _nd)

    out = pl.pallas_call(
        _mnist3c_fused_kernel,
        out_shape=jax.ShapeDtypeStruct((N, 1, FCP), jnp.float32),
        grid=(N,),
        in_specs=[pl.BlockSpec((1, 28, 28), lambda n: (n, 0, 0))]
                 + [const_spec(a) for a in cvals],
        out_specs=pl.BlockSpec((1, 1, FCP), lambda n: (n, 0, 0)),
        compiler_params=pltpu.CompilerParams(
            dimension_semantics=("parallel",)),
    )(x, *cvals)
    return out[:, 0, :3]                                     # (N, 3)


# --------------------------- params & reference ---------------------------- #

def init_params(key):
    """Deterministic synthetic params with the same shapes as MNIST3cCNN.__init__."""
    ks = jax.random.split(key, 8)

    def unif(k, shape, fan_in):
        bound = 1.0 / jnp.sqrt(jnp.float32(fan_in))
        return jax.random.uniform(k, shape, jnp.float32, -bound, bound)

    return {
        "w1": unif(ks[0], (10, 1, 5, 5), 25),      # conv1 weight (OIHW)
        "b1": unif(ks[1], (10,), 25),
        "w2": unif(ks[2], (20, 10, 5, 5), 250),    # conv2 weight (OIHW)
        "b2": unif(ks[3], (20,), 250),
        "fc1_w": unif(ks[4], (50, 320), 320),      # Linear weight (out, in)
        "fc1_b": unif(ks[5], (50,), 320),
        "fc2_w": unif(ks[6], (3, 50), 50),
        "fc2_b": unif(ks[7], (3,), 50),
    }


def reference_forward(x_nchw, params):
    """Pure-JAX reference (lax.conv / reduce_window) for numerical validation."""
    dn = ("NCHW", "OIHW", "NCHW")
    y = lax.conv_general_dilated(x_nchw, params["w1"], (1, 1), "VALID",
                                 dimension_numbers=dn)
    y = y + params["b1"][None, :, None, None]
    y = jax.nn.relu(lax.reduce_window(y, -jnp.inf, lax.max,
                                      (1, 1, 2, 2), (1, 1, 2, 2), "VALID"))
    y = lax.conv_general_dilated(y, params["w2"], (1, 1), "VALID",
                                 dimension_numbers=dn)
    y = y + params["b2"][None, :, None, None]
    y = jax.nn.relu(lax.reduce_window(y, -jnp.inf, lax.max,
                                      (1, 1, 2, 2), (1, 1, 2, 2), "VALID"))
    y = y.reshape(y.shape[0], 320)
    y = jax.nn.relu(y @ params["fc1_w"].T + params["fc1_b"])
    return y @ params["fc2_w"].T + params["fc2_b"]


# ---------------------------------- main ------------------------------------ #

if __name__ == "__main__":
    key = jax.random.PRNGKey(0)
    k_x, k_p = jax.random.split(key)

    # MNIST-style input: batch=2, 1 channel, 28x28 (fixed by the 320-flatten).
    x = jax.random.normal(k_x, (2, 1, 28, 28), dtype=jnp.float32)
    params = init_params(k_p)
    consts = prepare_constants(params)          # one-time weight folding

    out = mnist3c_cnn_forward(x, consts)
    out = jax.block_until_ready(out)

    ref = jax.block_until_ready(reference_forward(x, params))
    assert out.shape == (2, 3), out.shape
    assert jnp.allclose(out, ref, atol=2e-3, rtol=2e-3), (out, ref)

    print("KERNEL_OK")
</pallas_src>

<mosaic_0001>
module attributes {stable_mosaic.version = 11 : i64} {
  func.func @_mnist3c_fused_kernel(%arg0: i32, %arg1: memref<1x28x28xf32, #tpu.memory_space<vmem>>, %arg2: memref<5x28x384xf32, #tpu.memory_space<vmem>>, %arg3: memref<1x384xf32, #tpu.memory_space<vmem>>, %arg4: memref<2x12x24xf32, #tpu.memory_space<vmem>>, %arg5: memref<2x384x192xf32, #tpu.memory_space<vmem>>, %arg6: memref<5x192x256xf32, #tpu.memory_space<vmem>>, %arg7: memref<1x256xf32, #tpu.memory_space<vmem>>, %arg8: memref<2x4x8xf32, #tpu.memory_space<vmem>>, %arg9: memref<2x256x128xf32, #tpu.memory_space<vmem>>, %arg10: memref<4x128x128xf32, #tpu.memory_space<vmem>>, %arg11: memref<1x128xf32, #tpu.memory_space<vmem>>, %arg12: memref<128x128xf32, #tpu.memory_space<vmem>>, %arg13: memref<1x128xf32, #tpu.memory_space<vmem>>, %arg14: memref<1x1x128xf32, #tpu.memory_space<vmem>>) attributes {dimension_semantics = [#tpu.dimension_semantics<parallel>], iteration_bounds = array<i64: 2>, scalar_prefetch = 0 : i64, scratch_operands = 0 : i64, tpu.core_type = #tpu.core_type<tc>, window_params = [{transform_indices = @transform_0, window_bounds = array<i64: 1, 28, 28>}, {pipeline_mode = #tpu.pipeline_mode<synchronous>, transform_indices = @transform_1, window_bounds = array<i64: 5, 28, 384>}, {pipeline_mode = #tpu.pipeline_mode<synchronous>, transform_indices = @transform_2, window_bounds = array<i64: 1, 384>}, {pipeline_mode = #tpu.pipeline_mode<synchronous>, transform_indices = @transform_3, window_bounds = array<i64: 2, 12, 24>}, {pipeline_mode = #tpu.pipeline_mode<synchronous>, transform_indices = @transform_4, window_bounds = array<i64: 2, 384, 192>}, {pipeline_mode = #tpu.pipeline_mode<synchronous>, transform_indices = @transform_5, window_bounds = array<i64: 5, 192, 256>}, {pipeline_mode = #tpu.pipeline_mode<synchronous>, transform_indices = @transform_6, window_bounds = array<i64: 1, 256>}, {pipeline_mode = #tpu.pipeline_mode<synchronous>, transform_indices = @transform_7, window_bounds = array<i64: 2, 4, 8>}, {pipeline_mode = #tpu.pipeline_mode<synchronous>, transform_indices = @transform_8, window_bounds = array<i64: 2, 256, 128>}, {pipeline_mode = #tpu.pipeline_mode<synchronous>, transform_indices = @transform_9, window_bounds = array<i64: 4, 128, 128>}, {pipeline_mode = #tpu.pipeline_mode<synchronous>, transform_indices = @transform_10, window_bounds = array<i64: 1, 128>}, {pipeline_mode = #tpu.pipeline_mode<synchronous>, transform_indices = @transform_11, window_bounds = array<i64: 128, 128>}, {pipeline_mode = #tpu.pipeline_mode<synchronous>, transform_indices = @transform_12, window_bounds = array<i64: 1, 128>}, {transform_indices = @transform_13, window_bounds = array<i64: 1, 1, 128>}]} {
    %c0 = arith.constant 0 : index
    %c0_0 = arith.constant 0 : index
    %c0_1 = arith.constant 0 : index
    %0 = vector.load %arg1[%c0, %c0_0, %c0_1] : memref<1x28x28xf32, #tpu.memory_space<vmem>>, vector<1x28x28xf32>
    %1 = vector.shape_cast %0 : vector<1x28x28xf32> to vector<28x28xf32>
    %2 = vector.extract_strided_slice %1 {offsets = [0, 0], sizes = [24, 28], strides = [1, 1]} : vector<28x28xf32> to vector<24x28xf32>
    %c0_2 = arith.constant 0 : index
    %c0_3 = arith.constant 0 : index
    %c0_4 = arith.constant 0 : index
    %3 = vector.load %arg2[%c0_2, %c0_3, %c0_4] : memref<5x28x384xf32, #tpu.memory_space<vmem>>, vector<1x28x384xf32>
    %4 = vector.shape_cast %3 : vector<1x28x384xf32> to vector<28x384xf32>
    %cst = arith.constant dense<0.000000e+00> : vector<24x384xf32>
    %5 = tpu.matmul %2, %4, %cst {dimension_numbers = #tpu.dot_dimension_numbers<[1], [0], [0], [1], [0, 0, 1, 1], [], []>} : vector<24x28xf32>, vector<28x384xf32>, vector<24x384xf32> -> vector<24x384xf32>
    %6 = vector.extract_strided_slice %1 {offsets = [1, 0], sizes = [24, 28], strides = [1, 1]} : vector<28x28xf32> to vector<24x28xf32>
    %c1 = arith.constant 1 : index
    %c0_5 = arith.constant 0 : index
    %c0_6 = arith.constant 0 : index
    %7 = vector.load %arg2[%c1, %c0_5, %c0_6] : memref<5x28x384xf32, #tpu.memory_space<vmem>>, vector<1x28x384xf32>
    %8 = vector.shape_cast %7 : vector<1x28x384xf32> to vector<28x384xf32>
    %cst_7 = arith.constant dense<0.000000e+00> : vector<24x384xf32>
    %9 = tpu.matmul %6, %8, %cst_7 {dimension_numbers = #tpu.dot_dimension_numbers<[1], [0], [0], [1], [0, 0, 1, 1], [], []>} : vector<24x28xf32>, vector<28x384xf32>, vector<24x384xf32> -> vector<24x384xf32>
    %10 = arith.addf %5, %9 : vector<24x384xf32>
    %11 = vector.extract_strided_slice %1 {offsets = [2, 0], sizes = [24, 28], strides = [1, 1]} : vector<28x28xf32> to vector<24x28xf32>
    %c2 = arith.constant 2 : index
    %c0_8 = arith.constant 0 : index
    %c0_9 = arith.constant 0 : index
    %12 = vector.load %arg2[%c2, %c0_8, %c0_9] : memref<5x28x384xf32, #tpu.memory_space<vmem>>, vector<1x28x384xf32>
    %13 = vector.shape_cast %12 : vector<1x28x384xf32> to vector<28x384xf32>
    %cst_10 = arith.constant dense<0.000000e+00> : vector<24x384xf32>
    %14 = tpu.matmul %11, %13, %cst_10 {dimension_numbers = #tpu.dot_dimension_numbers<[1], [0], [0], [1], [0, 0, 1, 1], [], []>} : vector<24x28xf32>, vector<28x384xf32>, vector<24x384xf32> -> vector<24x384xf32>
    %15 = arith.addf %10, %14 : vector<24x384xf32>
    %16 = vector.extract_strided_slice %1 {offsets = [3, 0], sizes = [24, 28], strides = [1, 1]} : vector<28x28xf32> to vector<24x28xf32>
    %c3 = arith.constant 3 : index
    %c0_11 = arith.constant 0 : index
    %c0_12 = arith.constant 0 : index
    %17 = vector.load %arg2[%c3, %c0_11, %c0_12] : memref<5x28x384xf32, #tpu.memory_space<vmem>>, vector<1x28x384xf32>
    %18 = vector.shape_cast %17 : vector<1x28x384xf32> to vector<28x384xf32>
    %cst_13 = arith.constant dense<0.000000e+00> : vector<24x384xf32>
    %19 = tpu.matmul %16, %18, %cst_13 {dimension_numbers = #tpu.dot_dimension_numbers<[1], [0], [0], [1], [0, 0, 1, 1], [], []>} : vector<24x28xf32>, vector<28x384xf32>, vector<24x384xf32> -> vector<24x384xf32>
    %20 = arith.addf %15, %19 : vector<24x384xf32>
    %21 = vector.extract_strided_slice %1 {offsets = [4, 0], sizes = [24, 28], strides = [1, 1]} : vector<28x28xf32> to vector<24x28xf32>
    %c4 = arith.constant 4 : index
    %c0_14 = arith.constant 0 : index
    %c0_15 = arith.constant 0 : index
    %22 = vector.load %arg2[%c4, %c0_14, %c0_15] : memref<5x28x384xf32, #tpu.memory_space<vmem>>, vector<1x28x384xf32>
    %23 = vector.shape_cast %22 : vector<1x28x384xf32> to vector<28x384xf32>
    %cst_16 = arith.constant dense<0.000000e+00> : vector<24x384xf32>
    %24 = tpu.matmul %21, %23, %cst_16 {dimension_numbers = #tpu.dot_dimension_numbers<[1], [0], [0], [1], [0, 0, 1, 1], [], []>} : vector<24x28xf32>, vector<28x384xf32>, vector<24x384xf32> -> vector<24x384xf32>
    %25 = arith.addf %20, %24 : vector<24x384xf32>
    %c0_17 = arith.constant 0 : index
    %c0_18 = arith.constant 0 : index
    %26 = vector.load %arg3[%c0_17, %c0_18] : memref<1x384xf32, #tpu.memory_space<vmem>>, vector<1x384xf32>
    %27 = vector.broadcast %26 : vector<1x384xf32> to vector<24x384xf32>
    %28 = arith.addf %25, %27 : vector<24x384xf32>
    %c0_19 = arith.constant 0 : index
    %c0_20 = arith.constant 0 : index
    %c0_21 = arith.constant 0 : index
    %29 = vector.load %arg4[%c0_19, %c0_20, %c0_21] : memref<2x12x24xf32, #tpu.memory_space<vmem>>, vector<1x12x24xf32>
    %30 = vector.shape_cast %29 : vector<1x12x24xf32> to vector<12x24xf32>
    %cst_22 = arith.constant dense<0.000000e+00> : vector<12x384xf32>
    %31 = tpu.matmul %30, %28, %cst_22 {dimension_numbers = #tpu.dot_dimension_numbers<[1], [0], [0], [1], [0, 0, 1, 1], [], []>} : vector<12x24xf32>, vector<24x384xf32>, vector<12x384xf32> -> vector<12x384xf32>
    %c1_23 = arith.constant 1 : index
    %c0_24 = arith.constant 0 : index
    %c0_25 = arith.constant 0 : index
    %32 = vector.load %arg4[%c1_23, %c0_24, %c0_25] : memref<2x12x24xf32, #tpu.memory_space<vmem>>, vector<1x12x24xf32>
    %33 = vector.shape_cast %32 : vector<1x12x24xf32> to vector<12x24xf32>
    %cst_26 = arith.constant dense<0.000000e+00> : vector<12x384xf32>
    %34 = tpu.matmul %33, %28, %cst_26 {dimension_numbers = #tpu.dot_dimension_numbers<[1], [0], [0], [1], [0, 0, 1, 1], [], []>} : vector<12x24xf32>, vector<24x384xf32>, vector<12x384xf32> -> vector<12x384xf32>
    %35 = arith.maximumf %31, %34 : vector<12x384xf32>
    %c0_27 = arith.constant 0 : index
    %c0_28 = arith.constant 0 : index
    %c0_29 = arith.constant 0 : index
    %36 = vector.load %arg5[%c0_27, %c0_28, %c0_29] : memref<2x384x192xf32, #tpu.memory_space<vmem>>, vector<1x384x192xf32>
    %37 = vector.shape_cast %36 : vector<1x384x192xf32> to vector<384x192xf32>
    %cst_30 = arith.constant dense<0.000000e+00> : vector<12x192xf32>
    %38 = tpu.matmul %35, %37, %cst_30 {dimension_numbers = #tpu.dot_dimension_numbers<[1], [0], [0], [1], [0, 0, 1, 1], [], []>} : vector<12x384xf32>, vector<384x192xf32>, vector<12x192xf32> -> vector<12x192xf32>
    %c1_31 = arith.constant 1 : index
    %c0_32 = arith.constant 0 : index
    %c0_33 = arith.constant 0 : index
    %39 = vector.load %arg5[%c1_31, %c0_32, %c0_33] : memref<2x384x192xf32, #tpu.memory_space<vmem>>, vector<1x384x192xf32>
    %40 = vector.shape_cast %39 : vector<1x384x192xf32> to vector<384x192xf32>
    %cst_34 = arith.constant dense<0.000000e+00> : vector<12x192xf32>
    %41 = tpu.matmul %35, %40, %cst_34 {dimension_numbers = #tpu.dot_dimension_numbers<[1], [0], [0], [1], [0, 0, 1, 1], [], []>} : vector<12x384xf32>, vector<384x192xf32>, vector<12x192xf32> -> vector<12x192xf32>
    %42 = arith.maximumf %38, %41 : vector<12x192xf32>
    %cst_35 = arith.constant 0.000000e+00 : f32
    %43 = vector.broadcast %cst_35 : f32 to vector<12x192xf32>
    %44 = arith.maximumf %42, %43 : vector<12x192xf32>
    %45 = vector.extract_strided_slice %44 {offsets = [0, 0], sizes = [8, 192], strides = [1, 1]} : vector<12x192xf32> to vector<8x192xf32>
    %c0_36 = arith.constant 0 : index
    %c0_37 = arith.constant 0 : index
    %c0_38 = arith.constant 0 : index
    %46 = vector.load %arg6[%c0_36, %c0_37, %c0_38] : memref<5x192x256xf32, #tpu.memory_space<vmem>>, vector<1x192x256xf32>
    %47 = vector.shape_cast %46 : vector<1x192x256xf32> to vector<192x256xf32>
    %cst_39 = arith.constant dense<0.000000e+00> : vector<8x256xf32>
    %48 = tpu.matmul %45, %47, %cst_39 {dimension_numbers = #tpu.dot_dimension_numbers<[1], [0], [0], [1], [0, 0, 1, 1], [], []>} : vector<8x192xf32>, vector<192x256xf32>, vector<8x256xf32> -> vector<8x256xf32>
    %49 = vector.extract_strided_slice %44 {offsets = [1, 0], sizes = [8, 192], strides = [1, 1]} : vector<12x192xf32> to vector<8x192xf32>
    %c1_40 = arith.constant 1 : index
    %c0_41 = arith.constant 0 : index
    %c0_42 = arith.constant 0 : index
    %50 = vector.load %arg6[%c1_40, %c0_41, %c0_42] : memref<5x192x256xf32, #tpu.memory_space<vmem>>, vector<1x192x256xf32>
    %51 = vector.shape_cast %50 : vector<1x192x256xf32> to vector<192x256xf32>
    %cst_43 = arith.constant dense<0.000000e+00> : vector<8x256xf32>
    %52 = tpu.matmul %49, %51, %cst_43 {dimension_numbers = #tpu.dot_dimension_numbers<[1], [0], [0], [1], [0, 0, 1, 1], [], []>} : vector<8x192xf32>, vector<192x256xf32>, vector<8x256xf32> -> vector<8x256xf32>
    %53 = arith.addf %48, %52 : vector<8x256xf32>
    %54 = vector.extract_strided_slice %44 {offsets = [2, 0], sizes = [8, 192], strides = [1, 1]} : vector<12x192xf32> to vector<8x192xf32>
    %c2_44 = arith.constant 2 : index
    %c0_45 = arith.constant 0 : index
    %c0_46 = arith.constant 0 : index
    %55 = vector.load %arg6[%c2_44, %c0_45, %c0_46] : memref<5x192x256xf32, #tpu.memory_space<vmem>>, vector<1x192x256xf32>
    %56 = vector.shape_cast %55 : vector<1x192x256xf32> to vector<192x256xf32>
    %cst_47 = arith.constant dense<0.000000e+00> : vector<8x256xf32>
    %57 = tpu.matmul %54, %56, %cst_47 {dimension_numbers = #tpu.dot_dimension_numbers<[1], [0], [0], [1], [0, 0, 1, 1], [], []>} : vector<8x192xf32>, vector<192x256xf32>, vector<8x256xf32> -> vector<8x256xf32>
    %58 = arith.addf %53, %57 : vector<8x256xf32>
    %59 = vector.extract_strided_slice %44 {offsets = [3, 0], sizes = [8, 192], strides = [1, 1]} : vector<12x192xf32> to vector<8x192xf32>
    %c3_48 = arith.constant 3 : index
    %c0_49 = arith.constant 0 : index
    %c0_50 = arith.constant 0 : index
    %60 = vector.load %arg6[%c3_48, %c0_49, %c0_50] : memref<5x192x256xf32, #tpu.memory_space<vmem>>, vector<1x192x256xf32>
    %61 = vector.shape_cast %60 : vector<1x192x256xf32> to vector<192x256xf32>
    %cst_51 = arith.constant dense<0.000000e+00> : vector<8x256xf32>
    %62 = tpu.matmul %59, %61, %cst_51 {dimension_numbers = #tpu.dot_dimension_numbers<[1], [0], [0], [1], [0, 0, 1, 1], [], []>} : vector<8x192xf32>, vector<192x256xf32>, vector<8x256xf32> -> vector<8x256xf32>
    %63 = arith.addf %58, %62 : vector<8x256xf32>
    %64 = vector.extract_strided_slice %44 {offsets = [4, 0], sizes = [8, 192], strides = [1, 1]} : vector<12x192xf32> to vector<8x192xf32>
    %c4_52 = arith.constant 4 : index
    %c0_53 = arith.constant 0 : index
    %c0_54 = arith.constant 0 : index
    %65 = vector.load %arg6[%c4_52, %c0_53, %c0_54] : memref<5x192x256xf32, #tpu.memory_space<vmem>>, vector<1x192x256xf32>
    %66 = vector.shape_cast %65 : vector<1x192x256xf32> to vector<192x256xf32>
    %cst_55 = arith.constant dense<0.000000e+00> : vector<8x256xf32>
    %67 = tpu.matmul %64, %66, %cst_55 {dimension_numbers = #tpu.dot_dimension_numbers<[1], [0], [0], [1], [0, 0, 1, 1], [], []>} : vector<8x192xf32>, vector<192x256xf32>, vector<8x256xf32> -> vector<8x256xf32>
    %68 = arith.addf %63, %67 : vector<8x256xf32>
    %c0_56 = arith.constant 0 : index
    %c0_57 = arith.constant 0 : index
    %69 = vector.load %arg7[%c0_56, %c0_57] : memref<1x256xf32, #tpu.memory_space<vmem>>, vector<1x256xf32>
    %70 = vector.broadcast %69 : vector<1x256xf32> to vector<8x256xf32>
    %71 = arith.addf %68, %70 : vector<8x256xf32>
    %c0_58 = arith.constant 0 : index
    %c0_59 = arith.constant 0 : index
    %c0_60 = arith.constant 0 : index
    %72 = vector.load %arg8[%c0_58, %c0_59, %c0_60] : memref<2x4x8xf32, #tpu.memory_space<vmem>>, vector<1x4x8xf32>
    %73 = vector.shape_cast %72 : vector<1x4x8xf32> to vector<4x8xf32>
    %cst_61 = arith.constant dense<0.000000e+00> : vector<4x256xf32>
    %74 = tpu.matmul %73, %71, %cst_61 {dimension_numbers = #tpu.dot_dimension_numbers<[1], [0], [0], [1], [0, 0, 1, 1], [], []>} : vector<4x8xf32>, vector<8x256xf32>, vector<4x256xf32> -> vector<4x256xf32>
    %c1_62 = arith.constant 1 : index
    %c0_63 = arith.constant 0 : index
    %c0_64 = arith.constant 0 : index
    %75 = vector.load %arg8[%c1_62, %c0_63, %c0_64] : memref<2x4x8xf32, #tpu.memory_space<vmem>>, vector<1x4x8xf32>
    %76 = vector.shape_cast %75 : vector<1x4x8xf32> to vector<4x8xf32>
    %cst_65 = arith.constant dense<0.000000e+00> : vector<4x256xf32>
    %77 = tpu.matmul %76, %71, %cst_65 {dimension_numbers = #tpu.dot_dimension_numbers<[1], [0], [0], [1], [0, 0, 1, 1], [], []>} : vector<4x8xf32>, vector<8x256xf32>, vector<4x256xf32> -> vector<4x256xf32>
    %78 = arith.maximumf %74, %77 : vector<4x256xf32>
    %c0_66 = arith.constant 0 : index
    %c0_67 = arith.constant 0 : index
    %c0_68 = arith.constant 0 : index
    %79 = vector.load %arg9[%c0_66, %c0_67, %c0_68] : memref<2x256x128xf32, #tpu.memory_space<vmem>>, vector<1x256x128xf32>
    %80 = vector.shape_cast %79 : vector<1x256x128xf32> to vector<256x128xf32>
    %cst_69 = arith.constant dense<0.000000e+00> : vector<4x128xf32>
    %81 = tpu.matmul %78, %80, %cst_69 {dimension_numbers = #tpu.dot_dimension_numbers<[1], [0], [0], [1], [0, 0, 1, 1], [], []>} : vector<4x256xf32>, vector<256x128xf32>, vector<4x128xf32> -> vector<4x128xf32>
    %c1_70 = arith.constant 1 : index
    %c0_71 = arith.constant 0 : index
    %c0_72 = arith.constant 0 : index
    %82 = vector.load %arg9[%c1_70, %c0_71, %c0_72] : memref<2x256x128xf32, #tpu.memory_space<vmem>>, vector<1x256x128xf32>
    %83 = vector.shape_cast %82 : vector<1x256x128xf32> to vector<256x128xf32>
    %cst_73 = arith.constant dense<0.000000e+00> : vector<4x128xf32>
    %84 = tpu.matmul %78, %83, %cst_73 {dimension_numbers = #tpu.dot_dimension_numbers<[1], [0], [0], [1], [0, 0, 1, 1], [], []>} : vector<4x256xf32>, vector<256x128xf32>, vector<4x128xf32> -> vector<4x128xf32>
    %85 = arith.maximumf %81, %84 : vector<4x128xf32>
    %cst_74 = arith.constant 0.000000e+00 : f32
    %86 = vector.broadcast %cst_74 : f32 to vector<4x128xf32>
    %87 = arith.maximumf %85, %86 : vector<4x128xf32>
    %c0_75 = arith.constant 0 : index
    %c0_76 = arith.constant 0 : index
    %88 = vector.load %arg11[%c0_75, %c0_76] : memref<1x128xf32, #tpu.memory_space<vmem>>, vector<1x128xf32>
    %89 = vector.extract_strided_slice %87 {offsets = [0, 0], sizes = [1, 128], strides = [1, 1]} : vector<4x128xf32> to vector<1x128xf32>
    %c0_77 = arith.constant 0 : index
    %c0_78 = arith.constant 0 : index
    %c0_79 = arith.constant 0 : index
    %90 = vector.load %arg10[%c0_77, %c0_78, %c0_79] : memref<4x128x128xf32, #tpu.memory_space<vmem>>, vector<1x128x128xf32>
    %91 = vector.shape_cast %90 : vector<1x128x128xf32> to vector<128x128xf32>
    %cst_80 = arith.constant dense<0.000000e+00> : vector<1x128xf32>
    %92 = tpu.matmul %89, %91, %cst_80 {dimension_numbers = #tpu.dot_dimension_numbers<[1], [0], [0], [1], [0, 0, 1, 1], [], []>} : vector<1x128xf32>, vector<128x128xf32>, vector<1x128xf32> -> vector<1x128xf32>
    %93 = arith.addf %88, %92 : vector<1x128xf32>
    %94 = vector.extract_strided_slice %87 {offsets = [1, 0], sizes = [1, 128], strides = [1, 1]} : vector<4x128xf32> to vector<1x128xf32>
    %c1_81 = arith.constant 1 : index
    %c0_82 = arith.constant 0 : index
    %c0_83 = arith.constant 0 : index
    %95 = vector.load %arg10[%c1_81, %c0_82, %c0_83] : memref<4x128x128xf32, #tpu.memory_space<vmem>>, vector<1x128x128xf32>
    %96 = vector.shape_cast %95 : vector<1x128x128xf32> to vector<128x128xf32>
    %cst_84 = arith.constant dense<0.000000e+00> : vector<1x128xf32>
    %97 = tpu.matmul %94, %96, %cst_84 {dimension_numbers = #tpu.dot_dimension_numbers<[1], [0], [0], [1], [0, 0, 1, 1], [], []>} : vector<1x128xf32>, vector<128x128xf32>, vector<1x128xf32> -> vector<1x128xf32>
    %98 = arith.addf %93, %97 : vector<1x128xf32>
    %99 = vector.extract_strided_slice %87 {offsets = [2, 0], sizes = [1, 128], strides = [1, 1]} : vector<4x128xf32> to vector<1x128xf32>
    %c2_85 = arith.constant 2 : index
    %c0_86 = arith.constant 0 : index
    %c0_87 = arith.constant 0 : index
    %100 = vector.load %arg10[%c2_85, %c0_86, %c0_87] : memref<4x128x128xf32, #tpu.memory_space<vmem>>, vector<1x128x128xf32>
    %101 = vector.shape_cast %100 : vector<1x128x128xf32> to vector<128x128xf32>
    %cst_88 = arith.constant dense<0.000000e+00> : vector<1x128xf32>
    %102 = tpu.matmul %99, %101, %cst_88 {dimension_numbers = #tpu.dot_dimension_numbers<[1], [0], [0], [1], [0, 0, 1, 1], [], []>} : vector<1x128xf32>, vector<128x128xf32>, vector<1x128xf32> -> vector<1x128xf32>
    %103 = arith.addf %98, %102 : vector<1x128xf32>
    %104 = vector.extract_strided_slice %87 {offsets = [3, 0], sizes = [1, 128], strides = [1, 1]} : vector<4x128xf32> to vector<1x128xf32>
    %c3_89 = arith.constant 3 : index
    %c0_90 = arith.constant 0 : index
    %c0_91 = arith.constant 0 : index
    %105 = vector.load %arg10[%c3_89, %c0_90, %c0_91] : memref<4x128x128xf32, #tpu.memory_space<vmem>>, vector<1x128x128xf32>
    %106 = vector.shape_cast %105 : vector<1x128x128xf32> to vector<128x128xf32>
    %cst_92 = arith.constant dense<0.000000e+00> : vector<1x128xf32>
    %107 = tpu.matmul %104, %106, %cst_92 {dimension_numbers = #tpu.dot_dimension_numbers<[1], [0], [0], [1], [0, 0, 1, 1], [], []>} : vector<1x128xf32>, vector<128x128xf32>, vector<1x128xf32> -> vector<1x128xf32>
    %108 = arith.addf %103, %107 : vector<1x128xf32>
    %cst_93 = arith.constant 0.000000e+00 : f32
    %109 = vector.broadcast %cst_93 : f32 to vector<1x128xf32>
    %110 = arith.maximumf %108, %109 : vector<1x128xf32>
    %c0_94 = arith.constant 0 : index
    %c0_95 = arith.constant 0 : index
    %111 = vector.load %arg12[%c0_94, %c0_95] : memref<128x128xf32, #tpu.memory_space<vmem>>, vector<128x128xf32>
    %cst_96 = arith.constant dense<0.000000e+00> : vector<1x128xf32>
    %112 = tpu.matmul %110, %111, %cst_96 {dimension_numbers = #tpu.dot_dimension_numbers<[1], [0], [0], [1], [0, 0, 1, 1], [], []>} : vector<1x128xf32>, vector<128x128xf32>, vector<1x128xf32> -> vector<1x128xf32>
    %c0_97 = arith.constant 0 : index
    %c0_98 = arith.constant 0 : index
    %113 = vector.load %arg13[%c0_97, %c0_98] : memref<1x128xf32, #tpu.memory_space<vmem>>, vector<1x128xf32>
    %114 = arith.addf %112, %113 : vector<1x128xf32>
    %115 = vector.shape_cast %114 : vector<1x128xf32> to vector<1x1x128xf32>
    %c0_99 = arith.constant 0 : index
    %c0_100 = arith.constant 0 : index
    %c0_101 = arith.constant 0 : index
    %116 = vector.load %arg14[%c0_99, %c0_100, %c0_101] : memref<1x1x128xf32, #tpu.memory_space<vmem>>, vector<1x1x128xf32>
    tpu.vector_store %arg14[%c0_99, %c0_100, %c0_101], %115 {strides = array<i32>} : memref<1x1x128xf32, #tpu.memory_space<vmem>>, vector<1x1x128xf32>,
    return
  }
  func.func @transform_0(%arg0: i32) -> (i32, i32, i32) {
    %c0_i32 = arith.constant 0 : i32
    %c0_i32_0 = arith.constant 0 : i32
    %c0_i32_1 = arith.constant 0 : i32
    return %arg0, %c0_i32, %c0_i32_0 : i32, i32, i32
  }
  func.func @transform_1(%arg0: i32) -> (i32, i32, i32) {
    %c0_i32 = arith.constant 0 : i32
    %c0_i32_0 = arith.constant 0 : i32
    %c0_i32_1 = arith.constant 0 : i32
    %c0_i32_2 = arith.constant 0 : i32
    return %c0_i32, %c0_i32_0, %c0_i32_1 : i32, i32, i32
  }
  func.func @transform_2(%arg0: i32) -> (i32, i32) {
    %c0_i32 = arith.constant 0 : i32
    %c0_i32_0 = arith.constant 0 : i32
    %c0_i32_1 = arith.constant 0 : i32
    return %c0_i32, %c0_i32_0 : i32, i32
  }
  func.func @transform_3(%arg0: i32) -> (i32, i32, i32) {
    %c0_i32 = arith.constant 0 : i32
    %c0_i32_0 = arith.constant 0 : i32
    %c0_i32_1 = arith.constant 0 : i32
    %c0_i32_2 = arith.constant 0 : i32
    return %c0_i32, %c0_i32_0, %c0_i32_1 : i32, i32, i32
  }
  func.func @transform_4(%arg0: i32) -> (i32, i32, i32) {
    %c0_i32 = arith.constant 0 : i32
    %c0_i32_0 = arith.constant 0 : i32
    %c0_i32_1 = arith.constant 0 : i32
    %c0_i32_2 = arith.constant 0 : i32
    return %c0_i32, %c0_i32_0, %c0_i32_1 : i32, i32, i32
  }
  func.func @transform_5(%arg0: i32) -> (i32, i32, i32) {
    %c0_i32 = arith.constant 0 : i32
    %c0_i32_0 = arith.constant 0 : i32
    %c0_i32_1 = arith.constant 0 : i32
    %c0_i32_2 = arith.constant 0 : i32
    return %c0_i32, %c0_i32_0, %c0_i32_1 : i32, i32, i32
  }
  func.func @transform_6(%arg0: i32) -> (i32, i32) {
    %c0_i32 = arith.constant 0 : i32
    %c0_i32_0 = arith.constant 0 : i32
    %c0_i32_1 = arith.constant 0 : i32
    return %c0_i32, %c0_i32_0 : i32, i32
  }
  func.func @transform_7(%arg0: i32) -> (i32, i32, i32) {
    %c0_i32 = arith.constant 0 : i32
    %c0_i32_0 = arith.constant 0 : i32
    %c0_i32_1 = arith.constant 0 : i32
    %c0_i32_2 = arith.constant 0 : i32
    return %c0_i32, %c0_i32_0, %c0_i32_1 : i32, i32, i32
  }
  func.func @transform_8(%arg0: i32) -> (i32, i32, i32) {
    %c0_i32 = arith.constant 0 : i32
    %c0_i32_0 = arith.constant 0 : i32
    %c0_i32_1 = arith.constant 0 : i32
    %c0_i32_2 = arith.constant 0 : i32
    return %c0_i32, %c0_i32_0, %c0_i32_1 : i32, i32, i32
  }
  func.func @transform_9(%arg0: i32) -> (i32, i32, i32) {
    %c0_i32 = arith.constant 0 : i32
    %c0_i32_0 = arith.constant 0 : i32
    %c0_i32_1 = arith.constant 0 : i32
    %c0_i32_2 = arith.constant 0 : i32
    return %c0_i32, %c0_i32_0, %c0_i32_1 : i32, i32, i32
  }
  func.func @transform_10(%arg0: i32) -> (i32, i32) {
    %c0_i32 = arith.constant 0 : i32
    %c0_i32_0 = arith.constant 0 : i32
    %c0_i32_1 = arith.constant 0 : i32
    return %c0_i32, %c0_i32_0 : i32, i32
  }
  func.func @transform_11(%arg0: i32) -> (i32, i32) {
    %c0_i32 = arith.constant 0 : i32
    %c0_i32_0 = arith.constant 0 : i32
    %c0_i32_1 = arith.constant 0 : i32
    return %c0_i32, %c0_i32_0 : i32, i32
  }
  func.func @transform_12(%arg0: i32) -> (i32, i32) {
    %c0_i32 = arith.constant 0 : i32
    %c0_i32_0 = arith.constant 0 : i32
    %c0_i32_1 = arith.constant 0 : i32
    return %c0_i32, %c0_i32_0 : i32, i32
  }
  func.func @transform_13(%arg0: i32) -> (i32, i32, i32) {
    %c0_i32 = arith.constant 0 : i32
    %c0_i32_0 = arith.constant 0 : i32
    %c0_i32_1 = arith.constant 0 : i32
    return %arg0, %c0_i32, %c0_i32_0 : i32, i32, i32
  }
}

</mosaic_0001>

<bundles_post_ra>
// kernel: mnist3c_cnn_forward.1
= control target key start
LH: loop header
LB: loop body
LE: loop exit
PB: predicated region body
PF: predicated region fallthrough
CT: control target
= control target key end

     0   :  { %18 = vsyncpa [#allocation3], 0  ;;  %s7309_s0 = inlined_call_operand.vmem [shape: f32[2,28,28], index: 0, kind: input, shape index: {}]   ;;  %s7310_s1 = inlined_call_operand.hbm [shape: f32[5,28,384], index: 1, kind: input, shape index: {}]   ;;  %s7311_s2 = inlined_call_operand.vmem [shape: f32[1,384], index: 2, kind: input, shape index: {}]   ;;  %s7312_s3 = inlined_call_operand.vmem [shape: f32[2,12,24], index: 3, kind: input, shape index: {}]   ;;  %s7313_s4 = inlined_call_operand.vmem [shape: f32[2,384,192], index: 4, kind: input, shape index: {}]   ;;  %s7314_s5 = inlined_call_operand.vmem [shape: f32[5,192,256], index: 5, kind: input, shape index: {}]   ;;  %s7315_s6 = inlined_call_operand.vmem [shape: f32[1,256], index: 6, kind: input, shape index: {}]   ;;  %s7316_s7 = inlined_call_operand.vmem [shape: f32[2,4,8], index: 7, kind: input, shape index: {}]   ;;  %s7317_s8 = inlined_call_operand.vmem [shape: f32[2,256,128], index: 8, kind: input, shape index: {}]   ;;  %s7318_s9 = inlined_call_operand.vmem [shape: f32[4,128,128], index: 9, kind: input, shape index: {}]   ;;  %s7319_s10 = inlined_call_operand.vmem [shape: f32[1,128], index: 10, kind: input, shape index: {}]   ;;  %s7320_s11 = inlined_call_operand.hbm [shape: f32[128,128], index: 11, kind: input, shape index: {}]   ;;  %s7321_s12 = inlined_call_operand.vmem [shape: f32[1,128], index: 12, kind: input, shape index: {}]   ;;  %s7322_s13 = inlined_call_operand.hbm [shape: f32[2,1,128], index: 13, kind: output, shape index: {}]  }
   0x1   :  { %19 = vsyncpa [#allocation6], 0 }
   0x2   :  { %20 = vsyncpa [#allocation4], 0 }
   0x3   :  { %22 = vsyncpa [#allocation4 + $0x1], 0  ;;  %s5104_s25 = smov 0   ;;  %s5106_s26 = smov 0  }
   0x4   :  { %s5108_s27 = smov 0   ;;  %s5110_s28 = smov 0  }
   0x5 LB: > { %7329 = sst [smem:[#allocation11_spill]] %s5011_s25  ;;  %s5125_s29 = sadd.s32 4294967295, %s5023_s28   ;;  %s5023_s28 = sphi %s5110_s28, %s7345_s28   ;;  %s5019_s27 = sphi %s5108_s27, %s7347_s27   ;;  %s5015_s26 = sphi %s5106_s26, %s7349_s26   ;;  %s5011_s25 = sphi %s5104_s25, %s7348_s25  }
   0x6   : > { %7330 = sst [smem:[#allocation12_spill]] %s5019_s27  ;;  %s3914_s30 = sadd.s32 4294967294, %s5023_s28  }
   0x7   : > { %s5129_s14 = sadd.s32 1, %s5023_s28   ;;  %s313_s15 = sadd.s32 1, %s5019_s27 }
   0x8   : > { %7331 = sst [smem:[#allocation13_spill]] %s5129_s14  ;;  %s310_s16 = ssub.s32 %s5023_s28, %s5129_s14 }
   0x9   : > { %p323_p0 = scmp.ne.s32.totalorder %s5019_s27, %s5015_s26  ;;  %p311_p1 = scmp.eq.s32.totalorder %s310_s16, 0 }
   0xa   : > { %p324_p2 = scmp.eq.s32.totalorder %s5125_s29, 1  ;;  %p329_p3 = scmp.ne.s32.totalorder %s5015_s26, %s5011_s25 }
   0xb   : > { %p330_p4 = scmp.eq.s32.totalorder %s3914_s30, 1  ;;  %p3915_p7 = scmp.ge.s32.totalorder %s5023_s28, 1 }
   0xc   : > { %s5140_s17 = scalar_select %p311_p1, %s5019_s27, %s313_s15  }
   0xd   : > { %p5142_p5 = por %p324_p2, %p323_p0  ;;  %p5146_p6 = por %p330_p4, %p329_p3 }
   0xe   : > { %7332 = sst [smem:[#allocation14_spill]] %s5140_s17  ;;  %p337_p8 = scmp.lt.s32.totalorder %s5023_s28, 3 }
   0xf   : > { %s7334_s19 = scalar_select %p5146_p6, 1, 0 }
  0x10   : > { %p7324_p9 = scmp.eq.s32.totalorder %s5125_s29, 0  ;;  %p5153_p10 = pnand %p3915_p7, %p337_p8 }
  0x11   : > { %7335 = sst [smem:[#allocation15_spill]] %s7334_s19  ;;  %s5025_s21 = smov [#allocation2]  }
  0x12   : > { %s349_s22 = sshll.u32 %s5025_s21, 4  ;;  %p4847_p11 = pneg %p5153_p10  ;;  %s350_s22 = int_to_ptr.vmem [resolvable:$true] %s349_s22 }
  0x13   : > { %s5026_s24 = smov [#allocation5]   ;;  %s4914_s15 = scalar_lea.vmem %s350_s22, 7680 }
  0x14   : > { %p5161_p12 = pnand %p7324_p9, %p4847_p11  ;;  %s389_s30 = sshll.u32 %s5026_s24, 4  ;;  %s390_s30 = int_to_ptr.vmem [resolvable:$true] %s389_s30 }
  0x15   : > { %p4915_p0 = scmp.ne.s32.totalorder %s350_s22, %s4914_s15  ;;  %p4922_p3 = scmp.lt.s32.totalorder %s350_s22, %s350_s22 }
  0x16   : > { %p4905_p13 = pneg %p5161_p12  ;;  %p4923_p4 = scmp.lt.s32.totalorder %s4914_s15, %s4914_s15 }
  0x18   : > { %p4917_p1 = pnand %p4915_p0, %p4905_p13  ;;  %p4924_p7 = por %p4923_p4, %p4922_p3 }
  0x1a   : > { %p4918_p2 = pneg %p4917_p1 }
  0x1c   : > { %p4925_p8 = pnand %p4924_p7, %p4918_p2 }
  0x1e   : > { %4928 = shalt.err (!%p4925_p8)
}
  0x1f   : > { %s5027_s16 = smov 384   ;;  %s5028_s21 = smov 24  }
  0x20   : > { %4850 = dma.hbm_to_vmem [thread:$0]  (!%p5161_p12), %s7310_s1, 7680, %s350_s22, [#allocation3], %s5027_s16, %s5027_s16, %s5028_s21  }
  0x21   : > { %s4940_s27 = scalar_lea.vmem %s390_s30, 2048  ;;  %p4948_p9 = scmp.lt.s32.totalorder %s390_s30, %s390_s30 }
  0x22   : > { %p4941_p11 = scmp.ne.s32.totalorder %s390_s30, %s4940_s27  ;;  %p4949_p6 = scmp.lt.s32.totalorder %s4940_s27, %s4940_s27 }
  0x24   : > { %p4943_p0 = pnand %p4941_p11, %p4905_p13  ;;  %p4950_p3 = por %p4949_p6, %p4948_p9 }
  0x26   : > { %p4944_p1 = pneg %p4943_p0 }
  0x28   : > { %p4951_p2 = pnand %p4950_p3, %p4944_p1 }
  0x2a   : > { %4954 = shalt.err (!%p4951_p2)
}
  0x2b   : > { %s5029_s15 = smov 128   ;;  %s5030_s14 = smov 8  }
  0x2c   : > { %4853 = dma.hbm_to_vmem [thread:$0]  (!%p5161_p12), %s7320_s11, 2048, %s390_s30, [#allocation6], %s5029_s15, %s5029_s15, %s5030_s14  }
  0x2d   : > { %416 = sbr.rel (%p5153_p10) target bundleno = 1987 (0x7c3), region = 72  ;;  %p7338_p4 = scmp.eq.s32.totalorder (!%p5153_p10), %s5125_s29, 0 }
  0x32   : > { %4998 = dma.done.wait (%p7338_p4), [#allocation3], 7680   ;;  %p7339_p13 = pmov %p7338_p4 }
  0x33   : > { %p7340_p6 = pmov %p7338_p4 }
  0x34   : > { %5000 = vsyncadd (%p7339_p13), [#allocation3], 4294959616 }
  0x35   : > { %5002 = dma.done.wait (%p7340_p6), [#allocation6], 2048   ;;  %p7341_p9 = pmov %p7338_p4 }
  0x36   : > { %p463_p7 = scmp.lt.s32.totalorder %s5125_s29, 1  ;;  %v5031_v0 = vmov 0.0   ;;  %vm5032_vm0 = vmmov 0   ;;  %vm516_vm1 = vcmask 1043456   ;;  %v495_v1 = vld [vmem:[#allocation2 + $0xb0] sm:$0xf] }
  0x37   : > { %5004 = vsyncadd (%p7341_p9), [#allocation6], 4294965248  ;;  %4559 = vmatprep.subr.mxu1 %v5031_v0  ;;  %4567 = vmatprep.mubr.msk.f32.mxu1 %vm5032_vm0, %v5031_v0  ;;  %v496_v2 = vld [vmem:[#allocation2 + $0xb8] sm:$0xf]  ;;  %v494_v3 = vld [vmem:[#allocation2 + $0xa8] sm:$0xf] }
  0x38   : > { %590 = vmatprep.mubr.f32.mxu0 %v5031_v0  ;;  %s464_s25 = scalar_select %p463_p7, %s5125_s29, 1  ;;  %3924 = vmatprep.subr.msk.mxu0 %vm516_vm1, %v495_v1  ;;  %v492_v4 = vld [vmem:[#allocation2 + $0x98] sm:$0xff]  ;;  %v493_v5 = vld [vmem:[#allocation2 + $0xa0] sm:$0xff]  ;;  %v491_v6 = vld [vmem:[#allocation2 + $0x90] sm:$0xff]  ;;  %vm501_vm2 = vcmask 1046528   ;;  %vm509_vm3 = vcmask 228352  }
  0x39   : > { %4560 = vmatpush3.msk.msra.mxu1 %vm516_vm1, %v496_v2  ;;  %3925 = vmatpush1.msk.msra.mxu0 %vm516_vm1, %v494_v3  ;;  %v489_v7 = vld [vmem:[#allocation2 + $0x80] sm:$0xff]  ;;  %v490_v8 = vld [vmem:[#allocation2 + $0x88] sm:$0xff]  ;;  %v488_v9 = vld [vmem:[#allocation2 + $0x78] sm:$0xff]  ;;  %vm880_vm4 = vcmask 1045504   ;;  %vm1088_vm5 = vcmask 1044480   ;;  %vm1518_vm6 = vcmask 195584  }
  0x3a   : > { %s4358_s27 = sshll.u32 %s464_s25, 5  ;;  %4561 = vmatprep.subr.mxu1 %v5031_v0  ;;  %552 = vmatprep.subr.mxu0 %v492_v4  ;;  %v486_v10 = vld [vmem:[#allocation2 + $0x68] sm:$0xff]  ;;  %v487_v11 = vld [vmem:[#allocation2 + $0x70] sm:$0xff]  ;;  %v485_v15 = vld [vmem:[#allocation2 + $0x60] sm:$0xff]  ;;  %vm2461_vm7 = vcmask 523264   ;;  %vm3016_vm8 = vcmask 64512  }
  0x3b   : > { %s467_s19 = scalar_lea.vmem %s7309_s0, %s4358_s27  ;;  %4562 = vmatpush3.msra.mxu1 %v493_v5  ;;  %553 = vmatpush1.msra.mxu0 %v491_v6  ;;  %v482_v21 = vld [vmem:[#allocation2 + $0x50] sm:$0xf]  ;;  %v483_v22 = vld [vmem:[#allocation2 + $0x58] sm:$0xf]  ;;  %v481_v24 = vld [vmem:[#allocation2 + $0x48] sm:$0xf] }
  0x3c   : > { %4563 = vmatprep.subr.mxu1 %v5031_v0  ;;  %v5207_v12 = vld [vmem:[%s467_s19] sm:$0xff]  ;;  %v5209_v13 = vld [vmem:[%s467_s19 + $0x8] sm:$0xff]  ;;  %v5211_v14 = vld [vmem:[%s467_s19 + $0x10] sm:$0xff]  ;;  %554 = vmatprep.subr.mxu0 %v489_v7  ;;  %s461_s15 = sand.u32 1, %s5015_s26   ;;  %s4355_s14 = sshll.u32 %s5125_s29, 4 }
  0x3d   : > { %4564 = vmatpush3.msra.mxu1 %v490_v8  ;;  %v502_v16 = vrot.slane %v5207_v12, 1  ;;  %v503_v17 = vrot.slane %v5209_v13, 1  ;;  %v505_v18 = vrot.slane %v5211_v14, 1  ;;  %555 = vmatpush1.msra.mxu0 %v488_v9  ;;  %v5218_v20 = vld [vmem:[%s467_s19 + $0x18] sm:$0xf]  ;;  %v480_v27 = vld [vmem:[#allocation2 + $0x40] sm:$0xff]  ;;  %s7274_s23 = scalar_lea.hbm %s7322_s13, %s4355_s14 }
  0x3e   : > { %4565 = vmatprep.subr.mxu1 %v5031_v0  ;;  %556 = vmatprep.subr.mxu0 %v486_v10  ;;  %v507_v25 = vrot.slane %v5218_v20, 1  ;;  %v479_v26 = vld [vmem:[#allocation2 + $0x38] sm:$0xff]  ;;  %v478_v29 = vld [vmem:[#allocation2 + $0x30] sm:$0xff]  ;;  %v476_v30 = vld [vmem:[#allocation2 + $0x20] sm:$0xff]  ;;  %v881_v44 = vrot.slane %v5207_v12, 2  ;;  %v882_v45 = vrot.slane %v5209_v13, 2 }
  0x3f   : > { %4566 = vmatpush3.msra.mxu1 %v487_v11  ;;  %v504_v19 = vsel %vm501_vm2, %v502_v16, %v503_v17  ;;  %557 = vmatpush1.msra.mxu0 %v485_v15  ;;  %v506_v23 = vsel %vm501_vm2, %v503_v17, %v505_v18  ;;  %v477_v31 = vld [vmem:[#allocation2 + $0x28] sm:$0xff]  ;;  %v475_v32 = vld [vmem:[#allocation2 + $0x18] sm:$0xff]  ;;  %v474_v34 = vld [vmem:[#allocation2 + $0x10] sm:$0xff]  ;;  %v884_v51 = vrot.slane %v5211_v14, 2  ;;  %v886_v56 = vrot.slane %v5218_v20, 2  ;;  %s462_s17 = scalar_lea.vmem [#allocation7], %s461_s15 }
  0x40   : > { %4568 = vmatmul.mubr.msk.f32.vlgmr.msra.gmra.mxu1 %vm509_vm3, %v504_v19  ;;  %3926 = vmatmul.mubr.msk.f32.vlgmr.msra.gmra.mxu0 %vm509_vm3, %v504_v19  ;;  %v508_v28 = vsel %vm501_vm2, %v505_v18, %v507_v25  ;;  %v473_v33 = vld [vmem:[#allocation2 + $0x8] sm:$0xff]  ;;  %v472_v35 = vld [vmem:[#allocation2] sm:$0xff]  ;;  %v878_v36 = vld [vmem:[#allocation2 + $0x110] sm:$0xf]  ;;  %v883_v50 = vsel %vm880_vm4, %v881_v44, %v882_v45  ;;  %v1089_v63 = vrot.slane %v5207_v12, 3  ;;  %v1090_v1 = vrot.slane %v5209_v13, 3 }
  0x41   : > { %4570 = vmatprep.mubr.msk.f32.mxu1 %vm5032_vm0, %v5031_v0  ;;  %596 = vmatprep.mubr.f32.mxu0 %v5031_v0  ;;  %v879_v37 = vld [vmem:[#allocation2 + $0x118] sm:$0xf]  ;;  %v877_v38 = vld [vmem:[#allocation2 + $0x108] sm:$0xf]  ;;  %v876_v40 = vld [vmem:[#allocation2 + $0x100] sm:$0xff]  ;;  %v885_v54 = vsel %vm880_vm4, %v882_v45, %v884_v51  ;;  %v887_v59 = vsel %vm880_vm4, %v884_v51, %v886_v56  ;;  %v1092_v7 = vrot.slane %v5211_v14, 3 }
  0x42   : > { %4576 = vmatprep.subr.mxu1 %v5031_v0  ;;  %3933 = vmatprep.subr.msk.mxu0 %vm516_vm1, %v482_v21  ;;  %v875_v39 = vld [vmem:[#allocation2 + $0xf8] sm:$0xff]  ;;  %v874_v41 = vld [vmem:[#allocation2 + $0xf0] sm:$0xff]  ;;  %v872_v42 = vld [vmem:[#allocation2 + $0xe0] sm:$0xff]  ;;  %v1091_v6 = vsel %vm1088_vm5, %v1089_v63, %v1090_v1  ;;  %v1094_v15 = vrot.slane %v5218_v20, 3  ;;  %s3837_s19 = sshll.u32 %s462_s17, 4  ;;  %s3825_s30 = scalar_lea.sflag [#allocation4], %s461_s15  ;;  %s3838_s19 = int_to_ptr.vmem [resolvable:$true] %s3837_s19 }
  0x43   : > { %4577 = vmatpush3.msk.msra.mxu1 %vm516_vm1, %v483_v22  ;;  %3934 = vmatpush1.msk.msra.mxu0 %vm516_vm1, %v481_v24  ;;  %v873_v43 = vld [vmem:[#allocation2 + $0xe8] sm:$0xff]  ;;  %v871_v46 = vld [vmem:[#allocation2 + $0xd8] sm:$0xff]  ;;  %v870_v48 = vld [vmem:[#allocation2 + $0xd0] sm:$0xff]  ;;  %v1093_v10 = vsel %vm1088_vm5, %v1090_v1, %v1092_v7  ;;  %v1297_v24 = vrot.slane %v5209_v13, 4  ;;  %s4955_s16 = scalar_lea.vmem %s3838_s19, 16  ;;  %s5033_s21 = smov [#allocation7]  }
  0x44   : > { %4571 = vmatmul.mubr.msk.f32.gmra.mxu1 %vm509_vm3, %v506_v23  ;;  %3927 = vmatmul.mubr.msk.f32.gmra.mxu0 %vm509_vm3, %v506_v23  ;;  %v869_v47 = vld [vmem:[#allocation2 + $0xc8] sm:$0xff]  ;;  %v868_v49 = vld [vmem:[#allocation2 + $0xc0] sm:$0xff]  ;;  %v1086_v52 = vld [vmem:[#allocation2 + $0x170] sm:$0xf]  ;;  %v1095_v18 = vsel %vm1088_vm5, %v1092_v7, %v1094_v15  ;;  %v1296_v23 = vrot.slane %v5207_v12, 4  ;;  %p4956_p10 = scmp.ne.s32.totalorder %s3838_s19, %s4955_s16  ;;  %s4959_s29 = sshll.u32 %s5033_s21, 4  ;;  %s4960_s29 = int_to_ptr.vmem [resolvable:$false] %s4959_s29 }
  0x45   : > { %4578 = vmatprep.subr.mxu1 %v5031_v0  ;;  %4573 = vmatprep.mubr.msk.f32.mxu1 %vm5032_vm0, %v5031_v0  ;;  %v1087_v53 = vld [vmem:[#allocation2 + $0x178] sm:$0xf]  ;;  %v1085_v55 = vld [vmem:[#allocation2 + $0x168] sm:$0xf]  ;;  %v1084_v58 = vld [vmem:[#allocation2 + $0x160] sm:$0xff]  ;;  %s4961_s24 = scalar_lea.vmem %s4960_s29, 32  ;;  %p4962_p11 = scmp.lt.s32.totalorder %s3838_s19, %s4960_s29 }
  0x46   : > { %730 = vmatprep.subr.mxu0 %v479_v26  ;;  %4579 = vmatpush3.msra.mxu1 %v480_v27  ;;  %v1083_v57 = vld [vmem:[#allocation2 + $0x158] sm:$0xff]  ;;  %v1082_v60 = vld [vmem:[#allocation2 + $0x150] sm:$0xff]  ;;  %v1080_v61 = vld [vmem:[#allocation2 + $0x140] sm:$0xff]  ;;  %p4957_p12 = pnand %p4956_p10, %p5142_p5  ;;  %p4963_p0 = scmp.lt.s32.totalorder %s4961_s24, %s4955_s16 }
  0x47   : > { %602 = vmatprep.mubr.f32.mxu0 %v5031_v0  ;;  %731 = vmatpush1.msra.mxu0 %v478_v29  ;;  %v1081_v62 = vld [vmem:[#allocation2 + $0x148] sm:$0xff]  ;;  %v1079_v2 = vld [vmem:[#allocation2 + $0x138] sm:$0xff]  ;;  %v1078_v4 = vld [vmem:[#allocation2 + $0x130] sm:$0xff] }
  0x48   : > { %4574 = vmatmul.mubr.msk.f32.gmra.mxu1 %vm509_vm3, %v508_v28  ;;  %4580 = vmatprep.subr.mxu1 %v5031_v0  ;;  %v1077_v3 = vld [vmem:[#allocation2 + $0x128] sm:$0xff]  ;;  %v1076_v5 = vld [vmem:[#allocation2 + $0x120] sm:$0xff]  ;;  %v1294_v8 = vld [vmem:[#allocation2 + $0x1d0] sm:$0xf]  ;;  %p4958_p8 = pneg %p4957_p12  ;;  %p4964_p1 = por %p4963_p0, %p4962_p11 }
  0x49   : > { %3928 = vmatmul.mubr.msk.f32.gmra.mxu0 %vm509_vm3, %v508_v28  ;;  %732 = vmatprep.subr.mxu0 %v476_v30  ;;  %v1295_v9 = vld [vmem:[#allocation2 + $0x1d8] sm:$0xf]  ;;  %v1293_v11 = vld [vmem:[#allocation2 + $0x1c8] sm:$0xf]  ;;  %v1292_v17 = vld [vmem:[#allocation2 + $0x1c0] sm:$0xff]  ;;  %v1301_v30 = vrot.slane %v5218_v20, 4 }
  0x4a   : > { %4581 = vmatpush3.msra.mxu1 %v477_v31  ;;  %733 = vmatpush1.msra.mxu0 %v475_v32  ;;  %v1291_v16 = vld [vmem:[#allocation2 + $0x1b8] sm:$0xff]  ;;  %v1290_v19 = vld [vmem:[#allocation2 + $0x1b0] sm:$0xff]  ;;  %v1288_v21 = vld [vmem:[#allocation2 + $0x1a0] sm:$0xff]  ;;  %p4965_p3 = pnand %p4964_p1, %p4958_p8 }
  0x4b   : > { %4582 = vmatprep.subr.mxu1 %v5031_v0  ;;  %734 = vmatprep.subr.mxu0 %v473_v33  ;;  %v1289_v22 = vld [vmem:[#allocation2 + $0x1a8] sm:$0xff]  ;;  %v1287_v25 = vld [vmem:[#allocation2 + $0x198] sm:$0xff]  ;;  %v1286_v27 = vld [vmem:[#allocation2 + $0x190] sm:$0xff] }
  0x4c   : > { %4583 = vmatpush3.msra.mxu1 %v474_v34  ;;  %4584 = vmatprep.mubr.msk.f32.mxu1 %vm5032_vm0, %v5031_v0  ;;  %v1285_v26 = vld [vmem:[#allocation2 + $0x188] sm:$0xff]  ;;  %v1284_v28 = vld [vmem:[#allocation2 + $0x180] sm:$0xff] }
  0x4d   : > { %735 = vmatpush1.msra.mxu0 %v472_v35  ;;  %768 = vmatprep.mubr.f32.mxu0 %v5031_v0  ;;  %v5354_v20 = vld [vmem:[%s7312_s3] sm:$0xff] }
  0x4e   : > { %4585 = vmatmul.mubr.msk.f32.vlgmr.msra.gmra.mxu1 %vm509_vm3, %v5207_v12  ;;  %3935 = vmatmul.mubr.msk.f32.vlgmr.msra.gmra.mxu0 %vm509_vm3, %v5207_v12  ;;  %v1298_v12 = vsel %vm516_vm1, %v1296_v23, %v1297_v24 }
  0x4f   : > { %4587 = vmatprep.mubr.msk.f32.mxu1 %vm5032_vm0, %v5031_v0  ;;  %774 = vmatprep.mubr.f32.mxu0 %v5031_v0 }
  0x50   : > { %4593 = vmatprep.subr.mxu1 %v5031_v0  ;;  %3942 = vmatprep.subr.msk.mxu0 %vm516_vm1, %v878_v36 }
  0x51   : > { %4594 = vmatpush3.msk.msra.mxu1 %vm516_vm1, %v879_v37  ;;  %3943 = vmatpush1.msk.msra.mxu0 %vm516_vm1, %v877_v38 }
  0x52   : > { %4588 = vmatmul.mubr.msk.f32.gmra.mxu1 %vm509_vm3, %v5209_v13  ;;  %3936 = vmatmul.mubr.msk.f32.gmra.mxu0 %vm509_vm3, %v5209_v13  ;;  %v1299_v13 = vrot.slane %v5211_v14, 4 }
  0x53   : > { %4595 = vmatprep.subr.mxu1 %v5031_v0  ;;  %4590 = vmatprep.mubr.msk.f32.mxu1 %vm5032_vm0, %v5031_v0 }
  0x54   : > { %929 = vmatprep.subr.mxu0 %v875_v39  ;;  %4596 = vmatpush3.msra.mxu1 %v876_v40  ;;  %v1300_v29 = vsel %vm516_vm1, %v1297_v24, %v1299_v13  ;;  %v1490_v24 = vld [vmem:[%s7311_s2] sm:$0x7] }
  0x55   : > { %780 = vmatprep.mubr.f32.mxu0 %v5031_v0  ;;  %930 = vmatpush1.msra.mxu0 %v874_v41 }
  0x56   : > { %4591 = vmatmul.mubr.msk.f32.gmra.mxu1 %vm509_vm3, %v5211_v14  ;;  %4597 = vmatprep.subr.mxu1 %v5031_v0 }
  0x57   : > { %3937 = vmatmul.mubr.msk.f32.gmra.mxu0 %vm509_vm3, %v5211_v14  ;;  %931 = vmatprep.subr.mxu0 %v872_v42  ;;  %v1302_v14 = vsel %vm516_vm1, %v1299_v13, %v1301_v30 }
  0x58   : > { %4598 = vmatpush3.msra.mxu1 %v873_v43  ;;  %932 = vmatpush1.msra.mxu0 %v871_v46 }
  0x59   : > { %4599 = vmatprep.subr.mxu1 %v5031_v0  ;;  %933 = vmatprep.subr.mxu0 %v869_v47 }
  0x5a   : > { %4600 = vmatpush3.msra.mxu1 %v870_v48  ;;  %4601 = vmatprep.mubr.msk.f32.mxu1 %vm5032_vm0, %v5031_v0 }
  0x5b   : > { %934 = vmatpush1.msra.mxu0 %v868_v49  ;;  %967 = vmatprep.mubr.f32.mxu0 %v5031_v0 }
  0x5c   : > { %4602 = vmatmul.mubr.msk.f32.vlgmr.msra.gmra.mxu1 %vm509_vm3, %v883_v50  ;;  %3944 = vmatmul.mubr.msk.f32.vlgmr.msra.gmra.mxu0 %vm509_vm3, %v883_v50 }
  0x5d   : > { %4604 = vmatprep.mubr.msk.f32.mxu1 %vm5032_vm0, %v5031_v0  ;;  %973 = vmatprep.mubr.f32.mxu0 %v5031_v0 }
  0x5e   : > { %4610 = vmatprep.subr.mxu1 %v5031_v0  ;;  %3951 = vmatprep.subr.msk.mxu0 %vm516_vm1, %v1086_v52 }
  0x5f   : > { %4611 = vmatpush3.msk.msra.mxu1 %vm516_vm1, %v1087_v53  ;;  %3952 = vmatpush1.msk.msra.mxu0 %vm516_vm1, %v1085_v55 }
  0x60   : > { %4605 = vmatmul.mubr.msk.f32.gmra.mxu1 %vm509_vm3, %v885_v54  ;;  %3945 = vmatmul.mubr.msk.f32.gmra.mxu0 %vm509_vm3, %v885_v54 }
  0x61   : > { %4612 = vmatprep.subr.mxu1 %v5031_v0  ;;  %4607 = vmatprep.mubr.msk.f32.mxu1 %vm5032_vm0, %v5031_v0 }
  0x62   : > { %1137 = vmatprep.subr.mxu0 %v1083_v57  ;;  %4613 = vmatpush3.msra.mxu1 %v1084_v58 }
  0x63   : > { %979 = vmatprep.mubr.f32.mxu0 %v5031_v0  ;;  %1138 = vmatpush1.msra.mxu0 %v1082_v60 }
  0x64   : > { %4608 = vmatmul.mubr.msk.f32.gmra.mxu1 %vm509_vm3, %v887_v59  ;;  %4614 = vmatprep.subr.mxu1 %v5031_v0 }
  0x65   : > { %3946 = vmatmul.mubr.msk.f32.gmra.mxu0 %vm509_vm3, %v887_v59  ;;  %1139 = vmatprep.subr.mxu0 %v1080_v61 }
  0x66   : > { %4615 = vmatpush3.msra.mxu1 %v1081_v62  ;;  %1140 = vmatpush1.msra.mxu0 %v1079_v2 }
  0x67   : > { %4616 = vmatprep.subr.mxu1 %v5031_v0  ;;  %1141 = vmatprep.subr.mxu0 %v1077_v3 }
  0x68   : > { %4617 = vmatpush3.msra.mxu1 %v1078_v4  ;;  %4618 = vmatprep.mubr.msk.f32.mxu1 %vm5032_vm0, %v5031_v0 }
  0x69   : > { %1142 = vmatpush1.msra.mxu0 %v1076_v5  ;;  %1175 = vmatprep.mubr.f32.mxu0 %v5031_v0 }
  0x6a   : > { %4619 = vmatmul.mubr.msk.f32.vlgmr.msra.gmra.mxu1 %vm509_vm3, %v1091_v6  ;;  %3953 = vmatmul.mubr.msk.f32.vlgmr.msra.gmra.mxu0 %vm509_vm3, %v1091_v6 }
  0x6b   : > { %4621 = vmatprep.mubr.msk.f32.mxu1 %vm5032_vm0, %v5031_v0  ;;  %1181 = vmatprep.mubr.f32.mxu0 %v5031_v0 }
  0x6c   : > { %4627 = vmatprep.subr.mxu1 %v5031_v0  ;;  %3960 = vmatprep.subr.msk.mxu0 %vm516_vm1, %v1294_v8 }
  0x6d   : > { %4628 = vmatpush3.msk.msra.mxu1 %vm516_vm1, %v1295_v9  ;;  %3961 = vmatpush1.msk.msra.mxu0 %vm516_vm1, %v1293_v11  ;;  %v1492_v11 = vlaneseq }
  0x6e   : > { %4622 = vmatmul.mubr.msk.f32.gmra.mxu1 %vm509_vm3, %v1093_v10  ;;  %3954 = vmatmul.mubr.msk.f32.gmra.mxu0 %vm509_vm3, %v1093_v10 }
  0x6f   : > { %4629 = vmatprep.subr.mxu1 %v5031_v0  ;;  %4624 = vmatprep.mubr.msk.f32.mxu1 %vm5032_vm0, %v5031_v0 }
  0x70   : > { %1344 = vmatprep.subr.mxu0 %v1291_v16  ;;  %4630 = vmatpush3.msra.mxu1 %v1292_v17 }
  0x71   : > { %1187 = vmatprep.mubr.f32.mxu0 %v5031_v0  ;;  %1345 = vmatpush1.msra.mxu0 %v1290_v19  ;;  %v5366_v19 = vshrl.u32 %v1492_v11, 7 }
  0x72   : > { %4625 = vmatmul.mubr.msk.f32.gmra.mxu1 %vm509_vm3, %v1095_v18  ;;  %4631 = vmatprep.subr.mxu1 %v5031_v0 }
  0x73   : > { %3955 = vmatmul.mubr.msk.f32.gmra.mxu0 %vm509_vm3, %v1095_v18  ;;  %1346 = vmatprep.subr.mxu0 %v1288_v21  ;;  %v1502_v23 = vsub.s32 2, %v5366_v19  ;;  %v1498_v30 = vsub.s32 1, %v5366_v19 }
  0x74   : > { %4632 = vmatpush3.msra.mxu1 %v1289_v22  ;;  %1347 = vmatpush1.msra.mxu0 %v1287_v25 }
  0x75   : > { %4633 = vmatprep.subr.mxu1 %v5031_v0  ;;  %1348 = vmatprep.subr.mxu0 %v1285_v26  ;;  %v1503_v13 = vrot.slane %v1490_v24, %v1502_v23 }
  0x76   : > { %4634 = vmatpush3.msra.mxu1 %v1286_v27  ;;  %4635 = vmatprep.mubr.msk.f32.mxu1 %vm5032_vm0, %v5031_v0 }
  0x77   : > { %1349 = vmatpush1.msra.mxu0 %v1284_v28  ;;  %1382 = vmatprep.mubr.f32.mxu0 %v5031_v0 }
  0x78   : > { %4636 = vmatmul.mubr.msk.f32.vlgmr.msra.gmra.mxu1 %vm509_vm3, %v1298_v12  ;;  %3962 = vmatmul.mubr.msk.f32.vlgmr.msra.gmra.mxu0 %vm509_vm3, %v1298_v12 }
  0x79   : > { %4638 = vmatprep.mubr.msk.f32.mxu1 %vm5032_vm0, %v5031_v0  ;;  %1388 = vmatprep.mubr.f32.mxu0 %v5031_v0 }
  0x7c   : > { %4639 = vmatmul.mubr.msk.f32.gmra.mxu1 %vm509_vm3, %v1300_v29  ;;  %3963 = vmatmul.mubr.msk.f32.gmra.mxu0 %vm509_vm3, %v1300_v29  ;;  %v1494_v29 = vsub.s32 0, %v5366_v19  ;;  %v4273_v19 = vld [vmem:[%s7316_s7 + $0x4] sm:$0xf] }
  0x7d   : > { %4641 = vmatprep.mubr.msk.f32.mxu1 %vm5032_vm0, %v5031_v0  ;;  %1394 = vmatprep.mubr.f32.mxu0 %v5031_v0 }
  0x80   : > { %4642 = vmatmul.mubr.msk.f32.gmra.mxu1 %vm509_vm3, %v1302_v14  ;;  %3964 = vmatmul.mubr.msk.f32.gmra.mxu0 %vm509_vm3, %v1302_v14 }
  0x81   : > { %1589 = vmatprep.mubr.f32.mxu0 %v5031_v0  ;;  %4650 = vmatprep.mubr.msk.f32.mxu1 %vm1518_vm6, %v5354_v20 }
 0x100   : > { %v675_v31 = vpop.f32.mrf.mxu1  ;;  %v5358_v32 = vpop.f32.mrf.mxu0 }
 0x102   : > { %v4569_v33 = vpop.f32.mrf.mxu1  ;;  %v5360_v34 = vpop.f32.mrf.mxu0 }
 0x104   : > { %v680_v35 = vpop.f32.mrf.mxu1  ;;  %v5362_v36 = vpop.f32.mrf.mxu0 }
 0x106   : > { %v4572_v37 = vpop.f32.mrf.mxu1  ;;  %v600_v38 = vpop.f32.mrf.mxu0 }
 0x108   : > { %v685_v39 = vpop.f32.mrf.mxu1 }
 0x109   : > { %v604_v40 = vpop.f32.mrf.mxu0 }
 0x10a   : > { %v4575_v41 = vpop.f32.mrf.mxu1 }
 0x10b   : > { %v606_v42 = vpop.f32.mrf.mxu0 }
 0x10e   : > { %v853_v43 = vpop.f32.mrf.mxu1  ;;  %v770_v44 = vpop.f32.mrf.mxu0 }
 0x10f   : > { %v854_v33 = vadd.f32 %v853_v43, %v675_v31 }
 0x110   : > { %v4586_v45 = vpop.f32.mrf.mxu1  ;;  %v772_v46 = vpop.f32.mrf.mxu0 }
 0x111   : > { %v773_v11 = vadd.f32 %v772_v46, %v5360_v34  ;;  %v1499_v46 = vrot.slane %v1490_v24, %v1498_v30 }
 0x112   : > { %v858_v47 = vpop.f32.mrf.mxu1  ;;  %v776_v48 = vpop.f32.mrf.mxu0 }
 0x113   : > { %v859_v27 = vadd.f32 %v858_v47, %v680_v35 }
 0x114   : > { %v4589_v49 = vpop.f32.mrf.mxu1  ;;  %v778_v50 = vpop.f32.mrf.mxu0 }
 0x116   : > { %v863_v51 = vpop.f32.mrf.mxu1 }
 0x117   : > { %v782_v52 = vpop.f32.mrf.mxu0  ;;  %v864_v28 = vadd.f32 %v863_v51, %v685_v39 }
 0x118   : > { %v4592_v53 = vpop.f32.mrf.mxu1  ;;  %v783_v37 = vadd.f32 %v782_v52, %v604_v40 }
 0x119   : > { %v784_v54 = vpop.f32.mrf.mxu0  ;;  %v771_v53 = vadd.f32 %v770_v44, %v5358_v32 }
 0x11c   : > { %v1052_v55 = vpop.f32.mrf.mxu1  ;;  %v969_v56 = vpop.f32.mrf.mxu0 }
 0x11d   : > { %v1068_v39 = vadd.f32 %v1052_v55, %v854_v33  ;;  %v1872_v33 = vld [vmem:[%s7313_s4 + $0xe0] sm:$0xff] }
 0x11e   : > { %v4603_v57 = vpop.f32.mrf.mxu1  ;;  %v971_v58 = vpop.f32.mrf.mxu0 }
 0x11f   : > { %v777_v57 = vadd.f32 %v776_v48, %v5362_v36  ;;  %v1066_v36 = vadd.f32 %v969_v56, %v771_v53  ;;  %v1495_v56 = vrot.slane %v1490_v24, %v1494_v29  ;;  %v1935_v53 = vld [vmem:[%s7313_s4 + $0x2d8] sm:$0xff] }
 0x120   : > { %v1057_v59 = vpop.f32.mrf.mxu1  ;;  %v975_v60 = vpop.f32.mrf.mxu0 }
 0x121   : > { %v1071_v41 = vadd.f32 %v1057_v59, %v859_v27  ;;  %v3974_v27 = vld [vmem:[%s7312_s3 + $0x18] sm:$0xf] }
 0x122   : > { %v4606_v61 = vpop.f32.mrf.mxu1  ;;  %v977_v62 = vpop.f32.mrf.mxu0 }
 0x123   : > { %v779_v61 = vadd.f32 %v778_v50, %v600_v38  ;;  %v1067_v38 = vadd.f32 %v971_v58, %v773_v11  ;;  %v1930_v11 = vld [vmem:[%s7313_s4 + $0x2b0] sm:$0xff] }
 0x124   : > { %v1062_v63 = vpop.f32.mrf.mxu1 }
 0x125   : > { %v981_v1 = vpop.f32.mrf.mxu0  ;;  %v1074_v45 = vadd.f32 %v1062_v63, %v864_v28  ;;  %v1070_v31 = vadd.f32 %v977_v62, %v779_v61  ;;  %v1939_v28 = vld [vmem:[%s7313_s4 + $0x2f8] sm:$0xff]  ;;  %v1934_v61 = vld [vmem:[%s7313_s4 + $0x2d0] sm:$0xff] }
 0x126   : > { %v4609_v2 = vpop.f32.mrf.mxu1  ;;  %v1072_v47 = vadd.f32 %v981_v1, %v783_v37  ;;  %v1937_v37 = vld [vmem:[%s7313_s4 + $0x2e8] sm:$0xff] }
 0x127   : > { %v983_v3 = vpop.f32.mrf.mxu0  ;;  %v785_v2 = vadd.f32 %v784_v54, %v606_v42 }
 0x129   : > { %v1073_v40 = vadd.f32 %v983_v3, %v785_v2  ;;  %v1868_v2 = vld [vmem:[%s7313_s4 + $0xc0] sm:$0xff] }
 0x12a   : > { %v1260_v4 = vpop.f32.mrf.mxu1  ;;  %v5364_v5 = vpop.f32.mrf.mxu0 }
 0x12b   : > { %v1276_v52 = vadd.f32 %v1260_v4, %v1068_v39  ;;  %v1274_v3 = vadd.f32 %v5364_v5, %v1066_v36  ;;  %v1517_v5 = vld [vmem:[%s7312_s3 + $0x8] sm:$0xf]  ;;  %v1867_v39 = vld [vmem:[%s7313_s4 + $0xb8] sm:$0xff] }
 0x12c   : > { %v4620_v6 = vpop.f32.mrf.mxu1  ;;  %v1179_v7 = vpop.f32.mrf.mxu0  ;;  %v1925_v36 = vld [vmem:[%s7313_s4 + $0x288] sm:$0xff] }
 0x12d   : > { %v1275_v34 = vadd.f32 %v1179_v7, %v1067_v38  ;;  %v1859_v38 = vld [vmem:[%s7313_s4 + $0x78] sm:$0xff] }
 0x12e   : > { %v1265_v8 = vpop.f32.mrf.mxu1  ;;  %v1183_v9 = vpop.f32.mrf.mxu0 }
 0x12f   : > { %v1279_v51 = vadd.f32 %v1265_v8, %v1071_v41  ;;  %v1871_v41 = vld [vmem:[%s7313_s4 + $0xd8] sm:$0xff] }
 0x130   : > { %v4623_v10 = vpop.f32.mrf.mxu1  ;;  %v1185_v15 = vpop.f32.mrf.mxu0 }
 0x131   : > { %v1278_v42 = vadd.f32 %v1185_v15, %v1070_v31  ;;  %v1929_v31 = vld [vmem:[%s7313_s4 + $0x2a8] sm:$0xff] }
 0x132   : > { %v1270_v16 = vpop.f32.mrf.mxu1 }
 0x133   : > { %v1189_v17 = vpop.f32.mrf.mxu0  ;;  %v1282_v6 = vadd.f32 %v1270_v16, %v1074_v45  ;;  %v1936_v45 = vld [vmem:[%s7313_s4 + $0x2e0] sm:$0xff] }
 0x134   : > { %v4626_v18 = vpop.f32.mrf.mxu1  ;;  %v1280_v59 = vadd.f32 %v1189_v17, %v1072_v47  ;;  %v1932_v47 = vld [vmem:[%s7313_s4 + $0x2c0] sm:$0xff] }
 0x135   : > { %v1191_v21 = vpop.f32.mrf.mxu0  ;;  %v1069_v18 = vadd.f32 %v975_v60, %v777_v57  ;;  %v1869_v57 = vld [vmem:[%s7313_s4 + $0xc8] sm:$0xff] }
 0x136   : > { %v1281_v48 = vadd.f32 %v1191_v21, %v1073_v40  ;;  %v1863_v40 = vld [vmem:[%s7313_s4 + $0x98] sm:$0xff] }
 0x137   : > { %v1277_v54 = vadd.f32 %v1183_v9, %v1069_v18  ;;  %v1864_v18 = vld [vmem:[%s7313_s4 + $0xa0] sm:$0xff] }
 0x138   : > { %v1467_v22 = vpop.f32.mrf.mxu1  ;;  %v1384_v25 = vpop.f32.mrf.mxu0 }
 0x139   : > { %v1483_v55 = vadd.f32 %v1467_v22, %v1276_v52  ;;  %v1481_v21 = vadd.f32 %v1384_v25, %v1274_v3  ;;  %v3973_v25 = vld [vmem:[%s7312_s3 + $0x10] sm:$0xff] }
 0x13a   : > { %v4637_v26 = vpop.f32.mrf.mxu1  ;;  %v1386_v12 = vpop.f32.mrf.mxu0  ;;  %v1862_v52 = vld [vmem:[%s7313_s4 + $0x90] sm:$0xff] }
 0x13b   : > { %v1482_v15 = vadd.f32 %v1386_v12, %v1275_v34  ;;  %v1509_v17 = vadd.f32 %v1503_v13, %v1483_v55  ;;  %v1507_v26 = vadd.f32 %v1495_v56, %v1481_v21  ;;  %v1874_v12 = vld [vmem:[%s7313_s4 + $0xf0] sm:$0xff]  ;;  %v1907_v21 = vld [vmem:[%s7313_s4 + $0x1f8] sm:$0xff] }
 0x13c   : > { %v1472_v14 = vpop.f32.mrf.mxu1  ;;  %v1390_v49 = vpop.f32.mrf.mxu0  ;;  %v1922_v55 = vld [vmem:[%s7313_s4 + $0x270] sm:$0xff] }
 0x13d   : > { %v1486_v63 = vadd.f32 %v1472_v14, %v1279_v51  ;;  %v1484_v4 = vadd.f32 %v1390_v49, %v1277_v54  ;;  %v1508_v24 = vadd.f32 %v1499_v46, %v1482_v15  ;;  %v1938_v14 = vld [vmem:[%s7313_s4 + $0x2f0] sm:$0xff]  ;;  %v1857_v54 = vld [vmem:[%s7313_s4 + $0x68] sm:$0xff] }
 0x13e   : > { %v4640_v35 = vpop.f32.mrf.mxu1  ;;  %v1392_v10 = vpop.f32.mrf.mxu0  ;;  %v1870_v49 = vld [vmem:[%s7313_s4 + $0xd0] sm:$0xff] }
 0x13f   : > { %v1485_v60 = vadd.f32 %v1392_v10, %v1278_v42  ;;  %v1512_v58 = vadd.f32 %v1503_v13, %v1486_v63  ;;  %v1510_v23 = vadd.f32 %v1495_v56, %v1484_v4  ;;  %v1933_v35 = vld [vmem:[%s7313_s4 + $0x2c8] sm:$0xff]  ;;  %v1866_v51 = vld [vmem:[%s7313_s4 + $0xb0] sm:$0xff]  ;;  %v1924_v42 = vld [vmem:[%s7313_s4 + $0x280] sm:$0xff] }
 0x140   : > { %v1477_v43 = vpop.f32.mrf.mxu1  ;;  %v1396_v44 = vpop.f32.mrf.mxu0  ;;  %v1865_v10 = vld [vmem:[%s7313_s4 + $0xa8] sm:$0xff]  ;;  %v1854_v34 = vld [vmem:[%s7313_s4 + $0x50] sm:$0xff]  ;;  %v1847_v4 = vld [vmem:[%s7313_s4 + $0x18] sm:$0xff] }
 0x141   : > { %v1489_v32 = vadd.f32 %v1477_v43, %v1282_v6  ;;  %v1487_v8 = vadd.f32 %v1396_v44, %v1280_v59  ;;  %v1511_v7 = vadd.f32 %v1499_v46, %v1485_v60  ;;  %v1931_v6 = vld [vmem:[%s7313_s4 + $0x2b8] sm:$0xff]  ;;  %v1928_v43 = vld [vmem:[%s7313_s4 + $0x2a0] sm:$0xff]  ;;  %v1861_v63 = vld [vmem:[%s7313_s4 + $0x88] sm:$0xff] }
 0x142   : > { %v4643_v50 = vpop.f32.mrf.mxu1  ;;  %v1398_v16 = vpop.f32.mrf.mxu0  ;;  %v1927_v59 = vld [vmem:[%s7313_s4 + $0x298] sm:$0xff]  ;;  %v1860_v44 = vld [vmem:[%s7313_s4 + $0x80] sm:$0xff]  ;;  %v1850_v3 = vld [vmem:[%s7313_s4 + $0x30] sm:$0xff] }
 0x143   : > { %v1515_v1 = vadd.f32 %v1503_v13, %v1489_v32  ;;  %v1488_v62 = vadd.f32 %v1398_v16, %v1281_v48  ;;  %v1513_v22 = vadd.f32 %v1495_v56, %v1487_v8  ;;  %v1873_v13 = vld [vmem:[%s7313_s4 + $0xe8] sm:$0xff]  ;;  %v1926_v32 = vld [vmem:[%s7313_s4 + $0x290] sm:$0xff]  ;;  %v1923_v50 = vld [vmem:[%s7313_s4 + $0x278] sm:$0xff] }
 0x144   : > { %v1858_v48 = vld [vmem:[%s7313_s4 + $0x70] sm:$0xff]  ;;  %v1921_v8 = vld [vmem:[%s7313_s4 + $0x268] sm:$0xff]  ;;  %v1855_v16 = vld [vmem:[%s7313_s4 + $0x58] sm:$0xff] }
 0x145   : > { %4644 = vmatprep.subr.mxu1 %v1515_v1  ;;  %v1514_v9 = vadd.f32 %v1499_v46, %v1488_v62  ;;  %v1853_v46 = vld [vmem:[%s7313_s4 + $0x48] sm:$0xff]  ;;  %v1852_v60 = vld [vmem:[%s7313_s4 + $0x40] sm:$0xff]  ;;  %v1851_v62 = vld [vmem:[%s7313_s4 + $0x38] sm:$0xff] }
 0x146   : > { %4645 = vmatpush3.msra.mxu1 %v1515_v1  ;;  %v1849_v56 = vld [vmem:[%s7313_s4 + $0x28] sm:$0xff]  ;;  %v1846_v15 = vld [vmem:[%s7313_s4 + $0x10] sm:$0xff] }
 0x147   : > { %4646 = vmatprep.subr.mxu1 %v1512_v58  ;;  %1551 = vmatprep.subr.mxu0 %v1514_v9 }
 0x148   : > { %4647 = vmatpush3.msra.mxu1 %v1512_v58  ;;  %1552 = vmatpush1.msra.mxu0 %v1513_v22 }
 0x149   : > { %4648 = vmatprep.subr.mxu1 %v1509_v17  ;;  %1553 = vmatprep.subr.mxu0 %v1511_v7 }
 0x14a   : > { %4649 = vmatpush3.msra.mxu1 %v1509_v17  ;;  %1554 = vmatpush1.msra.mxu0 %v1510_v23 }
 0x14b   : > { %1712 = vmatprep.subr.mxu1 %v1514_v9  ;;  %1555 = vmatprep.subr.mxu0 %v1508_v24  ;;  %v1845_v9 = vld [vmem:[%s7313_s4 + $0x8] sm:$0xff] }
 0x14c   : > { %4651 = vmatmul.mubr.msk.f32.vlgmr.msra.gmra.mxu1 %vm1518_vm6, %v1517_v5  ;;  %1556 = vmatpush1.msra.mxu0 %v1507_v26 }
 0x14d   : > { %1713 = vmatpush1.msra.mxu1 %v1513_v22  ;;  %3969 = vmatmul.mubr.msk.f32.vlgmr.msra.gmra.mxu0 %vm1518_vm6, %v5354_v20  ;;  %v1875_v20 = vld [vmem:[%s7313_s4 + $0xf8] sm:$0xff]  ;;  %v1906_v22 = vld [vmem:[%s7313_s4 + $0x1f0] sm:$0xff] }
 0x14e   : > { %1714 = vmatprep.subr.mxu1 %v1511_v7  ;;  %4653 = vmatprep.subr.mxu0 %v1515_v1  ;;  %v1905_v7 = vld [vmem:[%s7313_s4 + $0x1e8] sm:$0xff] }
 0x14f   : > { %1715 = vmatpush1.msra.mxu1 %v1510_v23  ;;  %4654 = vmatpush3.msra.mxu0 %v1515_v1  ;;  %v1856_v1 = vld [vmem:[%s7313_s4 + $0x60] sm:$0xff] }
 0x150   : > { %1716 = vmatprep.subr.mxu1 %v1508_v24  ;;  %1750 = vmatprep.mubr.f32.mxu1 %v5031_v0  ;;  %v1904_v23 = vld [vmem:[%s7313_s4 + $0x1e0] sm:$0xff]  ;;  %v1902_v24 = vld [vmem:[%s7313_s4 + $0x1d0] sm:$0xff] }
 0x151   : > { %1717 = vmatpush1.msra.mxu1 %v1507_v26  ;;  %4655 = vmatprep.subr.mxu0 %v1512_v58  ;;  %v1901_v26 = vld [vmem:[%s7313_s4 + $0x1c8] sm:$0xff] }
 0x152   : > { %1595 = vmatprep.mubr.f32.mxu0 %v5031_v0  ;;  %3975 = vmatmul.mubr.msk.f32.vlgmr.msra.gmra.mxu1 %vm1518_vm6, %v3973_v25 }
 0x153   : > { %4656 = vmatpush3.msra.mxu0 %v1512_v58  ;;  %1756 = vmatprep.mubr.f32.mxu1 %v5031_v0  ;;  %v1848_v58 = vld [vmem:[%s7313_s4 + $0x20] sm:$0xff] }
 0x154   : > { %3970 = vmatmul.mubr.msk.f32.gmra.mxu0 %vm1518_vm6, %v1517_v5  ;;  %4657 = vmatprep.subr.mxu0 %v1509_v17  ;;  %v1903_v5 = vld [vmem:[%s7313_s4 + $0x1d8] sm:$0xff] }
 0x155   : > { %4658 = vmatpush3.msra.mxu0 %v1509_v17  ;;  %4659 = vmatprep.mubr.msk.f32.mxu0 %vm1518_vm6, %v3973_v25  ;;  %v1844_v17 = vld [vmem:[%s7313_s4] sm:$0xff] }
 0x156   : > { %1940 = vmatprep.subr.mxu1 %v1875_v20  ;;  %3976 = vmatmul.mubr.msk.f32.gmra.mxu1 %vm1518_vm6, %v3974_v27  ;;  %v1900_v25 = vld [vmem:[%s7313_s4 + $0x1c0] sm:$0xff]  ;;  %v1899_v20 = vld [vmem:[%s7313_s4 + $0x1b8] sm:$0xff] }
 0x157   : > { %2017 = vmatprep.subr.mxu0 %v1939_v28  ;;  %1941 = vmatpush1.msra.mxu1 %v1874_v12  ;;  %v1897_v28 = vld [vmem:[%s7313_s4 + $0x1a8] sm:$0xff]  ;;  %v1896_v12 = vld [vmem:[%s7313_s4 + $0x1a0] sm:$0xff] }
 0x158   : > { %4660 = vmatmul.mubr.msk.f32.vlgmr.msra.gmra.mxu0 %vm1518_vm6, %v3974_v27  ;;  %1942 = vmatprep.subr.mxu1 %v1873_v13  ;;  %v1898_v27 = vld [vmem:[%s7313_s4 + $0x1b0] sm:$0xff]  ;;  %v1895_v13 = vld [vmem:[%s7313_s4 + $0x198] sm:$0xff] }
 0x159   : > { %2018 = vmatpush1.msra.mxu0 %v1938_v14  ;;  %1943 = vmatpush1.msra.mxu1 %v1872_v33  ;;  %v1894_v14 = vld [vmem:[%s7313_s4 + $0x190] sm:$0xff]  ;;  %v1893_v33 = vld [vmem:[%s7313_s4 + $0x188] sm:$0xff] }
 0x15a   : > { %2019 = vmatprep.subr.mxu0 %v1937_v37  ;;  %1944 = vmatprep.subr.mxu1 %v1871_v41  ;;  %v1892_v37 = vld [vmem:[%s7313_s4 + $0x180] sm:$0xff]  ;;  %v1891_v41 = vld [vmem:[%s7313_s4 + $0x178] sm:$0xff] }
 0x15b   : > { %2020 = vmatpush1.msra.mxu0 %v1936_v45  ;;  %1945 = vmatpush1.msra.mxu1 %v1870_v49  ;;  %v1890_v45 = vld [vmem:[%s7313_s4 + $0x170] sm:$0xff]  ;;  %v1889_v49 = vld [vmem:[%s7313_s4 + $0x168] sm:$0xff] }
 0x15c   : > { %2021 = vmatprep.subr.mxu0 %v1935_v53  ;;  %1946 = vmatprep.subr.mxu1 %v1869_v57  ;;  %v1888_v53 = vld [vmem:[%s7313_s4 + $0x160] sm:$0xff]  ;;  %v1887_v57 = vld [vmem:[%s7313_s4 + $0x158] sm:$0xff] }
 0x15d   : > { %2022 = vmatpush1.msra.mxu0 %v1934_v61  ;;  %1947 = vmatpush1.msra.mxu1 %v1868_v2  ;;  %v1886_v61 = vld [vmem:[%s7313_s4 + $0x150] sm:$0xff]  ;;  %v1885_v2 = vld [vmem:[%s7313_s4 + $0x148] sm:$0xff] }
 0x15e   : > { %2023 = vmatprep.subr.mxu0 %v1933_v35  ;;  %1948 = vmatprep.subr.mxu1 %v1867_v39  ;;  %v1884_v35 = vld [vmem:[%s7313_s4 + $0x140] sm:$0xff] }
 0x15f   : > { %2024 = vmatpush1.msra.mxu0 %v1932_v47  ;;  %1949 = vmatpush1.msra.mxu1 %v1866_v51  ;;  %v1920_v39 = vld [vmem:[%s7313_s4 + $0x260] sm:$0xff]  ;;  %v1883_v47 = vld [vmem:[%s7313_s4 + $0x138] sm:$0xff] }
 0x160   : > { %2025 = vmatprep.subr.mxu0 %v1931_v6  ;;  %1950 = vmatprep.subr.mxu1 %v1865_v10  ;;  %v1919_v51 = vld [vmem:[%s7313_s4 + $0x258] sm:$0xff]  ;;  %v1882_v6 = vld [vmem:[%s7313_s4 + $0x130] sm:$0xff] }
 0x161   : > { %2026 = vmatpush1.msra.mxu0 %v1930_v11  ;;  %1951 = vmatpush1.msra.mxu1 %v1864_v18  ;;  %v1918_v10 = vld [vmem:[%s7313_s4 + $0x250] sm:$0xff]  ;;  %v1881_v11 = vld [vmem:[%s7313_s4 + $0x128] sm:$0xff] }
 0x162   : > { %2027 = vmatprep.subr.mxu0 %v1929_v31  ;;  %1952 = vmatprep.subr.mxu1 %v1863_v40  ;;  %v1917_v18 = vld [vmem:[%s7313_s4 + $0x248] sm:$0xff]  ;;  %v1880_v31 = vld [vmem:[%s7313_s4 + $0x120] sm:$0xff] }
 0x163   : > { %2028 = vmatpush1.msra.mxu0 %v1928_v43  ;;  %1953 = vmatpush1.msra.mxu1 %v1862_v52  ;;  %v1916_v40 = vld [vmem:[%s7313_s4 + $0x240] sm:$0xff]  ;;  %v1879_v43 = vld [vmem:[%s7313_s4 + $0x118] sm:$0xff] }
 0x164   : > { %2029 = vmatprep.subr.mxu0 %v1927_v59  ;;  %1954 = vmatprep.subr.mxu1 %v1861_v63  ;;  %v1915_v52 = vld [vmem:[%s7313_s4 + $0x238] sm:$0xff]  ;;  %v1878_v59 = vld [vmem:[%s7313_s4 + $0x110] sm:$0xff] }
 0x165   : > { %2030 = vmatpush1.msra.mxu0 %v1926_v32  ;;  %1955 = vmatpush1.msra.mxu1 %v1860_v44  ;;  %v1914_v63 = vld [vmem:[%s7313_s4 + $0x230] sm:$0xff]  ;;  %v1877_v32 = vld [vmem:[%s7313_s4 + $0x108] sm:$0xff] }
 0x166   : > { %2031 = vmatprep.subr.mxu0 %v1925_v36  ;;  %1956 = vmatprep.subr.mxu1 %v1859_v38  ;;  %v1913_v44 = vld [vmem:[%s7313_s4 + $0x228] sm:$0xff]  ;;  %v1876_v36 = vld [vmem:[%s7313_s4 + $0x100] sm:$0xff] }
 0x167   : > { %2032 = vmatpush1.msra.mxu0 %v1924_v42  ;;  %1957 = vmatpush1.msra.mxu1 %v1858_v48  ;;  %v1912_v38 = vld [vmem:[%s7313_s4 + $0x220] sm:$0xff]  ;;  %v1911_v42 = vld [vmem:[%s7313_s4 + $0x218] sm:$0xff] }
 0x168   : > { %2033 = vmatprep.subr.mxu0 %v1923_v50  ;;  %1958 = vmatprep.subr.mxu1 %v1857_v54  ;;  %v4074_v48 = vld [vmem:[%s7313_s4 + $0x5f8] sm:$0xff]  ;;  %v1910_v50 = vld [vmem:[%s7313_s4 + $0x210] sm:$0xff]  ;;  %v1909_v54 = vld [vmem:[%s7313_s4 + $0x208] sm:$0xff] }
 0x169   : > { %2034 = vmatpush1.msra.mxu0 %v1922_v55  ;;  %1959 = vmatpush1.msra.mxu1 %v1856_v1  ;;  %v1908_v55 = vld [vmem:[%s7313_s4 + $0x200] sm:$0xff]  ;;  %v4010_v1 = vld [vmem:[%s7313_s4 + $0x3f8] sm:$0xff] }
 0x16a   : > { %2035 = vmatprep.subr.mxu0 %v1921_v8  ;;  %1960 = vmatprep.subr.mxu1 %v1855_v16 }
 0x16b   : > { %2081 = vmatprep.mubr.f32.mxu0 %v5031_v0  ;;  %1961 = vmatpush1.msra.mxu1 %v1854_v34 }
 0x16c   : > { %1962 = vmatprep.subr.mxu1 %v1853_v46  ;;  %2036 = vmatpush1.msra.mxu0 %v1920_v39  ;;  %v4062_v39 = vld [vmem:[%s7313_s4 + $0x598] sm:$0xff] }
 0x16d   : > { %1963 = vmatpush1.msra.mxu1 %v1852_v60  ;;  %2037 = vmatprep.subr.mxu0 %v1919_v51  ;;  %v4061_v51 = vld [vmem:[%s7313_s4 + $0x590] sm:$0xff] }
 0x16e   : > { %1964 = vmatprep.subr.mxu1 %v1851_v62  ;;  %2038 = vmatpush1.msra.mxu0 %v1918_v10  ;;  %v4060_v10 = vld [vmem:[%s7313_s4 + $0x588] sm:$0xff] }
 0x16f   : > { %1965 = vmatpush1.msra.mxu1 %v1850_v3  ;;  %2039 = vmatprep.subr.mxu0 %v1917_v18  ;;  %v4059_v18 = vld [vmem:[%s7313_s4 + $0x580] sm:$0xff] }
 0x170   : > { %1966 = vmatprep.subr.mxu1 %v1849_v56  ;;  %2040 = vmatpush1.msra.mxu0 %v1916_v40  ;;  %v4058_v40 = vld [vmem:[%s7313_s4 + $0x578] sm:$0xff] }
 0x171   : > { %1967 = vmatpush1.msra.mxu1 %v1848_v58  ;;  %2041 = vmatprep.subr.mxu0 %v1915_v52  ;;  %v4057_v52 = vld [vmem:[%s7313_s4 + $0x570] sm:$0xff] }
 0x172   : > { %1968 = vmatprep.subr.mxu1 %v1847_v4  ;;  %2042 = vmatpush1.msra.mxu0 %v1914_v63  ;;  %v4056_v63 = vld [vmem:[%s7313_s4 + $0x568] sm:$0xff] }
 0x173   : > { %1969 = vmatpush1.msra.mxu1 %v1846_v15  ;;  %2043 = vmatprep.subr.mxu0 %v1913_v44  ;;  %v4055_v44 = vld [vmem:[%s7313_s4 + $0x560] sm:$0xff] }
 0x174   : > { %1970 = vmatprep.subr.mxu1 %v1845_v9  ;;  %2044 = vmatpush1.msra.mxu0 %v1912_v38  ;;  %v4073_v9 = vld [vmem:[%s7313_s4 + $0x5f0] sm:$0xff]  ;;  %v4054_v38 = vld [vmem:[%s7313_s4 + $0x558] sm:$0xff] }
 0x175   : > { %1971 = vmatpush1.msra.mxu1 %v1844_v17  ;;  %2045 = vmatprep.subr.mxu0 %v1911_v42  ;;  %v3993_v42 = vld [vmem:[%s7313_s4 + $0x370] sm:$0xff] }
 0x176   : > { %1972 = vmatprep.subr.mxu1 %v1907_v21  ;;  %2046 = vmatpush1.msra.mxu0 %v1910_v50  ;;  %v4072_v21 = vld [vmem:[%s7313_s4 + $0x5e8] sm:$0xff] }
 0x177   : > { %1973 = vmatpush2.msra.mxu1 %v1906_v22  ;;  %2047 = vmatprep.subr.mxu0 %v1909_v54  ;;  %v3992_v50 = vld [vmem:[%s7313_s4 + $0x368] sm:$0xff] }
 0x178   : > { %1974 = vmatprep.subr.mxu1 %v1905_v7  ;;  %2048 = vmatpush1.msra.mxu0 %v1908_v55  ;;  %v4071_v7 = vld [vmem:[%s7313_s4 + $0x5e0] sm:$0xff]  ;;  %v4052_v54 = vld [vmem:[%s7313_s4 + $0x548] sm:$0xff] }
 0x179   : > { %1975 = vmatpush2.msra.mxu1 %v1904_v23  ;;  %2191 = vmatprep.subr.mxu0 %v4010_v1  ;;  %v3991_v55 = vld [vmem:[%s7313_s4 + $0x360] sm:$0xff] }
 0x17a   : > { %1976 = vmatprep.subr.mxu1 %v1903_v5  ;;  %v4051_v1 = vld [vmem:[%s7313_s4 + $0x540] sm:$0xff] }
 0x17b   : > { %1977 = vmatpush2.msra.mxu1 %v1902_v24  ;;  %v4070_v24 = vld [vmem:[%s7313_s4 + $0x5d8] sm:$0xff] }
 0x17c   : > { %1978 = vmatprep.subr.mxu1 %v1901_v26 }
 0x17d   : > { %1979 = vmatpush2.msra.mxu1 %v1900_v25 }
 0x17e   : > { %1980 = vmatprep.subr.mxu1 %v1899_v20  ;;  %v4069_v20 = vld [vmem:[%s7313_s4 + $0x5d0] sm:$0xff] }
 0x17f   : > { %1981 = vmatpush2.msra.mxu1 %v1898_v27  ;;  %v4009_v27 = vld [vmem:[%s7313_s4 + $0x3f0] sm:$0xff] }
 0x180   : > { %1982 = vmatprep.subr.mxu1 %v1897_v28  ;;  %v4068_v28 = vld [vmem:[%s7313_s4 + $0x5c8] sm:$0xff] }
 0x181   : > { %1983 = vmatpush2.msra.mxu1 %v1896_v12  ;;  %v4008_v12 = vld [vmem:[%s7313_s4 + $0x3e8] sm:$0xff] }
 0x182   : > { %1984 = vmatprep.subr.mxu1 %v1895_v13  ;;  %v4067_v13 = vld [vmem:[%s7313_s4 + $0x5c0] sm:$0xff] }
 0x183   : > { %1985 = vmatpush2.msra.mxu1 %v1894_v14  ;;  %v4007_v14 = vld [vmem:[%s7313_s4 + $0x3e0] sm:$0xff] }
 0x184   : > { %1986 = vmatprep.subr.mxu1 %v1893_v33  ;;  %v4006_v33 = vld [vmem:[%s7313_s4 + $0x3d8] sm:$0xff] }
 0x185   : > { %1987 = vmatpush2.msra.mxu1 %v1892_v37  ;;  %v4066_v37 = vld [vmem:[%s7313_s4 + $0x5b8] sm:$0xff] }
 0x186   : > { %1988 = vmatprep.subr.mxu1 %v1891_v41  ;;  %v4065_v41 = vld [vmem:[%s7313_s4 + $0x5b0] sm:$0xff] }
 0x187   : > { %1989 = vmatpush2.msra.mxu1 %v1890_v45 }
 0x188   : > { %1990 = vmatprep.subr.mxu1 %v1889_v49  ;;  %v4005_v49 = vld [vmem:[%s7313_s4 + $0x3d0] sm:$0xff] }
 0x189   : > { %1991 = vmatpush2.msra.mxu1 %v1888_v53  ;;  %v4004_v53 = vld [vmem:[%s7313_s4 + $0x3c8] sm:$0xff] }
 0x18a   : > { %1992 = vmatprep.subr.mxu1 %v1887_v57  ;;  %v4064_v57 = vld [vmem:[%s7313_s4 + $0x5a8] sm:$0xff] }
 0x18b   : > { %1993 = vmatpush2.msra.mxu1 %v1886_v61  ;;  %v4003_v61 = vld [vmem:[%s7313_s4 + $0x3c0] sm:$0xff] }
 0x18c   : > { %1994 = vmatprep.subr.mxu1 %v1885_v2  ;;  %v4063_v2 = vld [vmem:[%s7313_s4 + $0x5a0] sm:$0xff] }
 0x18d   : > { %1995 = vmatpush2.msra.mxu1 %v1884_v35  ;;  %v4002_v35 = vld [vmem:[%s7313_s4 + $0x3b8] sm:$0xff] }
 0x18e   : > { %1996 = vmatprep.subr.mxu1 %v1883_v47  ;;  %v4001_v47 = vld [vmem:[%s7313_s4 + $0x3b0] sm:$0xff] }
 0x18f   : > { %1997 = vmatpush2.msra.mxu1 %v1882_v6  ;;  %v4000_v6 = vld [vmem:[%s7313_s4 + $0x3a8] sm:$0xff] }
 0x190   : > { %1998 = vmatprep.subr.mxu1 %v1881_v11  ;;  %v3999_v11 = vld [vmem:[%s7313_s4 + $0x3a0] sm:$0xff] }
 0x191   : > { %1999 = vmatpush2.msra.mxu1 %v1880_v31  ;;  %v3998_v31 = vld [vmem:[%s7313_s4 + $0x398] sm:$0xff] }
 0x192   : > { %2000 = vmatprep.subr.mxu1 %v1879_v43  ;;  %v3997_v43 = vld [vmem:[%s7313_s4 + $0x390] sm:$0xff] }
 0x193   : > { %2001 = vmatpush2.msra.mxu1 %v1878_v59  ;;  %v3996_v59 = vld [vmem:[%s7313_s4 + $0x388] sm:$0xff] }
 0x194   : > { %2002 = vmatprep.subr.mxu1 %v1877_v32  ;;  %v3995_v32 = vld [vmem:[%s7313_s4 + $0x380] sm:$0xff] }
 0x195   : > { %2003 = vmatpush2.msra.mxu1 %v1876_v36  ;;  %v3994_v36 = vld [vmem:[%s7313_s4 + $0x378] sm:$0xff] }
 0x196   : > { %2268 = vmatprep.subr.mxu1 %v4074_v48  ;;  %v4053_v48 = vld [vmem:[%s7313_s4 + $0x550] sm:$0xff] }
 0x20c   : > { %v4652_v8 = vpop.f32.mrf.mxu1 }
 0x20d   : > { %v1591_v16 = vpop.f32.mrf.mxu0 }
 0x20e   : > { %v1668_v34 = vpop.f32.mrf.mxu1 }
 0x20f   : > { %v1593_v46 = vpop.f32.mrf.mxu0 }
 0x212   : > { %v1752_v60 = vpop.f32.mrf.mxu1 }
 0x213   : > { %v5697_v4 = vmax.f32 %v1591_v16, %v1752_v60  ;;  %v4050_v16 = vld [vmem:[%s7313_s4 + $0x538] sm:$0xff]  ;;  %v3988_v60 = vld [vmem:[%s7313_s4 + $0x348] sm:$0xff] }
 0x214   : > { %v1597_v62 = vpop.f32.mrf.mxu0  ;;  %v1754_v3 = vpop.f32.mrf.mxu1 }
 0x215   : > { %v1839_v56 = vmax.f32 %v1593_v46, %v1754_v3  ;;  %v4049_v46 = vld [vmem:[%s7313_s4 + $0x530] sm:$0xff]  ;;  %v3987_v3 = vld [vmem:[%s7313_s4 + $0x340] sm:$0xff] }
 0x216   : > { %v1599_v58 = vpop.f32.mrf.mxu0  ;;  %v1758_v15 = vpop.f32.mrf.mxu1 }
 0x217   : > { %2004 = vmatprep.mubr.f32.mxu1 %v1839_v56  ;;  %v5714_v26 = vmax.f32 %v1597_v62, %v1758_v15  ;;  %v4048_v62 = vld [vmem:[%s7313_s4 + $0x528] sm:$0xff]  ;;  %v4046_v15 = vld [vmem:[%s7313_s4 + $0x518] sm:$0xff] }
 0x218   : > { %v4661_v17 = vpop.f32.mrf.mxu0  ;;  %v1760_v22 = vpop.f32.mrf.mxu1  ;;  %2005 = vmatmul.mubr.f32.vlgmr.msra.gmra.mxu1 %v5697_v4 }
 0x219   : > { %v5709_v23 = vmax.f32 %v1599_v58, %v1760_v22  ;;  %2269 = vmatpush1.msra.mxu1 %v4073_v9  ;;  %v5748_v45 = vmax.f32 %v4652_v8, %v4661_v17  ;;  %v3990_v8 = vld [vmem:[%s7313_s4 + $0x358] sm:$0xff]  ;;  %v3985_v9 = vld [vmem:[%s7313_s4 + $0x330] sm:$0xff]  ;;  %v4044_v22 = vld [vmem:[%s7313_s4 + $0x508] sm:$0xff] }
 0x21a   : > { %v1829_v5 = vpop.f32.mrf.mxu0  ;;  %2270 = vmatprep.subr.mxu1 %v4072_v21  ;;  %v3986_v58 = vld [vmem:[%s7313_s4 + $0x338] sm:$0xff]  ;;  %v4045_v17 = vld [vmem:[%s7313_s4 + $0x510] sm:$0xff]  ;;  %v3984_v21 = vld [vmem:[%s7313_s4 + $0x328] sm:$0xff] }
 0x21b   : > { %v5716_v25 = vmax.f32 %v1668_v34, %v1829_v5  ;;  %2271 = vmatpush1.msra.mxu1 %v4071_v7  ;;  %2010 = vmatprep.mubr.f32.mxu1 %v5709_v23  ;;  %v3989_v34 = vld [vmem:[%s7313_s4 + $0x350] sm:$0xff]  ;;  %v3983_v7 = vld [vmem:[%s7313_s4 + $0x320] sm:$0xff] }
 0x21c   : > { %2272 = vmatprep.subr.mxu1 %v4070_v24  ;;  %2011 = vmatmul.mubr.f32.gmra.mxu1 %v5714_v26  ;;  %v4043_v5 = vld [vmem:[%s7313_s4 + $0x500] sm:$0xff]  ;;  %v3982_v24 = vld [vmem:[%s7313_s4 + $0x318] sm:$0xff] }
 0x21d   : > { %2082 = vmatmul.mubr.f32.vlgmr.msra.gmra.mxu0 %v5716_v25  ;;  %2273 = vmatpush1.msra.mxu1 %v4069_v20  ;;  %v3981_v20 = vld [vmem:[%s7313_s4 + $0x310] sm:$0xff] }
 0x21e   : > { %2192 = vmatpush1.msra.mxu0 %v4009_v27  ;;  %2274 = vmatprep.subr.mxu1 %v4068_v28  ;;  %v3980_v27 = vld [vmem:[%s7313_s4 + $0x308] sm:$0xff]  ;;  %v3979_v28 = vld [vmem:[%s7313_s4 + $0x300] sm:$0xff] }
 0x21f   : > { %2193 = vmatprep.subr.mxu0 %v4008_v12  ;;  %2275 = vmatpush1.msra.mxu1 %v4067_v13  ;;  %v4042_v12 = vld [vmem:[%s7313_s4 + $0x4f8] sm:$0xff]  ;;  %v4041_v13 = vld [vmem:[%s7313_s4 + $0x4f0] sm:$0xff] }
 0x220   : > { %2194 = vmatpush1.msra.mxu0 %v4007_v14  ;;  %2087 = vmatprep.mubr.f32.mxu0 %v5031_v0  ;;  %v4040_v14 = vld [vmem:[%s7313_s4 + $0x4e8] sm:$0xff] }
 0x221   : > { %2195 = vmatprep.subr.mxu0 %v4006_v33  ;;  %2276 = vmatprep.subr.mxu1 %v4066_v37  ;;  %v4038_v33 = vld [vmem:[%s7313_s4 + $0x4d8] sm:$0xff]  ;;  %v4037_v37 = vld [vmem:[%s7313_s4 + $0x4d0] sm:$0xff] }
 0x222   : > { %2088 = vmatmul.mubr.f32.gmra.mxu0 %v5748_v45  ;;  %2277 = vmatpush1.msra.mxu1 %v4065_v41  ;;  %v4036_v41 = vld [vmem:[%s7313_s4 + $0x4c8] sm:$0xff] }
 0x223   : > { %2196 = vmatpush1.msra.mxu0 %v4005_v49  ;;  %2255 = vmatprep.mubr.f32.mxu0 %v1839_v56  ;;  %v4047_v56 = vld [vmem:[%s7313_s4 + $0x520] sm:$0xff]  ;;  %v4034_v49 = vld [vmem:[%s7313_s4 + $0x4b8] sm:$0xff] }
 0x224   : > { %2197 = vmatprep.subr.mxu0 %v4004_v53  ;;  %2278 = vmatprep.subr.mxu1 %v4064_v57  ;;  %v4033_v53 = vld [vmem:[%s7313_s4 + $0x4b0] sm:$0xff]  ;;  %v4032_v57 = vld [vmem:[%s7313_s4 + $0x4a8] sm:$0xff] }
 0x225   : > { %2198 = vmatpush1.msra.mxu0 %v4003_v61  ;;  %2279 = vmatpush1.msra.mxu1 %v4063_v2  ;;  %v4031_v61 = vld [vmem:[%s7313_s4 + $0x4a0] sm:$0xff]  ;;  %v4030_v2 = vld [vmem:[%s7313_s4 + $0x498] sm:$0xff] }
 0x226   : > { %2199 = vmatprep.subr.mxu0 %v4002_v35  ;;  %2280 = vmatprep.subr.mxu1 %v4062_v39  ;;  %v4029_v35 = vld [vmem:[%s7313_s4 + $0x490] sm:$0xff]  ;;  %v4028_v39 = vld [vmem:[%s7313_s4 + $0x488] sm:$0xff] }
 0x227   : > { %2200 = vmatpush1.msra.mxu0 %v4001_v47  ;;  %2281 = vmatpush1.msra.mxu1 %v4061_v51  ;;  %v4027_v47 = vld [vmem:[%s7313_s4 + $0x480] sm:$0xff]  ;;  %v4026_v51 = vld [vmem:[%s7313_s4 + $0x478] sm:$0xff] }
 0x228   : > { %2201 = vmatprep.subr.mxu0 %v4000_v6  ;;  %2282 = vmatprep.subr.mxu1 %v4060_v10  ;;  %v4025_v6 = vld [vmem:[%s7313_s4 + $0x470] sm:$0xff]  ;;  %v4024_v10 = vld [vmem:[%s7313_s4 + $0x468] sm:$0xff] }
 0x229   : > { %2202 = vmatpush1.msra.mxu0 %v3999_v11  ;;  %2283 = vmatpush1.msra.mxu1 %v4059_v18  ;;  %v4023_v11 = vld [vmem:[%s7313_s4 + $0x460] sm:$0xff]  ;;  %v4022_v18 = vld [vmem:[%s7313_s4 + $0x458] sm:$0xff] }
 0x22a   : > { %2203 = vmatprep.subr.mxu0 %v3998_v31  ;;  %2284 = vmatprep.subr.mxu1 %v4058_v40  ;;  %v4021_v31 = vld [vmem:[%s7313_s4 + $0x450] sm:$0xff]  ;;  %v4020_v40 = vld [vmem:[%s7313_s4 + $0x448] sm:$0xff] }
 0x22b   : > { %2204 = vmatpush1.msra.mxu0 %v3997_v43  ;;  %2285 = vmatpush1.msra.mxu1 %v4057_v52  ;;  %v4019_v43 = vld [vmem:[%s7313_s4 + $0x440] sm:$0xff]  ;;  %v4018_v52 = vld [vmem:[%s7313_s4 + $0x438] sm:$0xff] }
 0x22c   : > { %2205 = vmatprep.subr.mxu0 %v3996_v59  ;;  %2286 = vmatprep.subr.mxu1 %v4056_v63  ;;  %v4017_v59 = vld [vmem:[%s7313_s4 + $0x430] sm:$0xff]  ;;  %v4016_v63 = vld [vmem:[%s7313_s4 + $0x428] sm:$0xff] }
 0x22d   : > { %2206 = vmatpush1.msra.mxu0 %v3995_v32  ;;  %2287 = vmatpush1.msra.mxu1 %v4055_v44  ;;  %v4015_v32 = vld [vmem:[%s7313_s4 + $0x420] sm:$0xff]  ;;  %v4014_v44 = vld [vmem:[%s7313_s4 + $0x418] sm:$0xff] }
 0x22e   : > { %2207 = vmatprep.subr.mxu0 %v3994_v36  ;;  %2288 = vmatprep.subr.mxu1 %v4054_v38  ;;  %v4013_v36 = vld [vmem:[%s7313_s4 + $0x410] sm:$0xff]  ;;  %v4012_v38 = vld [vmem:[%s7313_s4 + $0x408] sm:$0xff] }
 0x22f   : > { %2208 = vmatpush1.msra.mxu0 %v3993_v42  ;;  %2289 = vmatpush1.msra.mxu1 %v4053_v48  ;;  %v4011_v42 = vld [vmem:[%s7313_s4 + $0x400] sm:$0xff]  ;;  %v2384_v48 = vld [vmem:[%s7314_s5 + $0xf8] sm:$0xff] }
 0x230   : > { %2209 = vmatprep.subr.mxu0 %v3992_v50  ;;  %2290 = vmatprep.subr.mxu1 %v4052_v54  ;;  %v2383_v50 = vld [vmem:[%s7314_s5 + $0xf0] sm:$0xff]  ;;  %v2382_v54 = vld [vmem:[%s7314_s5 + $0xe8] sm:$0xff] }
 0x231   : > { %2210 = vmatpush1.msra.mxu0 %v3991_v55  ;;  %2291 = vmatpush1.msra.mxu1 %v4051_v1  ;;  %v2378_v55 = vld [vmem:[%s7314_s5 + $0xc8] sm:$0xff]  ;;  %v4106_v1 = vld [vmem:[%s7314_s5 + $0x278] sm:$0xff] }
 0x232   : > { %2211 = vmatprep.subr.mxu0 %v3990_v8  ;;  %2292 = vmatprep.subr.mxu1 %v4050_v16  ;;  %v2377_v8 = vld [vmem:[%s7314_s5 + $0xc0] sm:$0xff]  ;;  %v4105_v16 = vld [vmem:[%s7314_s5 + $0x270] sm:$0xff] }
 0x233   : > { %2212 = vmatpush1.msra.mxu0 %v3989_v34  ;;  %2293 = vmatpush1.msra.mxu1 %v4049_v46  ;;  %v2376_v34 = vld [vmem:[%s7314_s5 + $0xb8] sm:$0xff]  ;;  %v4104_v46 = vld [vmem:[%s7314_s5 + $0x268] sm:$0xff] }
 0x234   : > { %2213 = vmatprep.subr.mxu0 %v3988_v60  ;;  %2294 = vmatprep.subr.mxu1 %v4048_v62  ;;  %v2375_v60 = vld [vmem:[%s7314_s5 + $0xb0] sm:$0xff]  ;;  %v4103_v62 = vld [vmem:[%s7314_s5 + $0x260] sm:$0xff] }
 0x235   : > { %2214 = vmatpush1.msra.mxu0 %v3987_v3  ;;  %2295 = vmatpush1.msra.mxu1 %v4047_v56  ;;  %v2374_v3 = vld [vmem:[%s7314_s5 + $0xa8] sm:$0xff]  ;;  %v4102_v56 = vld [vmem:[%s7314_s5 + $0x258] sm:$0xff] }
 0x236   : > { %2215 = vmatprep.subr.mxu0 %v3986_v58  ;;  %2296 = vmatprep.subr.mxu1 %v4046_v15  ;;  %v2373_v58 = vld [vmem:[%s7314_s5 + $0xa0] sm:$0xff]  ;;  %v4101_v15 = vld [vmem:[%s7314_s5 + $0x250] sm:$0xff] }
 0x237   : > { %2216 = vmatpush1.msra.mxu0 %v3985_v9  ;;  %2297 = vmatpush1.msra.mxu1 %v4045_v17  ;;  %v2372_v9 = vld [vmem:[%s7314_s5 + $0x98] sm:$0xff]  ;;  %v4100_v17 = vld [vmem:[%s7314_s5 + $0x248] sm:$0xff] }
 0x238   : > { %2217 = vmatprep.subr.mxu0 %v3984_v21  ;;  %2298 = vmatprep.subr.mxu1 %v4044_v22  ;;  %v2371_v21 = vld [vmem:[%s7314_s5 + $0x90] sm:$0xff]  ;;  %v4099_v22 = vld [vmem:[%s7314_s5 + $0x240] sm:$0xff] }
 0x239   : > { %2218 = vmatpush1.msra.mxu0 %v3983_v7  ;;  %2299 = vmatpush1.msra.mxu1 %v4043_v5  ;;  %v2370_v7 = vld [vmem:[%s7314_s5 + $0x88] sm:$0xff]  ;;  %v4098_v5 = vld [vmem:[%s7314_s5 + $0x238] sm:$0xff] }
 0x23a   : > { %2332 = vmatprep.mubr.f32.mxu1 %v5031_v0  ;;  %2219 = vmatprep.subr.mxu0 %v3982_v24  ;;  %v2369_v24 = vld [vmem:[%s7314_s5 + $0x80] sm:$0xff] }
 0x23b   : > { %2333 = vmatmul.mubr.f32.vlgmr.msra.gmra.mxu1 %v5716_v25  ;;  %2220 = vmatpush1.msra.mxu0 %v3981_v20  ;;  %v4039_v25 = vld [vmem:[%s7313_s4 + $0x4e0] sm:$0xff]  ;;  %v4097_v20 = vld [vmem:[%s7314_s5 + $0x230] sm:$0xff] }
 0x23c   : > { %2221 = vmatprep.subr.mxu0 %v3980_v27  ;;  %2338 = vmatprep.mubr.f32.mxu1 %v5031_v0  ;;  %v2368_v27 = vld [vmem:[%s7314_s5 + $0x78] sm:$0xff] }
 0x23d   : > { %2222 = vmatpush1.msra.mxu0 %v3979_v28  ;;  %2464 = vmatprep.subr.mxu1 %v4106_v1  ;;  %v4096_v28 = vld [vmem:[%s7314_s5 + $0x228] sm:$0xff] }
 0x23e   : > { %2223 = vmatprep.subr.mxu0 %v4042_v12  ;;  %2465 = vmatpush1.msra.mxu1 %v4105_v16  ;;  %v2367_v12 = vld [vmem:[%s7314_s5 + $0x70] sm:$0xff]  ;;  %v4076_v1 = vld [vmem:[%s7314_s5 + $0x188] sm:$0xff]  ;;  %v4075_v16 = vld [vmem:[%s7314_s5 + $0x180] sm:$0xff] }
 0x23f   : > { %2339 = vmatmul.mubr.f32.gmra.mxu1 %v5748_v45  ;;  %2224 = vmatpush2.msra.mxu0 %v4041_v13  ;;  %v4035_v45 = vld [vmem:[%s7313_s4 + $0x4c0] sm:$0xff] }
 0x240   : > { %2225 = vmatprep.subr.mxu0 %v4040_v14  ;;  %2466 = vmatprep.subr.mxu1 %v4104_v46  ;;  %v4095_v13 = vld [vmem:[%s7314_s5 + $0x220] sm:$0xff]  ;;  %v2366_v14 = vld [vmem:[%s7314_s5 + $0x68] sm:$0xff]  ;;  %v4122_v46 = vld [vmem:[%s7314_s5 + $0x2f8] sm:$0xff] }
 0x241   : > { %2226 = vmatpush2.msra.mxu0 %v4039_v25  ;;  %2467 = vmatpush1.msra.mxu1 %v4103_v62  ;;  %v4094_v25 = vld [vmem:[%s7314_s5 + $0x218] sm:$0xff]  ;;  %v4121_v62 = vld [vmem:[%s7314_s5 + $0x2f0] sm:$0xff] }
 0x242   : > { %2227 = vmatprep.subr.mxu0 %v4038_v33  ;;  %2468 = vmatprep.subr.mxu1 %v4102_v56  ;;  %v2365_v33 = vld [vmem:[%s7314_s5 + $0x60] sm:$0xff]  ;;  %v4120_v56 = vld [vmem:[%s7314_s5 + $0x2e8] sm:$0xff] }
 0x243   : > { %2228 = vmatpush2.msra.mxu0 %v4037_v37  ;;  %2469 = vmatpush1.msra.mxu1 %v4101_v15  ;;  %v4093_v37 = vld [vmem:[%s7314_s5 + $0x210] sm:$0xff]  ;;  %v4119_v15 = vld [vmem:[%s7314_s5 + $0x2e0] sm:$0xff] }
 0x244   : > { %2229 = vmatprep.subr.mxu0 %v4036_v41  ;;  %2470 = vmatprep.subr.mxu1 %v4100_v17  ;;  %v2364_v41 = vld [vmem:[%s7314_s5 + $0x58] sm:$0xff] }
 0x245   : > { %2230 = vmatpush2.msra.mxu0 %v4035_v45  ;;  %2471 = vmatpush1.msra.mxu1 %v4099_v22  ;;  %v4092_v45 = vld [vmem:[%s7314_s5 + $0x208] sm:$0xff]  ;;  %v4118_v17 = vld [vmem:[%s7314_s5 + $0x2d8] sm:$0xff]  ;;  %v4117_v22 = vld [vmem:[%s7314_s5 + $0x2d0] sm:$0xff] }
 0x246   : > { %2231 = vmatprep.subr.mxu0 %v4034_v49  ;;  %2472 = vmatprep.subr.mxu1 %v4098_v5  ;;  %v2363_v49 = vld [vmem:[%s7314_s5 + $0x50] sm:$0xff]  ;;  %v4116_v5 = vld [vmem:[%s7314_s5 + $0x2c8] sm:$0xff] }
 0x247   : > { %2232 = vmatpush2.msra.mxu0 %v4033_v53  ;;  %2473 = vmatpush1.msra.mxu1 %v4097_v20  ;;  %v4091_v53 = vld [vmem:[%s7314_s5 + $0x200] sm:$0xff] }
 0x248   : > { %2233 = vmatprep.subr.mxu0 %v4032_v57  ;;  %2474 = vmatprep.subr.mxu1 %v4096_v28  ;;  %v2362_v57 = vld [vmem:[%s7314_s5 + $0x48] sm:$0xff]  ;;  %v4115_v20 = vld [vmem:[%s7314_s5 + $0x2c0] sm:$0xff]  ;;  %v4114_v28 = vld [vmem:[%s7314_s5 + $0x2b8] sm:$0xff] }
 0x249   : > { %2234 = vmatpush2.msra.mxu0 %v4031_v61  ;;  %2475 = vmatpush1.msra.mxu1 %v4095_v13  ;;  %v4090_v61 = vld [vmem:[%s7314_s5 + $0x1f8] sm:$0xff]  ;;  %v4113_v13 = vld [vmem:[%s7314_s5 + $0x2b0] sm:$0xff] }
 0x24a   : > { %2235 = vmatprep.subr.mxu0 %v4030_v2  ;;  %2476 = vmatprep.subr.mxu1 %v4094_v25  ;;  %v2361_v2 = vld [vmem:[%s7314_s5 + $0x40] sm:$0xff]  ;;  %v4112_v25 = vld [vmem:[%s7314_s5 + $0x2a8] sm:$0xff] }
 0x24b   : > { %2236 = vmatpush2.msra.mxu0 %v4029_v35  ;;  %2477 = vmatpush1.msra.mxu1 %v4093_v37  ;;  %v4089_v35 = vld [vmem:[%s7314_s5 + $0x1f0] sm:$0xff]  ;;  %v4110_v37 = vld [vmem:[%s7314_s5 + $0x298] sm:$0xff] }
 0x24c   : > { %2237 = vmatprep.subr.mxu0 %v4028_v39  ;;  %2478 = vmatprep.subr.mxu1 %v4092_v45  ;;  %v2360_v39 = vld [vmem:[%s7314_s5 + $0x38] sm:$0xff]  ;;  %v4108_v45 = vld [vmem:[%s7314_s5 + $0x288] sm:$0xff] }
 0x24d   : > { %2238 = vmatpush2.msra.mxu0 %v4027_v47  ;;  %2479 = vmatpush1.msra.mxu1 %v4091_v53  ;;  %v4088_v47 = vld [vmem:[%s7314_s5 + $0x1e8] sm:$0xff]  ;;  %v4156_v53 = vld [vmem:[%s7314_s5 + $0x3f8] sm:$0xff] }
 0x24e   : > { %2239 = vmatprep.subr.mxu0 %v4026_v51  ;;  %v2359_v51 = vld [vmem:[%s7314_s5 + $0x30] sm:$0xff]  ;;  %2480 = vmatprep.subr.mxu1 %v4090_v61 }
 0x24f   : > { %2240 = vmatpush2.msra.mxu0 %v4025_v6  ;;  %v4087_v6 = vld [vmem:[%s7314_s5 + $0x1e0] sm:$0xff]  ;;  %2481 = vmatpush1.msra.mxu1 %v4089_v35 }
 0x250   : > { %2241 = vmatprep.subr.mxu0 %v4024_v10  ;;  %v2358_v10 = vld [vmem:[%s7314_s5 + $0x28] sm:$0xff]  ;;  %2482 = vmatprep.subr.mxu1 %v4088_v47 }
 0x251   : > { %2242 = vmatpush2.msra.mxu0 %v4023_v11  ;;  %v4086_v11 = vld [vmem:[%s7314_s5 + $0x1d8] sm:$0xff]  ;;  %2483 = vmatpush1.msra.mxu1 %v4087_v6 }
 0x252   : > { %2243 = vmatprep.subr.mxu0 %v4022_v18  ;;  %v2357_v18 = vld [vmem:[%s7314_s5 + $0x20] sm:$0xff]  ;;  %2484 = vmatprep.subr.mxu1 %v4086_v11 }
 0x253   : > { %2244 = vmatpush2.msra.mxu0 %v4021_v31  ;;  %v4085_v31 = vld [vmem:[%s7314_s5 + $0x1d0] sm:$0xff] }
 0x254   : > { %2245 = vmatprep.subr.mxu0 %v4020_v40  ;;  %v2356_v40 = vld [vmem:[%s7314_s5 + $0x18] sm:$0xff]  ;;  %2485 = vmatpush1.msra.mxu1 %v4085_v31 }
 0x255   : > { %2246 = vmatpush2.msra.mxu0 %v4019_v43  ;;  %v4084_v43 = vld [vmem:[%s7314_s5 + $0x1c8] sm:$0xff] }
 0x256   : > { %2247 = vmatprep.subr.mxu0 %v4018_v52  ;;  %v2355_v52 = vld [vmem:[%s7314_s5 + $0x10] sm:$0xff]  ;;  %2486 = vmatprep.subr.mxu1 %v4084_v43 }
 0x257   : > { %2248 = vmatpush2.msra.mxu0 %v4017_v59  ;;  %v4083_v59 = vld [vmem:[%s7314_s5 + $0x1c0] sm:$0xff] }
 0x258   : > { %2249 = vmatprep.subr.mxu0 %v4016_v63  ;;  %v2354_v63 = vld [vmem:[%s7314_s5 + $0x8] sm:$0xff]  ;;  %2487 = vmatpush1.msra.mxu1 %v4083_v59 }
 0x259   : > { %2250 = vmatpush2.msra.mxu0 %v4015_v32  ;;  %v4082_v32 = vld [vmem:[%s7314_s5 + $0x1b8] sm:$0xff] }
 0x25a   : > { %2251 = vmatprep.subr.mxu0 %v4014_v44  ;;  %v2353_v44 = vld [vmem:[%s7314_s5] sm:$0xff]  ;;  %2488 = vmatprep.subr.mxu1 %v4082_v32 }
 0x25b   : > { %2252 = vmatpush2.msra.mxu0 %v4013_v36  ;;  %v4081_v36 = vld [vmem:[%s7314_s5 + $0x1b0] sm:$0xff] }
 0x25c   : > { %2253 = vmatprep.subr.mxu0 %v4012_v38  ;;  %v2400_v38 = vld [vmem:[%s7314_s5 + $0x178] sm:$0xff]  ;;  %2489 = vmatpush1.msra.mxu1 %v4081_v36 }
 0x25d   : > { %2254 = vmatpush2.msra.mxu0 %v4011_v42  ;;  %v4080_v42 = vld [vmem:[%s7314_s5 + $0x1a8] sm:$0xff] }
 0x25e   : > { %2256 = vmatmul.mubr.f32.vlgmr.msra.gmra.mxu0 %v5697_v4  ;;  %2537 = vmatprep.subr.mxu0 %v2384_v48  ;;  %v2381_v4 = vld [vmem:[%s7314_s5 + $0xe0] sm:$0xff]  ;;  %v2399_v48 = vld [vmem:[%s7314_s5 + $0x170] sm:$0xff] }
 0x25f   : > { %2261 = vmatprep.mubr.f32.mxu0 %v5709_v23  ;;  %2538 = vmatpush1.msra.mxu0 %v2383_v50  ;;  %v2380_v23 = vld [vmem:[%s7314_s5 + $0xd8] sm:$0xff]  ;;  %v4079_v50 = vld [vmem:[%s7314_s5 + $0x1a0] sm:$0xff] }
 0x260   : > { %2539 = vmatprep.subr.mxu0 %v2382_v54  ;;  %v2398_v54 = vld [vmem:[%s7314_s5 + $0x168] sm:$0xff]  ;;  %2490 = vmatprep.subr.mxu1 %v4080_v42 }
 0x261   : > { %2540 = vmatpush1.msra.mxu0 %v2381_v4  ;;  %v4078_v4 = vld [vmem:[%s7314_s5 + $0x198] sm:$0xff]  ;;  %2491 = vmatpush1.msra.mxu1 %v4079_v50 }
 0x262   : > { %2262 = vmatmul.mubr.f32.gmra.mxu0 %v5714_v26  ;;  %2541 = vmatprep.subr.mxu0 %v2380_v23  ;;  %v2379_v26 = vld [vmem:[%s7314_s5 + $0xd0] sm:$0xff]  ;;  %v2397_v23 = vld [vmem:[%s7314_s5 + $0x160] sm:$0xff] }
 0x263   : > { %2542 = vmatpush1.msra.mxu0 %v2379_v26  ;;  %v4077_v26 = vld [vmem:[%s7314_s5 + $0x190] sm:$0xff]  ;;  %2492 = vmatprep.subr.mxu1 %v4078_v4 }
 0x264   : > { %2543 = vmatprep.subr.mxu0 %v2378_v55  ;;  %v2396_v55 = vld [vmem:[%s7314_s5 + $0x158] sm:$0xff]  ;;  %2493 = vmatpush1.msra.mxu1 %v4077_v26 }
 0x265   : > { %2544 = vmatpush1.msra.mxu0 %v2377_v8  ;;  %v2395_v8 = vld [vmem:[%s7314_s5 + $0x150] sm:$0xff]  ;;  %2494 = vmatprep.subr.mxu1 %v4076_v1 }
 0x266   : > { %2545 = vmatprep.subr.mxu0 %v2376_v34  ;;  %v2394_v34 = vld [vmem:[%s7314_s5 + $0x148] sm:$0xff]  ;;  %2495 = vmatpush1.msra.mxu1 %v4075_v16  ;;  %v4204_v1 = vld [vmem:[%s7314_s5 + $0x570] sm:$0xff] }
 0x267   : > { %2546 = vmatpush1.msra.mxu0 %v2375_v60  ;;  %v2393_v60 = vld [vmem:[%s7314_s5 + $0x140] sm:$0xff]  ;;  %2512 = vmatprep.subr.mxu1 %v4122_v46 }
 0x268   : > { %2547 = vmatprep.subr.mxu0 %v2374_v3  ;;  %v2392_v3 = vld [vmem:[%s7314_s5 + $0x138] sm:$0xff]  ;;  %2513 = vmatpush2.msra.mxu1 %v4121_v62  ;;  %v4202_v46 = vld [vmem:[%s7314_s5 + $0x560] sm:$0xff] }
 0x269   : > { %2548 = vmatpush1.msra.mxu0 %v2373_v58  ;;  %v2391_v58 = vld [vmem:[%s7314_s5 + $0x130] sm:$0xff]  ;;  %2514 = vmatprep.subr.mxu1 %v4120_v56  ;;  %v4201_v62 = vld [vmem:[%s7314_s5 + $0x558] sm:$0xff] }
 0x26a   : > { %2549 = vmatprep.subr.mxu0 %v2372_v9  ;;  %v2390_v9 = vld [vmem:[%s7314_s5 + $0x128] sm:$0xff]  ;;  %2515 = vmatpush2.msra.mxu1 %v4119_v15 }
 0x26b   : > { %2550 = vmatpush1.msra.mxu0 %v2371_v21  ;;  %v2389_v21 = vld [vmem:[%s7314_s5 + $0x120] sm:$0xff]  ;;  %2516 = vmatprep.subr.mxu1 %v4118_v17 }
 0x26c   : > { %2551 = vmatprep.subr.mxu0 %v2370_v7  ;;  %v2388_v7 = vld [vmem:[%s7314_s5 + $0x118] sm:$0xff]  ;;  %2517 = vmatpush2.msra.mxu1 %v4117_v22 }
 0x26d   : > { %2552 = vmatpush1.msra.mxu0 %v2369_v24  ;;  %v2387_v24 = vld [vmem:[%s7314_s5 + $0x110] sm:$0xff]  ;;  %2518 = vmatprep.subr.mxu1 %v4116_v5  ;;  %v4198_v5 = vld [vmem:[%s7314_s5 + $0x540] sm:$0xff] }
 0x26e   : > { %2553 = vmatprep.subr.mxu0 %v2368_v27  ;;  %v2386_v27 = vld [vmem:[%s7314_s5 + $0x108] sm:$0xff]  ;;  %2519 = vmatpush2.msra.mxu1 %v4115_v20 }
 0x26f   : > { %2554 = vmatpush1.msra.mxu0 %v2367_v12  ;;  %v2385_v12 = vld [vmem:[%s7314_s5 + $0x100] sm:$0xff]  ;;  %2520 = vmatprep.subr.mxu1 %v4114_v28 }
 0x270   : > { %2555 = vmatprep.subr.mxu0 %v2366_v14  ;;  %v4205_v14 = vld [vmem:[%s7314_s5 + $0x578] sm:$0xff]  ;;  %2521 = vmatpush2.msra.mxu1 %v4113_v13 }
 0x271   : > { %2556 = vmatpush1.msra.mxu0 %v2365_v33  ;;  %2522 = vmatprep.subr.mxu1 %v4112_v25  ;;  %v4111_v33 = vld [vmem:[%s7314_s5 + $0x2a0] sm:$0xff]  ;;  %v4197_v13 = vld [vmem:[%s7314_s5 + $0x538] sm:$0xff] }
 0x272   : > { %2557 = vmatprep.subr.mxu0 %v2364_v41  ;;  %2523 = vmatpush2.msra.mxu1 %v4111_v33  ;;  %v4109_v41 = vld [vmem:[%s7314_s5 + $0x290] sm:$0xff] }
 0x273   : > { %2558 = vmatpush1.msra.mxu0 %v2363_v49  ;;  %2524 = vmatprep.subr.mxu1 %v4110_v37  ;;  %v4107_v49 = vld [vmem:[%s7314_s5 + $0x280] sm:$0xff]  ;;  %v4154_v37 = vld [vmem:[%s7314_s5 + $0x3e8] sm:$0xff] }
 0x274   : > { %2559 = vmatprep.subr.mxu0 %v2362_v57  ;;  %2525 = vmatpush2.msra.mxu1 %v4109_v41  ;;  %v4196_v41 = vld [vmem:[%s7314_s5 + $0x530] sm:$0xff] }
 0x275   : > { %2560 = vmatpush1.msra.mxu0 %v2361_v2  ;;  %2526 = vmatprep.subr.mxu1 %v4108_v45 }
 0x276   : > { %2561 = vmatprep.subr.mxu0 %v2360_v39  ;;  %2527 = vmatpush2.msra.mxu1 %v4107_v49  ;;  %v4153_v49 = vld [vmem:[%s7314_s5 + $0x3e0] sm:$0xff] }
 0x277   : > { %2562 = vmatpush1.msra.mxu0 %v2359_v51  ;;  %2666 = vmatprep.subr.mxu1 %v4156_v53  ;;  %v4195_v53 = vld [vmem:[%s7314_s5 + $0x528] sm:$0xff] }
 0x278   : > { %2563 = vmatprep.subr.mxu0 %v2358_v10 }
 0x279   : > { %2564 = vmatpush1.msra.mxu0 %v2357_v18 }
 0x27a   : > { %2565 = vmatprep.subr.mxu0 %v2356_v40 }
 0x27b   : > { %2566 = vmatpush1.msra.mxu0 %v2355_v52 }
 0x27c   : > { %2567 = vmatprep.subr.mxu0 %v2354_v63 }
 0x27d   : > { %2568 = vmatpush1.msra.mxu0 %v2353_v44 }
 0x27e   : > { %2585 = vmatprep.subr.mxu0 %v2400_v38 }
 0x27f   : > { %2586 = vmatpush2.msra.mxu0 %v2399_v48 }
 0x280   : > { %2587 = vmatprep.subr.mxu0 %v2398_v54 }
 0x281   : > { %2588 = vmatpush2.msra.mxu0 %v2397_v23 }
 0x282   : > { %2589 = vmatprep.subr.mxu0 %v2396_v55 }
 0x283   : > { %2590 = vmatpush2.msra.mxu0 %v2395_v8 }
 0x284   : > { %2591 = vmatprep.subr.mxu0 %v2394_v34  ;;  %v4203_v34 = vld [vmem:[%s7314_s5 + $0x568] sm:$0xff] }
 0x285   : > { %2592 = vmatpush2.msra.mxu0 %v2393_v60 }
 0x286   : > { %2593 = vmatprep.subr.mxu0 %v2392_v3  ;;  %v4200_v3 = vld [vmem:[%s7314_s5 + $0x550] sm:$0xff] }
 0x287   : > { %2594 = vmatpush2.msra.mxu0 %v2391_v58 }
 0x288   : > { %2595 = vmatprep.subr.mxu0 %v2390_v9  ;;  %v4199_v9 = vld [vmem:[%s7314_s5 + $0x548] sm:$0xff] }
 0x289   : > { %2596 = vmatpush2.msra.mxu0 %v2389_v21 }
 0x28a   : > { %2597 = vmatprep.subr.mxu0 %v2388_v7 }
 0x28b   : > { %2598 = vmatpush2.msra.mxu0 %v2387_v24 }
 0x28c   : > { %2599 = vmatprep.subr.mxu0 %v2386_v27 }
 0x28d   : > { %2600 = vmatpush2.msra.mxu0 %v2385_v12 }
 0x28e   : > { %2797 = vmatprep.subr.mxu0 %v4205_v14  ;;  %v4155_v14 = vld [vmem:[%s7314_s5 + $0x3f0] sm:$0xff] }
 0x2d8   : > { %v2006_v57 = vpop.f32.mrf.mxu1 }
 0x2da   : > { %v2008_v61 = vpop.f32.mrf.mxu1 }
 0x2dc   : > { %v2012_v35 = vpop.f32.mrf.mxu1 }
 0x2dd   : > { %v2083_v2 = vpop.f32.mrf.mxu0 }
 0x2de   : > { %v2014_v47 = vpop.f32.mrf.mxu1  ;;  %v2084_v40 = vadd.f32 %v2083_v2, %v2006_v57  ;;  %v4152_v57 = vld [vmem:[%s7314_s5 + $0x3d8] sm:$0xff]  ;;  %v4151_v2 = vld [vmem:[%s7314_s5 + $0x3d0] sm:$0xff] }
 0x2df   : > { %v2085_v39 = vpop.f32.mrf.mxu0 }
 0x2e0   : > { %v2086_v59 = vadd.f32 %v2085_v39, %v2008_v61  ;;  %v4194_v61 = vld [vmem:[%s7314_s5 + $0x520] sm:$0xff]  ;;  %v4150_v39 = vld [vmem:[%s7314_s5 + $0x3c8] sm:$0xff] }
 0x2e2   : > { %v2089_v51 = vpop.f32.mrf.mxu0 }
 0x2e3   : > { %v2090_v36 = vadd.f32 %v2089_v51, %v2012_v35  ;;  %v4193_v35 = vld [vmem:[%s7314_s5 + $0x518] sm:$0xff]  ;;  %v4149_v51 = vld [vmem:[%s7314_s5 + $0x3c0] sm:$0xff] }
 0x2e4   : > { %v2091_v10 = vpop.f32.mrf.mxu0 }
 0x2e5   : > { %v2092_v54 = vadd.f32 %v2091_v10, %v2014_v47  ;;  %v4192_v47 = vld [vmem:[%s7314_s5 + $0x510] sm:$0xff]  ;;  %v4148_v10 = vld [vmem:[%s7314_s5 + $0x3b8] sm:$0xff] }
 0x2fb   : > { %v2334_v6 = vpop.f32.mrf.mxu1 }
 0x2fd   : > { %v2336_v11 = vpop.f32.mrf.mxu1 }
 0x2ff   : > { %v2340_v43 = vpop.f32.mrf.mxu1 }
 0x301   : > { %v2342_v48 = vpop.f32.mrf.mxu1 }
 0x31e   : > { %v2257_v18 = vpop.f32.mrf.mxu0 }
 0x31f   : > { %v2335_v31 = vadd.f32 %v2334_v6, %v2257_v18  ;;  %v4191_v6 = vld [vmem:[%s7314_s5 + $0x508] sm:$0xff]  ;;  %v4147_v18 = vld [vmem:[%s7314_s5 + $0x3b0] sm:$0xff] }
 0x320   : > { %v2259_v52 = vpop.f32.mrf.mxu0 }
 0x321   : > { %v2337_v63 = vadd.f32 %v2336_v11, %v2259_v52  ;;  %v2345_v32 = vmax.f32 %v2084_v40, %v2335_v31  ;;  %v4190_v11 = vld [vmem:[%s7314_s5 + $0x500] sm:$0xff]  ;;  %v4189_v31 = vld [vmem:[%s7314_s5 + $0x4f8] sm:$0xff]  ;;  %v4146_v40 = vld [vmem:[%s7314_s5 + $0x3a8] sm:$0xff] }
 0x322   : > { %v2263_v44 = vpop.f32.mrf.mxu0  ;;  %v4145_v52 = vld [vmem:[%s7314_s5 + $0x3a0] sm:$0xff] }
 0x323   : > { %v2346_v38 = vmax.f32 %v2086_v59, %v2337_v63  ;;  %v2341_v42 = vadd.f32 %v2340_v43, %v2263_v44  ;;  %v6298_v55 = vmax.f32 %v2345_v32, 0.0  ;;  %v4188_v43 = vld [vmem:[%s7314_s5 + $0x4f0] sm:$0xff]  ;;  %v4187_v59 = vld [vmem:[%s7314_s5 + $0x4e8] sm:$0xff]  ;;  %v4144_v63 = vld [vmem:[%s7314_s5 + $0x398] sm:$0xff] }
 0x324   : > { %v2265_v50 = vpop.f32.mrf.mxu0  ;;  %v4186_v32 = vld [vmem:[%s7314_s5 + $0x4e0] sm:$0xff]  ;;  %v4143_v44 = vld [vmem:[%s7314_s5 + $0x390] sm:$0xff] }
 0x325   : > { %v6296_v4 = vmax.f32 %v2346_v38, 0.0  ;;  %v2347_v23 = vmax.f32 %v2090_v36, %v2341_v42  ;;  %v2343_v26 = vadd.f32 %v2342_v48, %v2265_v50  ;;  %v2919_v58 = vrot.slane %v6298_v55, 4  ;;  %v4185_v36 = vld [vmem:[%s7314_s5 + $0x4d8] sm:$0xff]  ;;  %v4142_v38 = vld [vmem:[%s7314_s5 + $0x388] sm:$0xff]  ;;  %v4184_v42 = vld [vmem:[%s7314_s5 + $0x4d0] sm:$0xff] }
 0x326   : > { %v2454_v12 = vrot.slane %v6298_v55, 1  ;;  %v4141_v48 = vld [vmem:[%s7314_s5 + $0x380] sm:$0xff]  ;;  %v4183_v50 = vld [vmem:[%s7314_s5 + $0x4c8] sm:$0xff] }
 0x327   : > { %v6303_v8 = vmax.f32 %v2347_v23, 0.0  ;;  %v2348_v16 = vmax.f32 %v2092_v54, %v2343_v26  ;;  %4124 = vmatprep.mubr.msk.f32.mxu0 %vm2461_vm7, %v6296_v4  ;;  %v2457_v56 = vrot.slane %v6296_v4, 1  ;;  %v2791_v21 = vrot.slane %v6296_v4, 3  ;;  %v4140_v54 = vld [vmem:[%s7314_s5 + $0x378] sm:$0xff]  ;;  %v4182_v23 = vld [vmem:[%s7314_s5 + $0x4c0] sm:$0xff]  ;;  %v4139_v26 = vld [vmem:[%s7314_s5 + $0x370] sm:$0xff] }
 0x328   : > { %2602 = vmatmul.mubr.f32.vlgmr.msra.gmra.mxu0 %v6298_v55  ;;  %v2660_v25 = vrot.slane %v6296_v4, 2 }
 0x329   : > { %v6314_v60 = vmax.f32 %v2348_v16, 0.0  ;;  %2798 = vmatpush1.msra.mxu0 %v4204_v1  ;;  %v2920_v15 = vrot.slane %v6303_v8, 4  ;;  %v2455_v7 = vrot.slane %v6303_v8, 1  ;;  %v4181_v1 = vld [vmem:[%s7314_s5 + $0x4b8] sm:$0xff]  ;;  %v4138_v16 = vld [vmem:[%s7314_s5 + $0x368] sm:$0xff] }
 0x32a   : > { %2799 = vmatprep.subr.mxu0 %v4203_v34  ;;  %v4180_v34 = vld [vmem:[%s7314_s5 + $0x4b0] sm:$0xff] }
 0x32b   : > { %2800 = vmatpush1.msra.mxu0 %v4202_v46  ;;  %v2458_v17 = vrot.slane %v6314_v60, 1  ;;  %v2792_v22 = vrot.slane %v6314_v60, 3  ;;  %v2661_v24 = vrot.slane %v6314_v60, 2  ;;  %v6337_v20 = vsel %vm516_vm1, %v2919_v58, %v2920_v15  ;;  %v4137_v46 = vld [vmem:[%s7314_s5 + $0x360] sm:$0xff]  ;;  %v4135_v58 = vld [vmem:[%s7314_s5 + $0x350] sm:$0xff]  ;;  %v4177_v15 = vld [vmem:[%s7314_s5 + $0x498] sm:$0xff] }
 0x32c   : > { %2801 = vmatprep.subr.mxu0 %v4201_v62  ;;  %v2456_v33 = vsel %vm501_vm2, %v2454_v12, %v2455_v7  ;;  %v4179_v62 = vld [vmem:[%s7314_s5 + $0x4a8] sm:$0xff]  ;;  %v4132_v7 = vld [vmem:[%s7314_s5 + $0x338] sm:$0xff]  ;;  %v4220_v12 = vld [vmem:[%s7314_s5 + $0x5f0] sm:$0xff] }
 0x32d   : > { %2802 = vmatpush1.msra.mxu0 %v4200_v3  ;;  %v2459_v27 = vsel %vm501_vm2, %v2457_v56, %v2458_v17  ;;  %v2793_v28 = vsel %vm1088_vm5, %v2791_v21, %v2792_v22  ;;  %v2662_v45 = vsel %vm880_vm4, %v2660_v25, %v2661_v24  ;;  %v4136_v3 = vld [vmem:[%s7314_s5 + $0x358] sm:$0xff]  ;;  %v4178_v56 = vld [vmem:[%s7314_s5 + $0x4a0] sm:$0xff]  ;;  %v4176_v17 = vld [vmem:[%s7314_s5 + $0x490] sm:$0xff] }
 0x32e   : > { %2803 = vmatprep.subr.mxu0 %v4199_v9  ;;  %4123 = vmatprep.mubr.msk.f32.mxu1 %vm2461_vm7, %v2459_v27  ;;  %v4134_v9 = vld [vmem:[%s7314_s5 + $0x348] sm:$0xff]  ;;  %v4133_v21 = vld [vmem:[%s7314_s5 + $0x340] sm:$0xff]  ;;  %v4131_v24 = vld [vmem:[%s7314_s5 + $0x330] sm:$0xff] }
 0x32f   : > { %2804 = vmatpush1.msra.mxu0 %v4198_v5  ;;  %4222 = vmatprep.mubr.msk.f32.mxu0 %vm2461_vm7, %v2793_v28  ;;  %v4175_v22 = vld [vmem:[%s7314_s5 + $0x488] sm:$0xff]  ;;  %v4174_v5 = vld [vmem:[%s7314_s5 + $0x480] sm:$0xff]  ;;  %v4221_v27 = vld [vmem:[%s7314_s5 + $0x5f8] sm:$0xff] }
 0x330   : > { %2529 = vmatmul.mubr.f32.vlgmr.msra.gmra.mxu1 %v2456_v33  ;;  %2805 = vmatprep.subr.mxu0 %v4197_v13  ;;  %v4130_v28 = vld [vmem:[%s7314_s5 + $0x328] sm:$0xff]  ;;  %v4129_v13 = vld [vmem:[%s7314_s5 + $0x320] sm:$0xff]  ;;  %v4128_v25 = vld [vmem:[%s7314_s5 + $0x318] sm:$0xff] }
 0x331   : > { %2667 = vmatpush1.msra.mxu1 %v4155_v14  ;;  %4173 = vmatprep.mubr.msk.f32.mxu1 %vm2461_vm7, %v2662_v45  ;;  %v4219_v14 = vld [vmem:[%s7314_s5 + $0x5e8] sm:$0xff]  ;;  %v4218_v33 = vld [vmem:[%s7314_s5 + $0x5e0] sm:$0xff] }
 0x332   : > { %2668 = vmatprep.subr.mxu1 %v4154_v37  ;;  %2806 = vmatpush1.msra.mxu0 %v4196_v41  ;;  %v4127_v37 = vld [vmem:[%s7314_s5 + $0x310] sm:$0xff]  ;;  %v4217_v41 = vld [vmem:[%s7314_s5 + $0x5d8] sm:$0xff]  ;;  %v4126_v45 = vld [vmem:[%s7314_s5 + $0x308] sm:$0xff] }
 0x333   : > { %2669 = vmatpush1.msra.mxu1 %v4153_v49  ;;  %2807 = vmatprep.subr.mxu0 %v4195_v53  ;;  %v4216_v49 = vld [vmem:[%s7314_s5 + $0x5d0] sm:$0xff]  ;;  %v4125_v53 = vld [vmem:[%s7314_s5 + $0x300] sm:$0xff] }
 0x334   : > { %2670 = vmatprep.subr.mxu1 %v4152_v57  ;;  %2808 = vmatpush1.msra.mxu0 %v4194_v61  ;;  %v4215_v57 = vld [vmem:[%s7314_s5 + $0x5c8] sm:$0xff]  ;;  %v4172_v61 = vld [vmem:[%s7314_s5 + $0x478] sm:$0xff] }
 0x335   : > { %2671 = vmatpush1.msra.mxu1 %v4151_v2  ;;  %2809 = vmatprep.subr.mxu0 %v4193_v35  ;;  %v4214_v2 = vld [vmem:[%s7314_s5 + $0x5c0] sm:$0xff]  ;;  %v4171_v35 = vld [vmem:[%s7314_s5 + $0x470] sm:$0xff] }
 0x336   : > { %2672 = vmatprep.subr.mxu1 %v4150_v39  ;;  %2810 = vmatpush1.msra.mxu0 %v4192_v47  ;;  %v4213_v39 = vld [vmem:[%s7314_s5 + $0x5b8] sm:$0xff]  ;;  %v4170_v47 = vld [vmem:[%s7314_s5 + $0x468] sm:$0xff] }
 0x337   : > { %2673 = vmatpush1.msra.mxu1 %v4149_v51  ;;  %2811 = vmatprep.subr.mxu0 %v4191_v6  ;;  %v4212_v51 = vld [vmem:[%s7314_s5 + $0x5b0] sm:$0xff]  ;;  %v4169_v6 = vld [vmem:[%s7314_s5 + $0x460] sm:$0xff] }
 0x338   : > { %2674 = vmatprep.subr.mxu1 %v4148_v10  ;;  %2812 = vmatpush1.msra.mxu0 %v4190_v11  ;;  %v4211_v10 = vld [vmem:[%s7314_s5 + $0x5a8] sm:$0xff]  ;;  %v4168_v11 = vld [vmem:[%s7314_s5 + $0x458] sm:$0xff] }
 0x339   : > { %2675 = vmatpush1.msra.mxu1 %v4147_v18  ;;  %2813 = vmatprep.subr.mxu0 %v4189_v31  ;;  %v4210_v18 = vld [vmem:[%s7314_s5 + $0x5a0] sm:$0xff]  ;;  %v4167_v31 = vld [vmem:[%s7314_s5 + $0x450] sm:$0xff] }
 0x33a   : > { %2676 = vmatprep.subr.mxu1 %v4146_v40  ;;  %2814 = vmatpush1.msra.mxu0 %v4188_v43  ;;  %v4209_v40 = vld [vmem:[%s7314_s5 + $0x598] sm:$0xff]  ;;  %v4166_v43 = vld [vmem:[%s7314_s5 + $0x448] sm:$0xff] }
 0x33b   : > { %2677 = vmatpush1.msra.mxu1 %v4145_v52  ;;  %2815 = vmatprep.subr.mxu0 %v4187_v59  ;;  %v4208_v52 = vld [vmem:[%s7314_s5 + $0x590] sm:$0xff]  ;;  %v4165_v59 = vld [vmem:[%s7314_s5 + $0x440] sm:$0xff] }
 0x33c   : > { %2678 = vmatprep.subr.mxu1 %v4144_v63  ;;  %2816 = vmatpush1.msra.mxu0 %v4186_v32  ;;  %v4207_v63 = vld [vmem:[%s7314_s5 + $0x588] sm:$0xff]  ;;  %v2789_v32 = vrot.slane %v6303_v8, 3 }
 0x33d   : > { %2679 = vmatpush1.msra.mxu1 %v4143_v44  ;;  %2817 = vmatprep.subr.mxu0 %v4185_v36  ;;  %v4164_v44 = vld [vmem:[%s7314_s5 + $0x438] sm:$0xff]  ;;  %v4206_v36 = vld [vmem:[%s7314_s5 + $0x580] sm:$0xff] }
 0x33e   : > { %2680 = vmatprep.subr.mxu1 %v4142_v38  ;;  %2818 = vmatpush1.msra.mxu0 %v4184_v42  ;;  %v4163_v38 = vld [vmem:[%s7314_s5 + $0x430] sm:$0xff]  ;;  %v2788_v42 = vrot.slane %v6298_v55, 3 }
 0x33f   : > { %2681 = vmatpush1.msra.mxu1 %v4141_v48  ;;  %2819 = vmatprep.subr.mxu0 %v4183_v50  ;;  %v4162_v48 = vld [vmem:[%s7314_s5 + $0x428] sm:$0xff] }
 0x340   : > { %2682 = vmatprep.subr.mxu1 %v4140_v54  ;;  %2820 = vmatpush1.msra.mxu0 %v4182_v23  ;;  %v2790_v50 = vsel %vm1088_vm5, %v2788_v42, %v2789_v32  ;;  %v4161_v54 = vld [vmem:[%s7314_s5 + $0x420] sm:$0xff]  ;;  %v4160_v23 = vld [vmem:[%s7314_s5 + $0x418] sm:$0xff]  ;;  %v4261_v32 = vld [vmem:[%s7314_s5 + $0x730] sm:$0xff] }
 0x341   : > { %2683 = vmatpush1.msra.mxu1 %v4139_v26  ;;  %2821 = vmatprep.subr.mxu0 %v4181_v1  ;;  %v4159_v26 = vld [vmem:[%s7314_s5 + $0x410] sm:$0xff]  ;;  %v4158_v1 = vld [vmem:[%s7314_s5 + $0x408] sm:$0xff] }
 0x342   : > { %2684 = vmatprep.subr.mxu1 %v4138_v16  ;;  %2822 = vmatpush1.msra.mxu0 %v4180_v34  ;;  %v2658_v16 = vrot.slane %v6303_v8, 2  ;;  %v4157_v34 = vld [vmem:[%s7314_s5 + $0x400] sm:$0xff]  ;;  %v2922_v8 = vrot.slane %v6296_v4, 4  ;;  %v4250_v4 = vld [vmem:[%s7314_s5 + $0x6d8] sm:$0xff]  ;;  %v4257_v42 = vld [vmem:[%s7314_s5 + $0x710] sm:$0xff] }
 0x343   : > { %2685 = vmatpush1.msra.mxu1 %v4137_v46  ;;  %2823 = vmatprep.subr.mxu0 %v4179_v62  ;;  %v2923_v46 = vrot.slane %v6314_v60, 4  ;;  %v2657_v62 = vrot.slane %v6298_v55, 2  ;;  %v4252_v60 = vld [vmem:[%s7314_s5 + $0x6e8] sm:$0xff] }
 0x344   : > { %2686 = vmatprep.subr.mxu1 %v4136_v3  ;;  %2824 = vmatpush1.msra.mxu0 %v4178_v56  ;;  %v4254_v3 = vld [vmem:[%s7314_s5 + $0x6f8] sm:$0xff]  ;;  %v4253_v56 = vld [vmem:[%s7314_s5 + $0x6f0] sm:$0xff] }
 0x345   : > { %2687 = vmatpush1.msra.mxu1 %v4135_v58  ;;  %2825 = vmatprep.subr.mxu0 %v4177_v15  ;;  %v2659_v58 = vsel %vm880_vm4, %v2657_v62, %v2658_v16  ;;  %v2924_v55 = vsel %vm516_vm1, %v2922_v8, %v2923_v46  ;;  %v4251_v15 = vld [vmem:[%s7314_s5 + $0x6e0] sm:$0xff] }
 0x346   : > { %2688 = vmatprep.subr.mxu1 %v4134_v9  ;;  %2826 = vmatpush1.msra.mxu0 %v4176_v17  ;;  %v4249_v9 = vld [vmem:[%s7314_s5 + $0x6d0] sm:$0xff]  ;;  %v4248_v17 = vld [vmem:[%s7314_s5 + $0x6c8] sm:$0xff] }
 0x347   : > { %2689 = vmatpush1.msra.mxu1 %v4133_v21  ;;  %2827 = vmatprep.subr.mxu0 %v4175_v22  ;;  %v4247_v21 = vld [vmem:[%s7314_s5 + $0x6c0] sm:$0xff]  ;;  %v4246_v22 = vld [vmem:[%s7314_s5 + $0x6b8] sm:$0xff] }
 0x348   : > { %2690 = vmatprep.subr.mxu1 %v4132_v7  ;;  %2828 = vmatpush1.msra.mxu0 %v4174_v5  ;;  %v4245_v7 = vld [vmem:[%s7314_s5 + $0x6b0] sm:$0xff]  ;;  %v4244_v5 = vld [vmem:[%s7314_s5 + $0x6a8] sm:$0xff] }
 0x349   : > { %2691 = vmatpush1.msra.mxu1 %v4131_v24  ;;  %2845 = vmatprep.subr.mxu0 %v4221_v27  ;;  %v4243_v24 = vld [vmem:[%s7314_s5 + $0x6a0] sm:$0xff]  ;;  %v4242_v27 = vld [vmem:[%s7314_s5 + $0x698] sm:$0xff] }
 0x34a   : > { %2692 = vmatprep.subr.mxu1 %v4130_v28  ;;  %2846 = vmatpush2.msra.mxu0 %v4220_v12  ;;  %v4241_v28 = vld [vmem:[%s7314_s5 + $0x690] sm:$0xff]  ;;  %v4240_v12 = vld [vmem:[%s7314_s5 + $0x688] sm:$0xff] }
 0x34b   : > { %2693 = vmatpush1.msra.mxu1 %v4129_v13  ;;  %2847 = vmatprep.subr.mxu0 %v4219_v14  ;;  %v4239_v13 = vld [vmem:[%s7314_s5 + $0x680] sm:$0xff]  ;;  %v4238_v14 = vld [vmem:[%s7314_s5 + $0x678] sm:$0xff] }
 0x34c   : > { %2694 = vmatprep.subr.mxu1 %v4128_v25  ;;  %2848 = vmatpush2.msra.mxu0 %v4218_v33  ;;  %v4237_v25 = vld [vmem:[%s7314_s5 + $0x670] sm:$0xff]  ;;  %v4236_v33 = vld [vmem:[%s7314_s5 + $0x668] sm:$0xff] }
 0x34d   : > { %2695 = vmatpush1.msra.mxu1 %v4127_v37  ;;  %2849 = vmatprep.subr.mxu0 %v4217_v41  ;;  %v4235_v37 = vld [vmem:[%s7314_s5 + $0x660] sm:$0xff]  ;;  %v4234_v41 = vld [vmem:[%s7314_s5 + $0x658] sm:$0xff] }
 0x34e   : > { %2696 = vmatprep.subr.mxu1 %v4126_v45  ;;  %2850 = vmatpush2.msra.mxu0 %v4216_v49  ;;  %v4233_v45 = vld [vmem:[%s7314_s5 + $0x650] sm:$0xff]  ;;  %v4232_v49 = vld [vmem:[%s7314_s5 + $0x648] sm:$0xff] }
 0x34f   : > { %2697 = vmatpush1.msra.mxu1 %v4125_v53  ;;  %2851 = vmatprep.subr.mxu0 %v4215_v57  ;;  %v4231_v53 = vld [vmem:[%s7314_s5 + $0x640] sm:$0xff]  ;;  %v4230_v57 = vld [vmem:[%s7314_s5 + $0x638] sm:$0xff] }
 0x350   : > { %2714 = vmatprep.subr.mxu1 %v4172_v61  ;;  %2852 = vmatpush2.msra.mxu0 %v4214_v2  ;;  %v4229_v61 = vld [vmem:[%s7314_s5 + $0x630] sm:$0xff]  ;;  %v4228_v2 = vld [vmem:[%s7314_s5 + $0x628] sm:$0xff] }
 0x351   : > { %2715 = vmatpush2.msra.mxu1 %v4171_v35  ;;  %2853 = vmatprep.subr.mxu0 %v4213_v39  ;;  %v4227_v35 = vld [vmem:[%s7314_s5 + $0x620] sm:$0xff]  ;;  %v4226_v39 = vld [vmem:[%s7314_s5 + $0x618] sm:$0xff] }
 0x352   : > { %2716 = vmatprep.subr.mxu1 %v4170_v47  ;;  %2854 = vmatpush2.msra.mxu0 %v4212_v51  ;;  %v4225_v47 = vld [vmem:[%s7314_s5 + $0x610] sm:$0xff]  ;;  %v4224_v51 = vld [vmem:[%s7314_s5 + $0x608] sm:$0xff] }
 0x353   : > { %2717 = vmatpush2.msra.mxu1 %v4169_v6  ;;  %2855 = vmatprep.subr.mxu0 %v4211_v10  ;;  %v4223_v6 = vld [vmem:[%s7314_s5 + $0x600] sm:$0xff]  ;;  %v4270_v10 = vld [vmem:[%s7314_s5 + $0x778] sm:$0xff] }
 0x354   : > { %2718 = vmatprep.subr.mxu1 %v4168_v11  ;;  %2856 = vmatpush2.msra.mxu0 %v4210_v18  ;;  %v4269_v11 = vld [vmem:[%s7314_s5 + $0x770] sm:$0xff]  ;;  %v4268_v18 = vld [vmem:[%s7314_s5 + $0x768] sm:$0xff] }
 0x355   : > { %2719 = vmatpush2.msra.mxu1 %v4167_v31  ;;  %2857 = vmatprep.subr.mxu0 %v4209_v40  ;;  %v4267_v31 = vld [vmem:[%s7314_s5 + $0x760] sm:$0xff]  ;;  %v4266_v40 = vld [vmem:[%s7314_s5 + $0x758] sm:$0xff] }
 0x356   : > { %2720 = vmatprep.subr.mxu1 %v4166_v43  ;;  %2858 = vmatpush2.msra.mxu0 %v4208_v52  ;;  %v4265_v43 = vld [vmem:[%s7314_s5 + $0x750] sm:$0xff]  ;;  %v4264_v52 = vld [vmem:[%s7314_s5 + $0x748] sm:$0xff] }
 0x357   : > { %2721 = vmatpush2.msra.mxu1 %v4165_v59  ;;  %2859 = vmatprep.subr.mxu0 %v4207_v63  ;;  %v4263_v59 = vld [vmem:[%s7314_s5 + $0x740] sm:$0xff]  ;;  %v4262_v63 = vld [vmem:[%s7314_s5 + $0x738] sm:$0xff] }
 0x358   : > { %2722 = vmatprep.subr.mxu1 %v4164_v44  ;;  %2860 = vmatpush2.msra.mxu0 %v4206_v36  ;;  %v4260_v44 = vld [vmem:[%s7314_s5 + $0x728] sm:$0xff]  ;;  %v4259_v36 = vld [vmem:[%s7314_s5 + $0x720] sm:$0xff] }
 0x359   : > { %2723 = vmatpush2.msra.mxu1 %v4163_v38  ;;  %2862 = vmatmul.mubr.f32.vlgmr.msra.gmra.mxu0 %v2790_v50  ;;  %v4258_v38 = vld [vmem:[%s7314_s5 + $0x718] sm:$0xff]  ;;  %v4255_v50 = vld [vmem:[%s7314_s5 + $0x700] sm:$0xff] }
 0x35a   : > { %2724 = vmatprep.subr.mxu1 %v4162_v48  ;;  %3084 = vmatprep.mubr.f32.mxu0 %v5031_v0  ;;  %v4256_v48 = vld [vmem:[%s7314_s5 + $0x708] sm:$0xff] }
 0x35b   : > { %2725 = vmatpush2.msra.mxu1 %v4161_v54 }
 0x35c   : > { %2726 = vmatprep.subr.mxu1 %v4160_v23 }
 0x35d   : > { %2727 = vmatpush2.msra.mxu1 %v4159_v26 }
 0x35e   : > { %2728 = vmatprep.subr.mxu1 %v4158_v1 }
 0x35f   : > { %2729 = vmatpush2.msra.mxu1 %v4157_v34 }
 0x360   : > { %2731 = vmatmul.mubr.f32.vlgmr.msra.gmra.mxu1 %v2659_v58  ;;  %2928 = vmatprep.subr.mxu1 %v4254_v3 }
 0x361   : > { %2929 = vmatpush1.msra.mxu1 %v4253_v56  ;;  %4271 = vmatprep.mubr.msk.f32.mxu1 %vm2461_vm7, %v2924_v55 }
 0x362   : > { %2930 = vmatprep.subr.mxu1 %v4252_v60 }
 0x363   : > { %2931 = vmatpush1.msra.mxu1 %v4251_v15 }
 0x364   : > { %2932 = vmatprep.subr.mxu1 %v4250_v4 }
 0x365   : > { %2933 = vmatpush1.msra.mxu1 %v4249_v9 }
 0x366   : > { %2934 = vmatprep.subr.mxu1 %v4248_v17 }
 0x367   : > { %2935 = vmatpush1.msra.mxu1 %v4247_v21 }
 0x368   : > { %2936 = vmatprep.subr.mxu1 %v4246_v22 }
 0x369   : > { %2937 = vmatpush1.msra.mxu1 %v4245_v7 }
 0x36a   : > { %2938 = vmatprep.subr.mxu1 %v4244_v5 }
 0x36b   : > { %2939 = vmatpush1.msra.mxu1 %v4243_v24  ;;  %v3015_v24 = vld [vmem:[%s7316_s7] sm:$0xf] }
 0x36c   : > { %2940 = vmatprep.subr.mxu1 %v4242_v27  ;;  %v3200_v27 = vld [vmem:[%s7317_s8 + $0xf8] sm:$0xff] }
 0x36d   : > { %2941 = vmatpush1.msra.mxu1 %v4241_v28  ;;  %v3183_v28 = vld [vmem:[%s7317_s8 + $0x70] sm:$0xff] }
 0x36e   : > { %2942 = vmatprep.subr.mxu1 %v4240_v12  ;;  %v3198_v12 = vld [vmem:[%s7317_s8 + $0xe8] sm:$0xff] }
 0x36f   : > { %2943 = vmatpush1.msra.mxu1 %v4239_v13  ;;  %v3182_v13 = vld [vmem:[%s7317_s8 + $0x68] sm:$0xff] }
 0x370   : > { %2944 = vmatprep.subr.mxu1 %v4238_v14  ;;  %v3197_v14 = vld [vmem:[%s7317_s8 + $0xe0] sm:$0xff] }
 0x371   : > { %2945 = vmatpush1.msra.mxu1 %v4237_v25  ;;  %v3181_v25 = vld [vmem:[%s7317_s8 + $0x60] sm:$0xff] }
 0x372   : > { %2946 = vmatprep.subr.mxu1 %v4236_v33  ;;  %v3196_v33 = vld [vmem:[%s7317_s8 + $0xd8] sm:$0xff] }
 0x373   : > { %2947 = vmatpush1.msra.mxu1 %v4235_v37  ;;  %v3180_v37 = vld [vmem:[%s7317_s8 + $0x58] sm:$0xff] }
 0x374   : > { %2948 = vmatprep.subr.mxu1 %v4234_v41  ;;  %v3195_v41 = vld [vmem:[%s7317_s8 + $0xd0] sm:$0xff] }
 0x375   : > { %2949 = vmatpush1.msra.mxu1 %v4233_v45  ;;  %v3179_v45 = vld [vmem:[%s7317_s8 + $0x50] sm:$0xff] }
 0x376   : > { %2950 = vmatprep.subr.mxu1 %v4232_v49  ;;  %v3194_v49 = vld [vmem:[%s7317_s8 + $0xc8] sm:$0xff] }
 0x377   : > { %2951 = vmatpush1.msra.mxu1 %v4231_v53  ;;  %v3178_v53 = vld [vmem:[%s7317_s8 + $0x48] sm:$0xff] }
 0x378   : > { %2952 = vmatprep.subr.mxu1 %v4230_v57  ;;  %v3193_v57 = vld [vmem:[%s7317_s8 + $0xc0] sm:$0xff] }
 0x379   : > { %2953 = vmatpush1.msra.mxu1 %v4229_v61  ;;  %v3177_v61 = vld [vmem:[%s7317_s8 + $0x40] sm:$0xff] }
 0x37a   : > { %2954 = vmatprep.subr.mxu1 %v4228_v2  ;;  %v3192_v2 = vld [vmem:[%s7317_s8 + $0xb8] sm:$0xff] }
 0x37b   : > { %2955 = vmatpush1.msra.mxu1 %v4227_v35  ;;  %v3176_v35 = vld [vmem:[%s7317_s8 + $0x38] sm:$0xff] }
 0x37c   : > { %2956 = vmatprep.subr.mxu1 %v4226_v39  ;;  %v3191_v39 = vld [vmem:[%s7317_s8 + $0xb0] sm:$0xff] }
 0x37d   : > { %2957 = vmatpush1.msra.mxu1 %v4225_v47  ;;  %v3175_v47 = vld [vmem:[%s7317_s8 + $0x30] sm:$0xff] }
 0x37e   : > { %2958 = vmatprep.subr.mxu1 %v4224_v51  ;;  %v3190_v51 = vld [vmem:[%s7317_s8 + $0xa8] sm:$0xff] }
 0x37f   : > { %2959 = vmatpush1.msra.mxu1 %v4223_v6  ;;  %v3174_v6 = vld [vmem:[%s7317_s8 + $0x28] sm:$0xff] }
 0x380   : > { %2976 = vmatprep.subr.mxu1 %v4270_v10  ;;  %v3189_v10 = vld [vmem:[%s7317_s8 + $0xa0] sm:$0xff] }
 0x381   : > { %2977 = vmatpush2.msra.mxu1 %v4269_v11  ;;  %v3173_v11 = vld [vmem:[%s7317_s8 + $0x20] sm:$0xff] }
 0x382   : > { %2978 = vmatprep.subr.mxu1 %v4268_v18  ;;  %v3188_v18 = vld [vmem:[%s7317_s8 + $0x98] sm:$0xff] }
 0x383   : > { %2979 = vmatpush2.msra.mxu1 %v4267_v31  ;;  %v3172_v31 = vld [vmem:[%s7317_s8 + $0x18] sm:$0xff] }
 0x384   : > { %2980 = vmatprep.subr.mxu1 %v4266_v40  ;;  %v3187_v40 = vld [vmem:[%s7317_s8 + $0x90] sm:$0xff] }
 0x385   : > { %2981 = vmatpush2.msra.mxu1 %v4265_v43  ;;  %v3171_v43 = vld [vmem:[%s7317_s8 + $0x10] sm:$0xff] }
 0x386   : > { %2982 = vmatprep.subr.mxu1 %v4264_v52  ;;  %v3186_v52 = vld [vmem:[%s7317_s8 + $0x88] sm:$0xff] }
 0x387   : > { %2983 = vmatpush2.msra.mxu1 %v4263_v59  ;;  %v3170_v59 = vld [vmem:[%s7317_s8 + $0x8] sm:$0xff] }
 0x388   : > { %2984 = vmatprep.subr.mxu1 %v4262_v63  ;;  %v3185_v63 = vld [vmem:[%s7317_s8 + $0x80] sm:$0xff] }
 0x389   : > { %2985 = vmatpush2.msra.mxu1 %v4261_v32  ;;  %v3169_v32 = vld [vmem:[%s7317_s8] sm:$0xff] }
 0x38a   : > { %2986 = vmatprep.subr.mxu1 %v4260_v44  ;;  %v4306_v44 = vld [vmem:[%s7317_s8 + $0x1f8] sm:$0xff] }
 0x38b   : > { %2987 = vmatpush2.msra.mxu1 %v4259_v36 }
 0x38c   : > { %2988 = vmatprep.subr.mxu1 %v4258_v38 }
 0x38d   : > { %2989 = vmatpush2.msra.mxu1 %v4257_v42 }
 0x38e   : > { %2990 = vmatprep.subr.mxu1 %v4256_v48 }
 0x38f   : > { %2991 = vmatpush2.msra.mxu1 %v4255_v50 }
 0x390   : > { %2993 = vmatmul.mubr.f32.vlgmr.msra.gmra.mxu1 %v6337_v20  ;;  %4662 = vmatprep.subr.mxu1 %v5031_v0  ;;  %v3001_v20 = vld [vmem:[%s7315_s6] sm:$0x3] }
 0x391   : > { %4694 = vmatprep.mubr.msk.f32.mxu1 %vm5032_vm0, %v5031_v0  ;;  %v3010_v4 = vrot.slane %v3001_v20, %v1498_v30  ;;  %v3006_v17 = vrot.slane %v3001_v20, %v1494_v29  ;;  %v3184_v29 = vld [vmem:[%s7317_s8 + $0x78] sm:$0xff]  ;;  %v3199_v30 = vld [vmem:[%s7317_s8 + $0xf0] sm:$0xff] }
 0x392   : > { %v4285_v20 = vld [vmem:[%s7317_s8 + $0x150] sm:$0xff] }
 0x3e8   : > { %v2603_v26 = vpop.f32.mrf.mxu0 }
 0x3ea   : > { %v2605_v16 = vpop.f32.mrf.mxu0 }
 0x3f0   : > { %v2530_v54 = vpop.f32.mrf.mxu1 }
 0x3f1   : > { %v2604_v34 = vadd.f32 %v2603_v26, %v2530_v54  ;;  %v4305_v26 = vld [vmem:[%s7317_s8 + $0x1f0] sm:$0xff] }
 0x3f2   : > { %v2532_v23 = vpop.f32.mrf.mxu1 }
 0x3f3   : > { %v2606_v62 = vadd.f32 %v2605_v16, %v2532_v23  ;;  %v4290_v23 = vld [vmem:[%s7317_s8 + $0x178] sm:$0xff]  ;;  %v4304_v16 = vld [vmem:[%s7317_s8 + $0x1e8] sm:$0xff] }
 0x419   : > { %v2863_v3 = vpop.f32.mrf.mxu0 }
 0x41b   : > { %v2865_v58 = vpop.f32.mrf.mxu0 }
 0x420   : > { %v2732_v1 = vpop.f32.mrf.mxu1 }
 0x421   : > { %v2737_v56 = vadd.f32 %v2732_v1, %v2604_v34  ;;  %v4289_v1 = vld [vmem:[%s7317_s8 + $0x170] sm:$0xff]  ;;  %v4288_v34 = vld [vmem:[%s7317_s8 + $0x168] sm:$0xff] }
 0x422   : > { %v2734_v46 = vpop.f32.mrf.mxu1 }
 0x423   : > { %v2738_v8 = vadd.f32 %v2734_v46, %v2606_v62  ;;  %v2868_v60 = vadd.f32 %v2863_v3, %v2737_v56  ;;  %v4303_v46 = vld [vmem:[%s7317_s8 + $0x1e0] sm:$0xff]  ;;  %v4302_v3 = vld [vmem:[%s7317_s8 + $0x1d8] sm:$0xff] }
 0x424   : > { %v4287_v62 = vld [vmem:[%s7317_s8 + $0x160] sm:$0xff]  ;;  %v4286_v56 = vld [vmem:[%s7317_s8 + $0x158] sm:$0xff] }
 0x425   : > { %v2869_v15 = vadd.f32 %v2865_v58, %v2738_v8  ;;  %v4301_v8 = vld [vmem:[%s7317_s8 + $0x1d0] sm:$0xff]  ;;  %v4300_v58 = vld [vmem:[%s7317_s8 + $0x1c8] sm:$0xff] }
 0x450   : > { %v2994_v55 = vpop.f32.mrf.mxu1 }
 0x451   : > { %v2999_v9 = vadd.f32 %v2994_v55, %v2868_v60  ;;  %v4284_v60 = vld [vmem:[%s7317_s8 + $0x148] sm:$0xff]  ;;  %v4299_v55 = vld [vmem:[%s7317_s8 + $0x1c0] sm:$0xff] }
 0x452   : > { %v2996_v21 = vpop.f32.mrf.mxu1 }
 0x453   : > { %v3000_v22 = vadd.f32 %v2996_v21, %v2869_v15  ;;  %v3013_v5 = vadd.f32 %v3006_v17, %v2999_v9  ;;  %v4283_v15 = vld [vmem:[%s7317_s8 + $0x140] sm:$0xff]  ;;  %v4282_v9 = vld [vmem:[%s7317_s8 + $0x138] sm:$0xff]  ;;  %v4297_v17 = vld [vmem:[%s7317_s8 + $0x1b0] sm:$0xff] }
 0x454   : > { %v4281_v21 = vld [vmem:[%s7317_s8 + $0x130] sm:$0xff] }
 0x455   : > { %v3014_v7 = vadd.f32 %v3010_v4, %v3000_v22  ;;  %v4298_v4 = vld [vmem:[%s7317_s8 + $0x1b8] sm:$0xff]  ;;  %v4296_v22 = vld [vmem:[%s7317_s8 + $0x1a8] sm:$0xff] }
 0x457   : > { %3050 = vmatprep.subr.mxu0 %v3014_v7 }
 0x458   : > { %3051 = vmatpush1.msra.mxu0 %v3013_v5 }
 0x459   : > { %4272 = vmatmul.mubr.msk.f32.vlgmr.msra.gmra.mxu0 %vm3016_vm8, %v3015_v24  ;;  %3126 = vmatprep.subr.mxu0 %v3014_v7  ;;  %v4280_v7 = vld [vmem:[%s7317_s8 + $0x128] sm:$0xff]  ;;  %v4279_v24 = vld [vmem:[%s7317_s8 + $0x120] sm:$0xff] }
 0x45a   : > { %3127 = vmatpush1.msra.mxu0 %v3013_v5  ;;  %3160 = vmatprep.mubr.f32.mxu0 %v5031_v0  ;;  %v4295_v5 = vld [vmem:[%s7317_s8 + $0x1a0] sm:$0xff] }
 0x45b   : > { %4404 = vmatprep.subr.mxu0 %v3200_v27  ;;  %v4294_v27 = vld [vmem:[%s7317_s8 + $0x198] sm:$0xff] }
 0x45d   : > { %4274 = vmatmul.mubr.msk.f32.vlgmr.msra.gmra.mxu0 %vm3016_vm8, %v4273_v19  ;;  %v4278_v19 = vld [vmem:[%s7317_s8 + $0x118] sm:$0xff] }
 0x45e   : > { %4405 = vmatpush3.msra.mxu0 %v3184_v29  ;;  %v4293_v29 = vld [vmem:[%s7317_s8 + $0x190] sm:$0xff] }
 0x45f   : > { %4406 = vmatprep.subr.mxu0 %v3199_v30  ;;  %v4277_v30 = vld [vmem:[%s7317_s8 + $0x110] sm:$0xff] }
 0x460   : > { %4407 = vmatpush3.msra.mxu0 %v3183_v28  ;;  %v4292_v28 = vld [vmem:[%s7317_s8 + $0x188] sm:$0xff] }
 0x461   : > { %4408 = vmatprep.subr.mxu0 %v3198_v12  ;;  %v4276_v12 = vld [vmem:[%s7317_s8 + $0x108] sm:$0xff] }
 0x462   : > { %4409 = vmatpush3.msra.mxu0 %v3182_v13  ;;  %v4291_v13 = vld [vmem:[%s7317_s8 + $0x180] sm:$0xff] }
 0x463   : > { %4410 = vmatprep.subr.mxu0 %v3197_v14  ;;  %v4275_v14 = vld [vmem:[%s7317_s8 + $0x100] sm:$0xff] }
 0x464   : > { %4411 = vmatpush3.msra.mxu0 %v3181_v25  ;;  %v3392_v25 = vld [vmem:[%s7318_s9 + $0x78] sm:$0xff] }
 0x465   : > { %4412 = vmatprep.subr.mxu0 %v3196_v33  ;;  %v3391_v33 = vld [vmem:[%s7318_s9 + $0x70] sm:$0xff]  ;;  %4663 = vmatpush3.msra.mxu1 %v3392_v25  ;;  %v4344_v25 = vld [vmem:[%s7318_s9 + $0x1a8] sm:$0xff] }
 0x466   : > { %4413 = vmatpush3.msra.mxu0 %v3180_v37  ;;  %v4322_v37 = vld [vmem:[%s7318_s9 + $0xf8] sm:$0xff]  ;;  %4664 = vmatprep.subr.mxu1 %v5031_v0 }
 0x467   : > { %4414 = vmatprep.subr.mxu0 %v3195_v41  ;;  %v4321_v41 = vld [vmem:[%s7318_s9 + $0xf0] sm:$0xff]  ;;  %4665 = vmatpush3.msra.mxu1 %v3391_v33  ;;  %v4326_v33 = vld [vmem:[%s7318_s9 + $0x118] sm:$0xff] }
 0x468   : > { %4415 = vmatpush3.msra.mxu0 %v3179_v45  ;;  %v3390_v45 = vld [vmem:[%s7318_s9 + $0x68] sm:$0xff]  ;;  %4666 = vmatprep.subr.mxu1 %v5031_v0 }
 0x469   : > { %4416 = vmatprep.subr.mxu0 %v3194_v49  ;;  %v4320_v49 = vld [vmem:[%s7318_s9 + $0xe8] sm:$0xff]  ;;  %4667 = vmatpush3.msra.mxu1 %v3390_v45  ;;  %v4342_v45 = vld [vmem:[%s7318_s9 + $0x198] sm:$0xff] }
 0x46a   : > { %4417 = vmatpush3.msra.mxu0 %v3178_v53  ;;  %v3389_v53 = vld [vmem:[%s7318_s9 + $0x60] sm:$0xff]  ;;  %4668 = vmatprep.subr.mxu1 %v5031_v0 }
 0x46b   : > { %4418 = vmatprep.subr.mxu0 %v3193_v57  ;;  %v4319_v57 = vld [vmem:[%s7318_s9 + $0xe0] sm:$0xff]  ;;  %4669 = vmatpush3.msra.mxu1 %v3389_v53  ;;  %v4341_v53 = vld [vmem:[%s7318_s9 + $0x190] sm:$0xff] }
 0x46c   : > { %4419 = vmatpush3.msra.mxu0 %v3177_v61  ;;  %v3388_v61 = vld [vmem:[%s7318_s9 + $0x58] sm:$0xff]  ;;  %4670 = vmatprep.subr.mxu1 %v5031_v0 }
 0x46d   : > { %4420 = vmatprep.subr.mxu0 %v3192_v2  ;;  %v4318_v2 = vld [vmem:[%s7318_s9 + $0xd8] sm:$0xff]  ;;  %4671 = vmatpush3.msra.mxu1 %v3388_v61  ;;  %v4340_v61 = vld [vmem:[%s7318_s9 + $0x188] sm:$0xff] }
 0x46e   : > { %4421 = vmatpush3.msra.mxu0 %v3176_v35  ;;  %v3387_v35 = vld [vmem:[%s7318_s9 + $0x50] sm:$0xff]  ;;  %4672 = vmatprep.subr.mxu1 %v5031_v0 }
 0x46f   : > { %4422 = vmatprep.subr.mxu0 %v3191_v39  ;;  %v4317_v39 = vld [vmem:[%s7318_s9 + $0xd0] sm:$0xff]  ;;  %4673 = vmatpush3.msra.mxu1 %v3387_v35  ;;  %v4339_v35 = vld [vmem:[%s7318_s9 + $0x180] sm:$0xff] }
 0x470   : > { %4423 = vmatpush3.msra.mxu0 %v3175_v47  ;;  %v3386_v47 = vld [vmem:[%s7318_s9 + $0x48] sm:$0xff]  ;;  %4674 = vmatprep.subr.mxu1 %v5031_v0 }
 0x471   : > { %4424 = vmatprep.subr.mxu0 %v3190_v51  ;;  %v4316_v51 = vld [vmem:[%s7318_s9 + $0xc8] sm:$0xff]  ;;  %4675 = vmatpush3.msra.mxu1 %v3386_v47  ;;  %v3751_v47 = vld [vmem:[#allocation5 + $0x78] sm:$0xff] }
 0x472   : > { %4425 = vmatpush3.msra.mxu0 %v3174_v6  ;;  %v3385_v6 = vld [vmem:[%s7318_s9 + $0x40] sm:$0xff]  ;;  %4676 = vmatprep.subr.mxu1 %v5031_v0 }
 0x473   : > { %4426 = vmatprep.subr.mxu0 %v3189_v10  ;;  %v4315_v10 = vld [vmem:[%s7318_s9 + $0xc0] sm:$0xff]  ;;  %4677 = vmatpush3.msra.mxu1 %v3385_v6  ;;  %v3749_v6 = vld [vmem:[#allocation5 + $0x68] sm:$0xff] }
 0x474   : > { %4427 = vmatpush3.msra.mxu0 %v3173_v11  ;;  %v3384_v11 = vld [vmem:[%s7318_s9 + $0x38] sm:$0xff]  ;;  %4678 = vmatprep.subr.mxu1 %v5031_v0 }
 0x475   : > { %4428 = vmatprep.subr.mxu0 %v3188_v18  ;;  %v4314_v18 = vld [vmem:[%s7318_s9 + $0xb8] sm:$0xff]  ;;  %4679 = vmatpush3.msra.mxu1 %v3384_v11 }
 0x476   : > { %4429 = vmatpush3.msra.mxu0 %v3172_v31  ;;  %v3383_v31 = vld [vmem:[%s7318_s9 + $0x30] sm:$0xff]  ;;  %4680 = vmatprep.subr.mxu1 %v5031_v0  ;;  %v3747_v11 = vld [vmem:[#allocation5 + $0x58] sm:$0xff] }
 0x477   : > { %4430 = vmatprep.subr.mxu0 %v3187_v40  ;;  %v4313_v40 = vld [vmem:[%s7318_s9 + $0xb0] sm:$0xff]  ;;  %4681 = vmatpush3.msra.mxu1 %v3383_v31  ;;  %v3745_v31 = vld [vmem:[#allocation5 + $0x48] sm:$0xff] }
 0x478   : > { %4431 = vmatpush3.msra.mxu0 %v3171_v43  ;;  %v3382_v43 = vld [vmem:[%s7318_s9 + $0x28] sm:$0xff]  ;;  %4682 = vmatprep.subr.mxu1 %v5031_v0 }
 0x479   : > { %4432 = vmatprep.subr.mxu0 %v3186_v52  ;;  %v4312_v52 = vld [vmem:[%s7318_s9 + $0xa8] sm:$0xff]  ;;  %4683 = vmatpush3.msra.mxu1 %v3382_v43  ;;  %v3743_v43 = vld [vmem:[#allocation5 + $0x38] sm:$0xff] }
 0x47a   : > { %4433 = vmatpush3.msra.mxu0 %v3170_v59  ;;  %v3381_v59 = vld [vmem:[%s7318_s9 + $0x20] sm:$0xff]  ;;  %4684 = vmatprep.subr.mxu1 %v5031_v0 }
 0x47b   : > { %4434 = vmatprep.subr.mxu0 %v3185_v63  ;;  %4685 = vmatpush3.msra.mxu1 %v3381_v59  ;;  %v3380_v63 = vld [vmem:[%s7318_s9 + $0x18] sm:$0xff]  ;;  %v3741_v59 = vld [vmem:[#allocation5 + $0x28] sm:$0xff] }
 0x47c   : > { %4435 = vmatpush3.msra.mxu0 %v3169_v32  ;;  %4686 = vmatprep.subr.mxu1 %v5031_v0  ;;  %v4311_v32 = vld [vmem:[%s7318_s9 + $0xa0] sm:$0xff] }
 0x47d   : > { %4439 = vmatprep.subr.mxu0 %v4306_v44  ;;  %4687 = vmatpush3.msra.mxu1 %v3380_v63  ;;  %v3379_v44 = vld [vmem:[%s7318_s9 + $0x10] sm:$0xff]  ;;  %v3740_v63 = vld [vmem:[#allocation5 + $0x20] sm:$0xff] }
 0x47e   : > { %4688 = vmatprep.subr.mxu1 %v5031_v0 }
 0x47f   : > { %4689 = vmatpush3.msra.mxu1 %v3379_v44  ;;  %v3738_v44 = vld [vmem:[#allocation5 + $0x10] sm:$0xff] }
 0x480   : > { %4690 = vmatprep.subr.mxu1 %v5031_v0 }
 0x519   : > { %v3086_v36 = vpop.f32.mrf.mxu0 }
 0x51b   : > { %v3088_v38 = vpop.f32.mrf.mxu0 }
 0x51d   : > { %v3162_v42 = vpop.f32.mrf.mxu0 }
 0x51e   : > { %v6881_v54 = vmax.f32 %v3086_v36, %v3162_v42  ;;  %v4310_v36 = vld [vmem:[%s7318_s9 + $0x98] sm:$0xff]  ;;  %v4309_v42 = vld [vmem:[%s7318_s9 + $0x90] sm:$0xff] }
 0x51f   : > { %v3164_v48 = vpop.f32.mrf.mxu0 }
 0x520   : > { %v3168_v50 = vmax.f32 %v3088_v38, %v3164_v48  ;;  %v3378_v38 = vld [vmem:[%s7318_s9 + $0x8] sm:$0xff]  ;;  %v3377_v48 = vld [vmem:[%s7318_s9] sm:$0xff] }
 0x521   : > { %4691 = vmatpush3.msra.mxu1 %v3378_v38  ;;  %v3736_v38 = vld [vmem:[#allocation5] sm:$0xff] }
 0x522   : > { %3265 = vmatprep.mubr.f32.mxu0 %v3168_v50  ;;  %4692 = vmatprep.subr.mxu1 %v5031_v0 }
 0x523   : > { %3266 = vmatmul.mubr.f32.vlgmr.msra.gmra.mxu0 %v6881_v54  ;;  %4693 = vmatpush3.msra.mxu1 %v3377_v48 }
 0x524   : > { %4440 = vmatpush3.msra.mxu0 %v4290_v23  ;;  %3368 = vmatprep.mubr.f32.mxu0 %v3168_v50  ;;  %v4308_v50 = vld [vmem:[%s7318_s9 + $0x88] sm:$0xff] }
 0x525   : > { %4441 = vmatprep.subr.mxu0 %v4305_v26  ;;  %4732 = vmatprep.subr.mxu1 %v5031_v0 }
 0x526   : > { %4442 = vmatpush3.msra.mxu0 %v4289_v1 }
 0x527   : > { %4443 = vmatprep.subr.mxu0 %v4304_v16 }
 0x528   : > { %4444 = vmatpush3.msra.mxu0 %v4288_v34 }
 0x529   : > { %4445 = vmatprep.subr.mxu0 %v4303_v46 }
 0x52a   : > { %4446 = vmatpush3.msra.mxu0 %v4287_v62 }
 0x52b   : > { %4447 = vmatprep.subr.mxu0 %v4302_v3 }
 0x52c   : > { %4448 = vmatpush3.msra.mxu0 %v4286_v56  ;;  %v4338_v56 = vld [vmem:[%s7318_s9 + $0x178] sm:$0xff] }
 0x52d   : > { %4449 = vmatprep.subr.mxu0 %v4301_v8 }
 0x52e   : > { %4450 = vmatpush3.msra.mxu0 %v4285_v20  ;;  %v4337_v20 = vld [vmem:[%s7318_s9 + $0x170] sm:$0xff] }
 0x52f   : > { %4451 = vmatprep.subr.mxu0 %v4300_v58  ;;  %v4354_v58 = vld [vmem:[%s7318_s9 + $0x1f8] sm:$0xff] }
 0x530   : > { %4452 = vmatpush3.msra.mxu0 %v4284_v60  ;;  %v4336_v60 = vld [vmem:[%s7318_s9 + $0x168] sm:$0xff] }
 0x531   : > { %4453 = vmatprep.subr.mxu0 %v4299_v55  ;;  %v4353_v55 = vld [vmem:[%s7318_s9 + $0x1f0] sm:$0xff] }
 0x532   : > { %4454 = vmatpush3.msra.mxu0 %v4283_v15  ;;  %v4335_v15 = vld [vmem:[%s7318_s9 + $0x160] sm:$0xff] }
 0x533   : > { %4455 = vmatprep.subr.mxu0 %v4298_v4  ;;  %v4352_v4 = vld [vmem:[%s7318_s9 + $0x1e8] sm:$0xff] }
 0x534   : > { %4456 = vmatpush3.msra.mxu0 %v4282_v9  ;;  %v4334_v9 = vld [vmem:[%s7318_s9 + $0x158] sm:$0xff] }
 0x535   : > { %4457 = vmatprep.subr.mxu0 %v4297_v17  ;;  %v4351_v17 = vld [vmem:[%s7318_s9 + $0x1e0] sm:$0xff] }
 0x536   : > { %4458 = vmatpush3.msra.mxu0 %v4281_v21  ;;  %v4333_v21 = vld [vmem:[%s7318_s9 + $0x150] sm:$0xff] }
 0x537   : > { %4459 = vmatprep.subr.mxu0 %v4296_v22  ;;  %v4350_v22 = vld [vmem:[%s7318_s9 + $0x1d8] sm:$0xff] }
 0x538   : > { %4460 = vmatpush3.msra.mxu0 %v4280_v7  ;;  %v4332_v7 = vld [vmem:[%s7318_s9 + $0x148] sm:$0xff] }
 0x539   : > { %4461 = vmatprep.subr.mxu0 %v4295_v5  ;;  %v4349_v5 = vld [vmem:[%s7318_s9 + $0x1d0] sm:$0xff] }
 0x53a   : > { %4462 = vmatpush3.msra.mxu0 %v4279_v24  ;;  %v4331_v24 = vld [vmem:[%s7318_s9 + $0x140] sm:$0xff] }
 0x53b   : > { %4463 = vmatprep.subr.mxu0 %v4294_v27  ;;  %v4348_v27 = vld [vmem:[%s7318_s9 + $0x1c8] sm:$0xff] }
 0x53c   : > { %4464 = vmatpush3.msra.mxu0 %v4278_v19  ;;  %v4330_v19 = vld [vmem:[%s7318_s9 + $0x138] sm:$0xff] }
 0x53d   : > { %4465 = vmatprep.subr.mxu0 %v4293_v29  ;;  %v4347_v29 = vld [vmem:[%s7318_s9 + $0x1c0] sm:$0xff] }
 0x53e   : > { %4466 = vmatpush3.msra.mxu0 %v4277_v30  ;;  %v4329_v30 = vld [vmem:[%s7318_s9 + $0x130] sm:$0xff] }
 0x53f   : > { %4467 = vmatprep.subr.mxu0 %v4292_v28  ;;  %v4346_v28 = vld [vmem:[%s7318_s9 + $0x1b8] sm:$0xff] }
 0x540   : > { %4468 = vmatpush3.msra.mxu0 %v4276_v12  ;;  %v4328_v12 = vld [vmem:[%s7318_s9 + $0x128] sm:$0xff] }
 0x541   : > { %4469 = vmatprep.subr.mxu0 %v4291_v13  ;;  %v4345_v13 = vld [vmem:[%s7318_s9 + $0x1b0] sm:$0xff] }
 0x542   : > { %4470 = vmatpush3.msra.mxu0 %v4275_v14  ;;  %v4327_v14 = vld [vmem:[%s7318_s9 + $0x120] sm:$0xff] }
 0x543   : > { %3369 = vmatmul.mubr.f32.vlgmr.msra.gmra.mxu0 %v6881_v54  ;;  %4697 = vmatprep.subr.mxu0 %v5031_v0  ;;  %v4307_v54 = vld [vmem:[%s7318_s9 + $0x80] sm:$0xff] }
 0x544   : > { %4729 = vmatprep.mubr.msk.f32.mxu0 %vm5032_vm0, %v5031_v0  ;;  %4698 = vmatpush3.msra.mxu0 %v4322_v37  ;;  %v4343_v37 = vld [vmem:[%s7318_s9 + $0x1a0] sm:$0xff] }
 0x545   : > { %4699 = vmatprep.subr.mxu0 %v5031_v0 }
 0x546   : > { %4700 = vmatpush3.msra.mxu0 %v4321_v41  ;;  %v4325_v41 = vld [vmem:[%s7318_s9 + $0x110] sm:$0xff] }
 0x547   : > { %4701 = vmatprep.subr.mxu0 %v5031_v0 }
 0x548   : > { %4702 = vmatpush3.msra.mxu0 %v4320_v49  ;;  %v4324_v49 = vld [vmem:[%s7318_s9 + $0x108] sm:$0xff] }
 0x549   : > { %4703 = vmatprep.subr.mxu0 %v5031_v0 }
 0x54a   : > { %4704 = vmatpush3.msra.mxu0 %v4319_v57  ;;  %v4323_v57 = vld [vmem:[%s7318_s9 + $0x100] sm:$0xff] }
 0x54b   : > { %4705 = vmatprep.subr.mxu0 %v5031_v0 }
 0x54c   : > { %4706 = vmatpush3.msra.mxu0 %v4318_v2 }
 0x54d   : > { %4707 = vmatprep.subr.mxu0 %v5031_v0 }
 0x54e   : > { %4708 = vmatpush3.msra.mxu0 %v4317_v39 }
 0x54f   : > { %4709 = vmatprep.subr.mxu0 %v5031_v0 }
 0x550   : > { %4710 = vmatpush3.msra.mxu0 %v4316_v51  ;;  %v3750_v51 = vld [vmem:[#allocation5 + $0x70] sm:$0xff] }
 0x551   : > { %4711 = vmatprep.subr.mxu0 %v5031_v0 }
 0x552   : > { %4712 = vmatpush3.msra.mxu0 %v4315_v10  ;;  %v3748_v10 = vld [vmem:[#allocation5 + $0x60] sm:$0xff] }
 0x553   : > { %4713 = vmatprep.subr.mxu0 %v5031_v0 }
 0x554   : > { %4714 = vmatpush3.msra.mxu0 %v4314_v18  ;;  %v3746_v18 = vld [vmem:[#allocation5 + $0x50] sm:$0xff] }
 0x555   : > { %4715 = vmatprep.subr.mxu0 %v5031_v0 }
 0x556   : > { %4716 = vmatpush3.msra.mxu0 %v4313_v40  ;;  %v3744_v40 = vld [vmem:[#allocation5 + $0x40] sm:$0xff] }
 0x557   : > { %4717 = vmatprep.subr.mxu0 %v5031_v0 }
 0x558   : > { %4718 = vmatpush3.msra.mxu0 %v4312_v52  ;;  %v3742_v52 = vld [vmem:[#allocation5 + $0x30] sm:$0xff] }
 0x559   : > { %4719 = vmatprep.subr.mxu0 %v5031_v0 }
 0x55a   : > { %4720 = vmatpush3.msra.mxu0 %v4311_v32  ;;  %v3739_v32 = vld [vmem:[#allocation5 + $0x18] sm:$0xff] }
 0x55b   : > { %4721 = vmatprep.subr.mxu0 %v5031_v0 }
 0x55c   : > { %4722 = vmatpush3.msra.mxu0 %v4310_v36  ;;  %v3737_v36 = vld [vmem:[#allocation5 + $0x8] sm:$0xff] }
 0x55d   : > { %4723 = vmatprep.subr.mxu0 %v5031_v0 }
 0x55e   : > { %4724 = vmatpush3.msra.mxu0 %v4309_v42 }
 0x55f   : > { %4725 = vmatprep.subr.mxu0 %v5031_v0 }
 0x560   : > { %4726 = vmatpush3.msra.mxu0 %v4308_v50 }
 0x561   : > { %4727 = vmatprep.subr.mxu0 %v5031_v0 }
 0x562   : > { %4728 = vmatpush3.msra.mxu0 %v4307_v54 }
 0x563   : > { %4767 = vmatprep.subr.mxu0 %v5031_v0 }
 0x5e3   : > { %v4436_v23 = vpop.f32.mrf.mxu0 }
 0x5e5   : > { %v4437_v26 = vpop.f32.mrf.mxu0 }
 0x5e6   : > { %v4438_v34 = vadd.f32 %v4437_v26, %v4436_v23  ;;  %v3376_v23 = vld [vmem:[%s7319_s10] sm:$0x1] }
 0x603   : > { %v4471_v1 = vpop.f32.mrf.mxu0 }
 0x605   : > { %v4472_v16 = vpop.f32.mrf.mxu0 }
 0x606   : > { %v4473_v46 = vadd.f32 %v4472_v16, %v4471_v1 }
 0x608   : > { %v3374_v62 = vmax.f32 %v4438_v34, %v4473_v46 }
 0x60a   : > { %v7109_v3 = vmax.f32 %v3374_v62, 0.0 }
 0x60c   : > { %4695 = vmatmul.mubr.f32.vlgmr.msra.gmra.mxu1 %v7109_v3  ;;  %v3482_v8 = vrot.slane %v7109_v3, 1  ;;  %v3572_v2 = vrot.slane %v7109_v3, 2  ;;  %v3662_v39 = vrot.slane %v7109_v3, 3 }
 0x60d   : > { %4733 = vmatpush3.msra.mxu1 %v4338_v56  ;;  %4764 = vmatprep.mubr.msk.f32.mxu1 %vm5032_vm0, %v5031_v0 }
 0x60e   : > { %4734 = vmatprep.subr.mxu1 %v5031_v0  ;;  %4730 = vmatmul.mubr.f32.vlgmr.msra.gmra.mxu0 %v3482_v8  ;;  %v3752_v8 = vld [vmem:[%s7321_s12] sm:$0x1] }
 0x60f   : > { %4735 = vmatpush3.msra.mxu1 %v4337_v20  ;;  %4768 = vmatpush3.msra.mxu0 %v4354_v58 }
 0x610   : > { %4736 = vmatprep.subr.mxu1 %v5031_v0  ;;  %4769 = vmatprep.subr.mxu0 %v5031_v0 }
 0x611   : > { %4737 = vmatpush3.msra.mxu1 %v4336_v60  ;;  %4770 = vmatpush3.msra.mxu0 %v4353_v55 }
 0x612   : > { %4738 = vmatprep.subr.mxu1 %v5031_v0  ;;  %4771 = vmatprep.subr.mxu0 %v5031_v0 }
 0x613   : > { %4739 = vmatpush3.msra.mxu1 %v4335_v15  ;;  %4772 = vmatpush3.msra.mxu0 %v4352_v4 }
 0x614   : > { %4740 = vmatprep.subr.mxu1 %v5031_v0  ;;  %4773 = vmatprep.subr.mxu0 %v5031_v0 }
 0x615   : > { %4741 = vmatpush3.msra.mxu1 %v4334_v9  ;;  %4774 = vmatpush3.msra.mxu0 %v4351_v17 }
 0x616   : > { %4742 = vmatprep.subr.mxu1 %v5031_v0  ;;  %4775 = vmatprep.subr.mxu0 %v5031_v0 }
 0x617   : > { %4743 = vmatpush3.msra.mxu1 %v4333_v21  ;;  %4776 = vmatpush3.msra.mxu0 %v4350_v22 }
 0x618   : > { %4744 = vmatprep.subr.mxu1 %v5031_v0  ;;  %4777 = vmatprep.subr.mxu0 %v5031_v0 }
 0x619   : > { %4745 = vmatpush3.msra.mxu1 %v4332_v7  ;;  %4778 = vmatpush3.msra.mxu0 %v4349_v5 }
 0x61a   : > { %4746 = vmatprep.subr.mxu1 %v5031_v0  ;;  %4779 = vmatprep.subr.mxu0 %v5031_v0 }
 0x61b   : > { %4747 = vmatpush3.msra.mxu1 %v4331_v24  ;;  %4780 = vmatpush3.msra.mxu0 %v4348_v27 }
 0x61c   : > { %4748 = vmatprep.subr.mxu1 %v5031_v0  ;;  %4781 = vmatprep.subr.mxu0 %v5031_v0 }
 0x61d   : > { %4749 = vmatpush3.msra.mxu1 %v4330_v19  ;;  %4782 = vmatpush3.msra.mxu0 %v4347_v29 }
 0x61e   : > { %4750 = vmatprep.subr.mxu1 %v5031_v0  ;;  %4783 = vmatprep.subr.mxu0 %v5031_v0 }
 0x61f   : > { %4751 = vmatpush3.msra.mxu1 %v4329_v30  ;;  %4784 = vmatpush3.msra.mxu0 %v4346_v28 }
 0x620   : > { %4752 = vmatprep.subr.mxu1 %v5031_v0  ;;  %4785 = vmatprep.subr.mxu0 %v5031_v0 }
 0x621   : > { %4753 = vmatpush3.msra.mxu1 %v4328_v12  ;;  %4786 = vmatpush3.msra.mxu0 %v4345_v13 }
 0x622   : > { %4754 = vmatprep.subr.mxu1 %v5031_v0  ;;  %4787 = vmatprep.subr.mxu0 %v5031_v0 }
 0x623   : > { %4755 = vmatpush3.msra.mxu1 %v4327_v14  ;;  %4788 = vmatpush3.msra.mxu0 %v4344_v25 }
 0x624   : > { %4756 = vmatprep.subr.mxu1 %v5031_v0  ;;  %4789 = vmatprep.subr.mxu0 %v5031_v0 }
 0x625   : > { %4757 = vmatpush3.msra.mxu1 %v4326_v33  ;;  %4790 = vmatpush3.msra.mxu0 %v4343_v37 }
 0x626   : > { %4758 = vmatprep.subr.mxu1 %v5031_v0  ;;  %4791 = vmatprep.subr.mxu0 %v5031_v0 }
 0x627   : > { %4759 = vmatpush3.msra.mxu1 %v4325_v41  ;;  %4792 = vmatpush3.msra.mxu0 %v4342_v45 }
 0x628   : > { %4760 = vmatprep.subr.mxu1 %v5031_v0  ;;  %4793 = vmatprep.subr.mxu0 %v5031_v0 }
 0x629   : > { %4761 = vmatpush3.msra.mxu1 %v4324_v49  ;;  %4794 = vmatpush3.msra.mxu0 %v4341_v53 }
 0x62a   : > { %4762 = vmatprep.subr.mxu1 %v5031_v0  ;;  %4795 = vmatprep.subr.mxu0 %v5031_v0 }
 0x62b   : > { %4763 = vmatpush3.msra.mxu1 %v4323_v57  ;;  %4796 = vmatpush3.msra.mxu0 %v4340_v61 }
 0x62c   : > { %4765 = vmatmul.mubr.f32.vlgmr.msra.gmra.mxu1 %v3572_v2  ;;  %4797 = vmatprep.subr.mxu0 %v5031_v0 }
 0x62d   : > { %4798 = vmatpush3.msra.mxu0 %v4339_v35  ;;  %4799 = vmatprep.mubr.msk.f32.mxu0 %vm5032_vm0, %v5031_v0 }
 0x62e   : > { %4800 = vmatmul.mubr.f32.vlgmr.msra.gmra.mxu0 %v3662_v39  ;;  %4802 = vmatprep.subr.mxu1 %v5031_v0 }
 0x62f   : > { %4834 = vmatprep.mubr.msk.f32.mxu1 %vm5032_vm0, %v5031_v0  ;;  %4803 = vmatpush3.msra.mxu1 %v3751_v47 }
 0x630   : > { %4804 = vmatprep.subr.mxu1 %v5031_v0 }
 0x631   : > { %4805 = vmatpush3.msra.mxu1 %v3750_v51 }
 0x632   : > { %4806 = vmatprep.subr.mxu1 %v5031_v0 }
 0x633   : > { %4807 = vmatpush3.msra.mxu1 %v3749_v6 }
 0x634   : > { %4808 = vmatprep.subr.mxu1 %v5031_v0 }
 0x635   : > { %4809 = vmatpush3.msra.mxu1 %v3748_v10 }
 0x636   : > { %4810 = vmatprep.subr.mxu1 %v5031_v0 }
 0x637   : > { %4811 = vmatpush3.msra.mxu1 %v3747_v11 }
 0x638   : > { %4812 = vmatprep.subr.mxu1 %v5031_v0 }
 0x639   : > { %4813 = vmatpush3.msra.mxu1 %v3746_v18 }
 0x63a   : > { %4814 = vmatprep.subr.mxu1 %v5031_v0 }
 0x63b   : > { %4815 = vmatpush3.msra.mxu1 %v3745_v31 }
 0x63c   : > { %4816 = vmatprep.subr.mxu1 %v5031_v0 }
 0x63d   : > { %4817 = vmatpush3.msra.mxu1 %v3744_v40 }
 0x63e   : > { %4818 = vmatprep.subr.mxu1 %v5031_v0 }
 0x63f   : > { %4819 = vmatpush3.msra.mxu1 %v3743_v43 }
 0x640   : > { %4820 = vmatprep.subr.mxu1 %v5031_v0 }
 0x641   : > { %4821 = vmatpush3.msra.mxu1 %v3742_v52 }
 0x642   : > { %4822 = vmatprep.subr.mxu1 %v5031_v0 }
 0x643   : > { %4823 = vmatpush3.msra.mxu1 %v3741_v59 }
 0x644   : > { %4824 = vmatprep.subr.mxu1 %v5031_v0 }
 0x645   : > { %4825 = vmatpush3.msra.mxu1 %v3740_v63 }
 0x646   : > { %4826 = vmatprep.subr.mxu1 %v5031_v0 }
 0x647   : > { %4827 = vmatpush3.msra.mxu1 %v3739_v32 }
 0x648   : > { %4828 = vmatprep.subr.mxu1 %v5031_v0 }
 0x649   : > { %4829 = vmatpush3.msra.mxu1 %v3738_v44 }
 0x64a   : > { %4830 = vmatprep.subr.mxu1 %v5031_v0 }
 0x64b   : > { %4831 = vmatpush3.msra.mxu1 %v3737_v36 }
 0x64c   : > { %4832 = vmatprep.subr.mxu1 %v5031_v0 }
 0x64d   : > { %4833 = vmatpush3.msra.mxu1 %v3736_v38 }
 0x6cc   : > { %v3459_v42 = vpop.f32.mrf.mxu1 }
 0x6cd   : > { %v3463_v26 = vadd.f32 %v3459_v42, %v3376_v23 }
 0x6ce   : > { %v4696_v48 = vpop.f32.mrf.mxu1  ;;  %v3550_v50 = vpop.f32.mrf.mxu0 }
 0x6cf   : > { %v3554_v1 = vadd.f32 %v3550_v50, %v3463_v26 }
 0x6d0   : > { %v4731_v54 = vpop.f32.mrf.mxu0 }
 0x6ec   : > { %v3640_v16 = vpop.f32.mrf.mxu1 }
 0x6ed   : > { %v3644_v34 = vadd.f32 %v3640_v16, %v3554_v1 }
 0x6ee   : > { %v4766_v46 = vpop.f32.mrf.mxu1  ;;  %v3730_v62 = vpop.f32.mrf.mxu0 }
 0x6ef   : > { %v3734_v3 = vadd.f32 %v3730_v62, %v3644_v34 }
 0x6f0   : > { %v4801_v0 = vpop.f32.mrf.mxu0 }
 0x6f1   : > { %v3735_v56 = vmax.f32 %v3734_v3, 0.0 }
 0x6f3   : > { %4835 = vmatmul.mubr.f32.vlgmr.msra.gmra.mxu1 %v3735_v56 }
 0x7b3   : > { %v3819_v20 = vpop.f32.mrf.mxu1 }
 0x7b4   : > { %v3820_v58 = vadd.f32 %v3819_v20, %v3752_v8 }
 0x7b5   : > { %v4836_v60 = vpop.f32.mrf.mxu1 }
 0x7b6   : > { %3823 = vst [vmem:[%s462_s17] sm:$0x1] %v3820_v58 }
 0x7b7   : > { %4968 = shalt.err (!%p4965_p3)
}
 0x7b8   : > { %s4969_s25 = scalar_lea.hbm %s7274_s23, 16  ;;  %s4973_s14 = scalar_lea.hbm %s7322_s13, 32 }
 0x7b9   : > { %p4970_p2 = scmp.ne.s32.totalorder %s7274_s23, %s4969_s25  ;;  %p4974_p6 = scmp.lt.s32.totalorder %s7274_s23, %s7322_s13 }
 0x7ba   : > { %p4975_p9 = scmp.lt.s32.totalorder %s4973_s14, %s4969_s25 }
 0x7bb   : > { %p4971_p4 = pnand %p4970_p2, %p5142_p5 }
 0x7bc   : > { %p4976_p7 = por %p4975_p9, %p4974_p6 }
 0x7bd   : > { %p4972_p13 = pneg %p4971_p4 }
 0x7bf   : > { %p4977_p10 = pnand %p4976_p7, %p4972_p13 }
 0x7c1   : > { %4980 = shalt.err (!%p4977_p10)
}
 0x7c2   : > { %4845 = dma.vmem_to_hbm [thread:$0]  (%p5142_p5), %s3838_s19, 16, %s7274_s23, %s3825_s30  }
 0x7c3 PF: > { %s7342_s22 = sld [smem:[#allocation11_spill]]  ;;  %p4862_p12 = scmp.ge.s32.totalorder %s5023_s28, 2 }
 0x7c4   : > { %s7343_s16 = sld [smem:[#allocation15_spill]] }
 0x7c9   : > { %s3849_s21 = sand.u32 1, %s7342_s22  }
 0x7ca   : > { %p7344_p8 = scmp.ne.s32.totalorder %s7343_s16, 0  ;;  %s3850_s29 = scalar_lea.sflag [#allocation4], %s3849_s21 }
 0x7cc   : > { %p4855_p11 = pnand %p4862_p12, %p7344_p8 }
 0x7ce   : > { %p4856_p0 = pneg %p4855_p11 }
 0x7d0   : > { %5006 = dma.done.wait (%p4856_p0), %s3850_s29, 16  }
 0x7d1   : > { %5008 = vsyncadd (%p4856_p0), %s3850_s29, 4294967280  ;;  %s7345_s28 = sld [smem:[#allocation13_spill]]  ;;  %s7348_s25 = smov %s5015_s26 }
 0x7d2   : > { %s7346_s24 = sld [smem:[#allocation12_spill]] }
 0x7d3   : > { %s7347_s27 = sld [smem:[#allocation14_spill]] }
 0x7d7   : > { %p25_p1 = scmp.ge.s32.totalorder %s7345_s28, 4  }
 0x7d8   : > { %s7349_s26 = smov %s7346_s24 }
 0x7d9   :  { %27 = sbr.rel (!%p25_p1) target bundleno = 5 (0x5), region = 131 }
 0x7de   :  { %3854 = vsyncpa [#allocation3], 1 }
 0x7df   :  { %3856 = vsyncpa [#allocation3 + $0x1], 1 }
 0x7e0   :  { %3857 = vsyncpa [#allocation6], 1 }
 0x7e1   :  { %3858 = vsyncpa [#allocation4], 1 }
 0x7e2   :  { %3860 = vsyncpa [#allocation4 + $0x1], 1 }

</bundles_post_ra>
